<compile_context>
chip_gen: v7x
topology: tpu7x:2x2x1
jax: 0.10.0
libtpu: 0.0.40
codegen_flags: <defaults>
</compile_context>

<pallas_src>
import numpy as np
import jax
import jax.numpy as jnp
from jax import lax
from jax.experimental import pallas as pl
from jax.experimental.pallas import tpu as pltpu

EPS = 1e-5
EXPANSION = 4
LANE = 128


# ----------------------------------------------------------------------------
# small helpers
# ----------------------------------------------------------------------------
def _round_up(x, m):
    return (x + m - 1) // m * m


def _hw_budget():
    """(vmem_limit_bytes, row_tile_cap) derived from the TPU generation."""
    vmem_phys = 64 * 1024 * 1024
    try:
        info = pltpu.get_tpu_info()
        vmem_phys = int(getattr(info, "vmem_capacity_bytes", vmem_phys))
    except Exception:
        pass
    if vmem_phys >= 100 * 1024 * 1024:      # v5e / v6e: 128 MiB physical VMEM
        return 96 * 1024 * 1024, 1024
    return 48 * 1024 * 1024, 512            # v7x: 64 MiB physical VMEM


_VMEM_LIMIT, _ROW_TILE_CAP = _hw_budget()


def _compiler_params(sem):
    return pltpu.CompilerParams(dimension_semantics=sem,
                                vmem_limit_bytes=_VMEM_LIMIT)


def _pick_row_tile(m, cap=None):
    """Largest row tile <= cap (multiple of 8).  Exact divisors of m are only
    accepted when reasonably large (>=256 or the whole problem); otherwise the
    caller pads the rows up to a multiple of the returned tile."""
    cap = _ROW_TILE_CAP if cap is None else cap
    t = min(cap, _round_up(m, 8))
    t -= t % 8
    t = max(t, 8)
    floor = min(t, 256)
    for cand in range(t, floor - 1, -8):
        if m % cand == 0:
            return cand
    return t


def _pick_conv_rows(ho, wo, cap=None):
    """Output rows per conv2 grid step: largest divisor of ho with R*wo<=cap."""
    cap = _ROW_TILE_CAP if cap is None else cap
    best = 1
    for r in range(1, ho + 1):
        if ho % r == 0 and r * wo <= cap:
            best = r
    return best


def _pad_vec(v, n):
    return jnp.pad(v, (0, n - v.shape[0]))


def _pad_mat(a, r, c):
    return jnp.pad(a, ((0, r - a.shape[0]), (0, c - a.shape[1])))


def _pad_rows(a, r):
    return a if a.shape[0] == r else jnp.pad(a, ((0, r - a.shape[0]), (0, 0)))


def _affine_from_stats(partials, gamma, beta, count):
    """Partial (sum, sumsq) blocks -> per-channel (scale, shift) so that
    y*scale + shift == BN(y) with batch statistics (training-mode forward)."""
    stats = jnp.sum(partials.astype(jnp.float32),
                    axis=tuple(range(partials.ndim - 2)))
    mean = stats[0] / count
    var = jnp.maximum(stats[1] / count - mean * mean, 0.0)
    # TODO(synk): Welford-style merging of the per-tile partials would be more
    #             robust to cancellation for very large row counts.
    inv = gamma * lax.rsqrt(var + EPS)
    return inv.reshape(1, -1), (beta - mean * inv).reshape(1, -1)


# ----------------------------------------------------------------------------
# Kernel 1: tiled matmul + per-tile BN partial stats (fully parallel grid)
# ----------------------------------------------------------------------------
def _mm_stats_kernel(x_ref, w_ref, y_ref, st_ref):
    y = jnp.dot(x_ref[...], w_ref[...], preferred_element_type=jnp.float32)
    y_ref[...] = y.astype(y_ref.dtype)
    st = jnp.concatenate([jnp.sum(y, axis=0, keepdims=True),
                          jnp.sum(y * y, axis=0, keepdims=True)], axis=0)
    st_ref[...] = st[None]


def _matmul_stats(x, w, tm):
    mp, kp = x.shape
    np_ = w.shape[1]
    nt = mp // tm
    return pl.pallas_call(
        _mm_stats_kernel,
        out_shape=[jax.ShapeDtypeStruct((mp, np_), jnp.bfloat16),
                   jax.ShapeDtypeStruct((nt, 2, np_), jnp.float32)],
        grid=(nt,),
        in_specs=[pl.BlockSpec((tm, kp), lambda i: (i, 0)),
                  pl.BlockSpec((kp, np_), lambda i: (0, 0))],
        out_specs=[pl.BlockSpec((tm, np_), lambda i: (i, 0)),
                   pl.BlockSpec((1, 2, np_), lambda i: (i, 0, 0))],
        compiler_params=_compiler_params(("parallel",)),
    )(x, w)


# ----------------------------------------------------------------------------
# Kernel 2: tiled BN-apply + ReLU (elementwise)
# ----------------------------------------------------------------------------
def _bn_relu_kernel(y_ref, sc_ref, sh_ref, o_ref):
    v = y_ref[...].astype(jnp.float32) * sc_ref[...] + sh_ref[...]
    o_ref[...] = jnp.maximum(v, 0.0).astype(o_ref.dtype)


def _bn_relu_apply(y, scale, shift, tm, out_dtype):
    mp, np_ = y.shape
    return pl.pallas_call(
        _bn_relu_kernel,
        out_shape=jax.ShapeDtypeStruct((mp, np_), out_dtype),
        grid=(mp // tm,),
        in_specs=[pl.BlockSpec((tm, np_), lambda i: (i, 0)),
                  pl.BlockSpec((1, np_), lambda i: (0, 0)),
                  pl.BlockSpec((1, np_), lambda i: (0, 0))],
        out_specs=pl.BlockSpec((tm, np_), lambda i: (i, 0)),
        compiler_params=_compiler_params(("parallel",)),
    )(y, scale, shift)


# ----------------------------------------------------------------------------
# Kernel 3: 3x3 conv, R output rows per grid step from one halo slab.
#           Stride is handled by phase-major reordering done in the wrapper,
#           so all nine taps are static contiguous slices (no strided loads).
#           Emits per-(batch, chunk) BN2 partial stats.
# ----------------------------------------------------------------------------
def _make_conv3x3_kernel(R, wo, c1p, s_in, wp_s, h_starts, w_starts):
    def kernel(slab_ref, w_ref, y_ref, st_ref):
        slab = slab_ref[...].reshape(s_in, wp_s, c1p)     # bf16
        wall = w_ref[...]                                  # (3, 3*c1p, c1p)
        acc = None
        for dy in range(3):
            h0 = h_starts[dy]
            taps = [slab[h0:h0 + R, w_starts[dx]:w_starts[dx] + wo, :]
                    .reshape(R * wo, c1p) for dx in range(3)]
            xcat = jnp.concatenate(taps, axis=-1)          # (R*wo, 3*c1p)
            part = jnp.dot(xcat, wall[dy], preferred_element_type=jnp.float32)
            acc = part if acc is None else acc + part
        y_ref[...] = acc.reshape(1, 1, R * wo, c1p).astype(y_ref.dtype)
        st = jnp.concatenate([jnp.sum(acc, axis=0, keepdims=True),
                              jnp.sum(acc * acc, axis=0, keepdims=True)], axis=0)
        st_ref[...] = st.reshape(1, 1, 2, c1p)
    return kernel


def _conv3x3_stats(x1_4d, w2cat, stride, n, h, w, ho, wo, c1p, R):
    nj = ho // R

    # Halo-pad H and W, then make the W axis phase-major so each dx tap is a
    # contiguous slice regardless of stride.
    wp_s = _round_up(w + 2, stride)
    x1p = jnp.pad(x1_4d, ((0, 0), (1, 1), (1, wp_s - w - 1), (0, 0)))
    if stride > 1:
        x1p = x1p.reshape(n, h + 2, wp_s // stride, stride, c1p)
        x1p = jnp.transpose(x1p, (0, 1, 3, 2, 4)).reshape(n, h + 2, wp_s, c1p)

    # Slab row bookkeeping (phase-major along H as well).
    per_phase = []
    for q in range(stride):
        dys = [dy for dy in range(3) if dy % stride == q]
        per_phase.append((max(dy // stride for dy in dys) + R) if dys else 0)
    phase_base = np.concatenate([[0], np.cumsum(per_phase)])[:stride]
    h_starts = tuple(int(phase_base[dy % stride] + dy // stride) for dy in range(3))
    w_starts = tuple((dx % stride) * (wp_s // stride) + dx // stride
                     for dx in range(3))

    offsets = np.concatenate([q + stride * np.arange(per_phase[q])
                              for q in range(stride) if per_phase[q] > 0])
    s_in = int(offsets.size)
    row_idx = ((np.arange(nj) * R * stride)[:, None]
               + offsets[None, :]).astype(np.int32)         # (nj, s_in)
    slabs = x1p[:, row_idx]                   # (n, nj, s_in, wp_s, c1p) bf16

    kernel = _make_conv3x3_kernel(R, wo, c1p, s_in, wp_s, h_starts, w_starts)
    y2, st2 = pl.pallas_call(
        kernel,
        out_shape=[jax.ShapeDtypeStruct((n, nj, R * wo, c1p), jnp.bfloat16),
                   jax.ShapeDtypeStruct((n, nj, 2, c1p), jnp.float32)],
        grid=(n, nj),
        in_specs=[pl.BlockSpec((1, 1, s_in, wp_s, c1p),
                               lambda b, j: (b, j, 0, 0, 0)),
                  pl.BlockSpec((3, 3 * c1p, c1p), lambda b, j: (0, 0, 0))],
        out_specs=[pl.BlockSpec((1, 1, R * wo, c1p), lambda b, j: (b, j, 0, 0)),
                   pl.BlockSpec((1, 1, 2, c1p), lambda b, j: (b, j, 0, 0))],
        compiler_params=_compiler_params(("parallel", "parallel")),
    )(slabs, w2cat)
    return y2.reshape(n * ho * wo, c1p), st2


# ----------------------------------------------------------------------------
# Kernel 4: fused BN2-apply + ReLU -> conv3 (1x1) matmul + BN3 partial stats
# ----------------------------------------------------------------------------
def _make_bnrelu_mm_stats_kernel(tm, m_actual, need_mask):
    def kernel(y_ref, sc_ref, sh_ref, w_ref, o_ref, st_ref):
        x = y_ref[...].astype(jnp.float32) * sc_ref[...] + sh_ref[...]
        x = jnp.maximum(x, 0.0)
        if need_mask:  # zero padded rows so they do not pollute BN3 stats
            rid = (lax.broadcasted_iota(jnp.int32, (tm, 1), 0)
                   + pl.program_id(0) * tm)
            x = jnp.where(rid < m_actual, x, 0.0)
        y = jnp.dot(x.astype(jnp.bfloat16), w_ref[...],
                    preferred_element_type=jnp.float32)
        o_ref[...] = y.astype(o_ref.dtype)
        st = jnp.concatenate([jnp.sum(y, axis=0, keepdims=True),
                              jnp.sum(y * y, axis=0, keepdims=True)], axis=0)
        st_ref[...] = st[None]
    return kernel


def _bnrelu_matmul_stats(y_prev, scale, shift, w, tm, m_actual):
    mp, kp = y_prev.shape
    np_ = w.shape[1]
    nt = mp // tm
    kernel = _make_bnrelu_mm_stats_kernel(tm, m_actual, mp != m_actual)
    return pl.pallas_call(
        kernel,
        out_shape=[jax.ShapeDtypeStruct((mp, np_), jnp.bfloat16),
                   jax.ShapeDtypeStruct((nt, 2, np_), jnp.float32)],
        grid=(nt,),
        in_specs=[pl.BlockSpec((tm, kp), lambda i: (i, 0)),
                  pl.BlockSpec((1, kp), lambda i: (0, 0)),
                  pl.BlockSpec((1, kp), lambda i: (0, 0)),
                  pl.BlockSpec((kp, np_), lambda i: (0, 0))],
        out_specs=[pl.BlockSpec((tm, np_), lambda i: (i, 0)),
                   pl.BlockSpec((1, 2, np_), lambda i: (i, 0, 0))],
        compiler_params=_compiler_params(("parallel",)),
    )(y_prev, scale, shift, w)


# ----------------------------------------------------------------------------
# Kernel 5: final BN3-apply + shortcut + add + ReLU (elementwise, tiled)
# ----------------------------------------------------------------------------
def _final_conv_shortcut_kernel(y3_ref, ys_ref, a3_ref, b3_ref, as_ref, bs_ref,
                                o_ref):
    v = (y3_ref[...].astype(jnp.float32) * a3_ref[...] + b3_ref[...]
         + ys_ref[...].astype(jnp.float32) * as_ref[...] + bs_ref[...])
    o_ref[...] = jnp.maximum(v, 0.0)


def _final_identity_kernel(y3_ref, sc_ref, a3_ref, b3_ref, o_ref):
    v = (y3_ref[...].astype(jnp.float32) * a3_ref[...] + b3_ref[...]
         + sc_ref[...].astype(jnp.float32))
    o_ref[...] = jnp.maximum(v, 0.0)


def _final_apply_conv_shortcut(y3, ys, sc3, sh3, scs, shs, tm):
    mp, np_ = y3.shape
    row = lambda: pl.BlockSpec((tm, np_), lambda i: (i, 0))
    vec = lambda: pl.BlockSpec((1, np_), lambda i: (0, 0))
    return pl.pallas_call(
        _final_conv_shortcut_kernel,
        out_shape=jax.ShapeDtypeStruct((mp, np_), jnp.float32),
        grid=(mp // tm,),
        in_specs=[row(), row(), vec(), vec(), vec(), vec()],
        out_specs=row(),
        compiler_params=_compiler_params(("parallel",)),
    )(y3, ys, sc3, sh3, scs, shs)


def _final_apply_identity(y3, shortcut, sc3, sh3, tm):
    mp, np_ = y3.shape
    row = lambda: pl.BlockSpec((tm, np_), lambda i: (i, 0))
    vec = lambda: pl.BlockSpec((1, np_), lambda i: (0, 0))
    return pl.pallas_call(
        _final_identity_kernel,
        out_shape=jax.ShapeDtypeStruct((mp, np_), jnp.float32),
        grid=(mp // tm,),
        in_specs=[row(), row(), vec(), vec()],
        out_specs=row(),
        compiler_params=_compiler_params(("parallel",)),
    )(y3, shortcut, sc3, sh3)


# ----------------------------------------------------------------------------
# Parameters (PyTorch shapes, deterministic init)
# ----------------------------------------------------------------------------
def init_params(key, in_chn, out_chn):
    exp = EXPANSION * out_chn
    k1, k2, k3, k4 = jax.random.split(key, 4)

    def conv_w(k, o, i, kh, kw):
        fan_in = i * kh * kw
        return (jax.random.normal(k, (o, i, kh, kw), jnp.float32)
                * jnp.sqrt(2.0 / fan_in))

    return {
        "w1": conv_w(k1, out_chn, in_chn, 1, 1),
        "w2": conv_w(k2, out_chn, out_chn, 3, 3),
        "w3": conv_w(k3, exp, out_chn, 1, 1),
        "ws": conv_w(k4, exp, in_chn, 1, 1),
        "g1": jnp.ones((out_chn,), jnp.float32), "b1": jnp.zeros((out_chn,), jnp.float32),
        "g2": jnp.ones((out_chn,), jnp.float32), "b2": jnp.zeros((out_chn,), jnp.float32),
        "g3": jnp.ones((exp,), jnp.float32),     "b3": jnp.zeros((exp,), jnp.float32),
        "gs": jnp.ones((exp,), jnp.float32),     "bs": jnp.zeros((exp,), jnp.float32),
    }


# ----------------------------------------------------------------------------
# Forward pass (Pallas)
# ----------------------------------------------------------------------------
def residual_bottleneck_blk(x_nchw, params, stride, out_chn):
    x = jnp.asarray(x_nchw, jnp.float32)
    n, in_chn, h, w = x.shape
    exp = EXPANSION * out_chn
    ho = (h - 1) // stride + 1
    wo = (w - 1) // stride + 1

    cin_p = _round_up(in_chn, LANE)
    c1p = _round_up(out_chn, LANE)
    ce_p = _round_up(exp, LANE)

    # NHWC, channel-padded (lane-dense) input
    x_nhwc = jnp.transpose(x, (0, 2, 3, 1))
    x4d = jnp.pad(x_nhwc, ((0, 0), (0, 0), (0, 0), (0, cin_p - in_chn)))

    m = n * h * w
    tm = _pick_row_tile(m)
    m_pad = _round_up(m, tm)
    x2d = _pad_rows(x4d.reshape(m, cin_p), m_pad).astype(jnp.bfloat16)

    mo = n * ho * wo
    tmo = _pick_row_tile(mo)
    mo_pad = _round_up(mo, tmo)

    # Weights in matmul layout, channel padded, bf16 (MXU-native).
    w1_m = _pad_mat(params["w1"][:, :, 0, 0].T, cin_p, c1p).astype(jnp.bfloat16)
    w2_4 = jnp.transpose(params["w2"], (2, 3, 1, 0))              # (3,3,in,out)
    w2_4 = jnp.pad(w2_4, ((0, 0), (0, 0), (0, c1p - out_chn), (0, c1p - out_chn)))
    w2cat = w2_4.reshape(3, 3 * c1p, c1p).astype(jnp.bfloat16)    # K folded over dx
    w3_m = _pad_mat(params["w3"][:, :, 0, 0].T, c1p, ce_p).astype(jnp.bfloat16)
    ws_m = _pad_mat(params["ws"][:, :, 0, 0].T, cin_p, ce_p).astype(jnp.bfloat16)

    g1, b1 = _pad_vec(params["g1"], c1p), _pad_vec(params["b1"], c1p)
    g2, b2 = _pad_vec(params["g2"], c1p), _pad_vec(params["b2"], c1p)
    g3, b3 = _pad_vec(params["g3"], ce_p), _pad_vec(params["b3"], ce_p)
    gs, bs = _pad_vec(params["gs"], ce_p), _pad_vec(params["bs"], ce_p)

    # stage 1: conv1 (1x1) matmul + per-tile BN1 partial stats (parallel grid)
    y1, st1 = _matmul_stats(x2d, w1_m, tm)
    sc1, sh1 = _affine_from_stats(st1, g1, b1, m)

    # BN1 apply + ReLU -> bf16 activation (half the HBM bytes into conv2)
    x1 = _bn_relu_apply(y1, sc1, sh1, tm, jnp.bfloat16)
    x1_4d = x1[:m].reshape(n, h, w, c1p)

    # stage 2: 3x3 conv, R output rows per grid step + BN2 partial stats
    R = _pick_conv_rows(ho, wo)
    y2, st2 = _conv3x3_stats(x1_4d, w2cat, stride, n, h, w, ho, wo, c1p, R)
    sc2, sh2 = _affine_from_stats(st2, g2, b2, mo)
    y2f = _pad_rows(y2, mo_pad)

    # stage 3: BN2-apply + ReLU fused with conv3 (1x1) matmul + BN3 stats
    y3, st3 = _bnrelu_matmul_stats(y2f, sc2, sh2, w3_m, tmo, mo)
    sc3, sh3 = _affine_from_stats(st3, g3, b3, mo)

    use_conv_shortcut = (stride != 1) or (in_chn != exp)
    if use_conv_shortcut:
        # strided 1x1 conv-shortcut as a plain tiled matmul on the (bf16)
        # spatially subsampled input + BN_s partial stats
        xs = x4d[:, ::stride, ::stride, :].reshape(mo, cin_p)
        xs2d = _pad_rows(xs, mo_pad).astype(jnp.bfloat16)
        ys, sts = _matmul_stats(xs2d, ws_m, tmo)
        scs, shs = _affine_from_stats(sts, gs, bs, mo)
        out2d = _final_apply_conv_shortcut(y3, ys, sc3, sh3, scs, shs, tmo)
    else:
        sc_flat = _pad_rows(x4d.reshape(m, cin_p), mo_pad)  # f32 identity residual
        out2d = _final_apply_identity(y3, sc_flat, sc3, sh3, tmo)

    out = out2d[:mo, :exp].reshape(n, ho, wo, exp)
    # TODO(synk): emit NHWC (and/or bf16) directly if the consumer allows it,
    #             saving this extra transpose pass over the output.
    return jnp.transpose(out, (0, 3, 1, 2))                       # NCHW


# ----------------------------------------------------------------------------
# Pure-JAX reference (mirrors the PyTorch module, training-mode BN, f32)
# ----------------------------------------------------------------------------
def reference(x_nchw, params, stride, out_chn):
    x = jnp.asarray(x_nchw, jnp.float32)
    in_chn = x.shape[1]
    exp = EXPANSION * out_chn

    def conv(a, wgt, s, pad):
        return lax.conv_general_dilated(
            a, wgt, (s, s), pad, dimension_numbers=("NCHW", "OIHW", "NCHW"))

    def bn(a, g, b):
        mean = jnp.mean(a, axis=(0, 2, 3), keepdims=True)
        var = jnp.mean(jnp.square(a - mean), axis=(0, 2, 3), keepdims=True)
        return ((a - mean) * lax.rsqrt(var + EPS) * g.reshape(1, -1, 1, 1)
                + b.reshape(1, -1, 1, 1))

    x1 = jax.nn.relu(bn(conv(x, params["w1"], 1, "VALID"), params["g1"], params["b1"]))
    x2 = jax.nn.relu(bn(conv(x1, params["w2"], stride, ((1, 1), (1, 1))),
                        params["g2"], params["b2"]))
    x3 = bn(conv(x2, params["w3"], 1, "VALID"), params["g3"], params["b3"])
    if stride != 1 or in_chn != exp:
        sc = bn(conv(x, params["ws"], stride, "VALID"), params["gs"], params["bs"])
    else:
        sc = x
    return jax.nn.relu(x3 + sc)


# ----------------------------------------------------------------------------
if __name__ == "__main__":
    key = jax.random.PRNGKey(0)
    fwd = jax.jit(residual_bottleneck_blk, static_argnums=(2, 3))

    # Case 1: stride=2, in_chn != expansion*out_chn  (conv shortcut path)
    n, in_chn, out_chn, hw, stride = 2, 4, 8, 16, 2
    kx, kp = jax.random.split(key)
    x = jax.random.normal(kx, (n, in_chn, hw, hw), jnp.float32)
    params = init_params(kp, in_chn, out_chn)

    out = jax.block_until_ready(fwd(x, params, stride, out_chn))
    ref = reference(x, params, stride, out_chn)
    assert out.shape == (n, EXPANSION * out_chn, hw // stride, hw // stride)
    # bf16 matmuls + bf16 intermediates -> loosened tolerance
    assert jnp.allclose(out, ref, atol=1e-1, rtol=1e-1), "mismatch (conv shortcut path)"
    assert float(jnp.mean(jnp.abs(out - ref))) < 3e-2

    # Case 2: stride=1, in_chn == expansion*out_chn  (identity shortcut path)
    in_chn2, out_chn2, stride2 = EXPANSION * 8, 8, 1
    kx2, kp2 = jax.random.split(kp)
    x2 = jax.random.normal(kx2, (n, in_chn2, hw, hw), jnp.float32)
    params2 = init_params(kp2, in_chn2, out_chn2)

    out2 = jax.block_until_ready(fwd(x2, params2, stride2, out_chn2))
    ref2 = reference(x2, params2, stride2, out_chn2)
    assert out2.shape == (n, EXPANSION * out_chn2, hw, hw)
    assert jnp.allclose(out2, ref2, atol=1e-1, rtol=1e-1), "mismatch (identity path)"
    assert float(jnp.mean(jnp.abs(out2 - ref2))) < 3e-2

    print("KERNEL_OK")
</pallas_src>

<mosaic_0001>
module attributes {stable_mosaic.version = 11 : i64} {
  func.func @_mm_stats_kernel(%arg0: i32, %arg1: memref<512x128xbf16, #tpu.memory_space<vmem>>, %arg2: memref<128x128xbf16, #tpu.memory_space<vmem>>, %arg3: memref<512x128xbf16, #tpu.memory_space<vmem>>, %arg4: memref<1x2x128xf32, #tpu.memory_space<vmem>>) attributes {dimension_semantics = [#tpu.dimension_semantics<parallel>], iteration_bounds = array<i64: 1>, scalar_prefetch = 0 : i64, scratch_operands = 0 : i64, tpu.core_type = #tpu.core_type<tc>, window_params = [{transform_indices = @transform_0, window_bounds = array<i64: 512, 128>}, {pipeline_mode = #tpu.pipeline_mode<synchronous>, transform_indices = @transform_1, window_bounds = array<i64: 128, 128>}, {transform_indices = @transform_2, window_bounds = array<i64: 512, 128>}, {transform_indices = @transform_3, window_bounds = array<i64: 1, 2, 128>}]} {
    %c0 = arith.constant 0 : index
    %c0_0 = arith.constant 0 : index
    %0 = vector.load %arg1[%c0, %c0_0] : memref<512x128xbf16, #tpu.memory_space<vmem>>, vector<512x128xbf16>
    %c0_1 = arith.constant 0 : index
    %c0_2 = arith.constant 0 : index
    %1 = vector.load %arg2[%c0_1, %c0_2] : memref<128x128xbf16, #tpu.memory_space<vmem>>, vector<128x128xbf16>
    %cst = arith.constant dense<0.000000e+00> : vector<512x128xf32>
    %2 = tpu.matmul %0, %1, %cst {dimension_numbers = #tpu.dot_dimension_numbers<[1], [0], [0], [1], [0, 0, 1, 1], [], []>} : vector<512x128xbf16>, vector<128x128xbf16>, vector<512x128xf32> -> vector<512x128xf32>
    %3 = arith.truncf %2 : vector<512x128xf32> to vector<512x128xbf16>
    %c0_3 = arith.constant 0 : index
    %c0_4 = arith.constant 0 : index
    %4 = vector.load %arg3[%c0_3, %c0_4] : memref<512x128xbf16, #tpu.memory_space<vmem>>, vector<512x128xbf16>
    tpu.vector_store %arg3[%c0_3, %c0_4], %3 {strides = array<i32>} : memref<512x128xbf16, #tpu.memory_space<vmem>>, vector<512x128xbf16>,
    %cst_5 = arith.constant dense<0.000000e+00> : vector<128xf32>
    %5 = vector.multi_reduction <add>, %2, %cst_5 [0] : vector<512x128xf32> to vector<128xf32>
    %6 = vector.shape_cast %5 : vector<128xf32> to vector<1x128xf32>
    %7 = arith.mulf %2, %2 : vector<512x128xf32>
    %cst_6 = arith.constant dense<0.000000e+00> : vector<128xf32>
    %8 = vector.multi_reduction <add>, %7, %cst_6 [0] : vector<512x128xf32> to vector<128xf32>
    %9 = vector.shape_cast %8 : vector<128xf32> to vector<1x128xf32>
    %10 = tpu.concatenate %6, %9 in 0 : vector<1x128xf32>, vector<1x128xf32> -> vector<2x128xf32>
    %11 = vector.shape_cast %10 : vector<2x128xf32> to vector<1x2x128xf32>
    %c0_7 = arith.constant 0 : index
    %c0_8 = arith.constant 0 : index
    %c0_9 = arith.constant 0 : index
    %12 = vector.load %arg4[%c0_7, %c0_8, %c0_9] : memref<1x2x128xf32, #tpu.memory_space<vmem>>, vector<1x2x128xf32>
    tpu.vector_store %arg4[%c0_7, %c0_8, %c0_9], %11 {strides = array<i32>} : memref<1x2x128xf32, #tpu.memory_space<vmem>>, vector<1x2x128xf32>,
    return
  }
  func.func @transform_0(%arg0: i32) -> (i32, i32) {
    %c0_i32 = arith.constant 0 : i32
    %c0_i32_0 = arith.constant 0 : i32
    return %arg0, %c0_i32 : i32, i32
  }
  func.func @transform_1(%arg0: i32) -> (i32, i32) {
    %c0_i32 = arith.constant 0 : i32
    %c0_i32_0 = arith.constant 0 : i32
    %c0_i32_1 = arith.constant 0 : i32
    return %c0_i32, %c0_i32_0 : i32, i32
  }
  func.func @transform_2(%arg0: i32) -> (i32, i32) {
    %c0_i32 = arith.constant 0 : i32
    %c0_i32_0 = arith.constant 0 : i32
    return %arg0, %c0_i32 : i32, i32
  }
  func.func @transform_3(%arg0: i32) -> (i32, i32, i32) {
    %c0_i32 = arith.constant 0 : i32
    %c0_i32_0 = arith.constant 0 : i32
    %c0_i32_1 = arith.constant 0 : i32
    return %arg0, %c0_i32, %c0_i32_0 : i32, i32, i32
  }
}

module attributes {stable_mosaic.version = 11 : i64} {
  func.func @_bn_relu_kernel(%arg0: i32, %arg1: memref<512x128xbf16, #tpu.memory_space<vmem>>, %arg2: memref<1x128xf32, #tpu.memory_space<vmem>>, %arg3: memref<1x128xf32, #tpu.memory_space<vmem>>, %arg4: memref<512x128xbf16, #tpu.memory_space<vmem>>) attributes {dimension_semantics = [#tpu.dimension_semantics<parallel>], iteration_bounds = array<i64: 1>, scalar_prefetch = 0 : i64, scratch_operands = 0 : i64, tpu.core_type = #tpu.core_type<tc>, window_params = [{transform_indices = @transform_0, window_bounds = array<i64: 512, 128>}, {pipeline_mode = #tpu.pipeline_mode<synchronous>, transform_indices = @transform_1, window_bounds = array<i64: 1, 128>}, {pipeline_mode = #tpu.pipeline_mode<synchronous>, transform_indices = @transform_2, window_bounds = array<i64: 1, 128>}, {transform_indices = @transform_3, window_bounds = array<i64: 512, 128>}]} {
    %c0 = arith.constant 0 : index
    %c0_0 = arith.constant 0 : index
    %0 = vector.load %arg1[%c0, %c0_0] : memref<512x128xbf16, #tpu.memory_space<vmem>>, vector<512x128xbf16>
    %1 = arith.extf %0 : vector<512x128xbf16> to vector<512x128xf32>
    %c0_1 = arith.constant 0 : index
    %c0_2 = arith.constant 0 : index
    %2 = vector.load %arg2[%c0_1, %c0_2] : memref<1x128xf32, #tpu.memory_space<vmem>>, vector<1x128xf32>
    %3 = vector.broadcast %2 : vector<1x128xf32> to vector<512x128xf32>
    %4 = arith.mulf %1, %3 : vector<512x128xf32>
    %c0_3 = arith.constant 0 : index
    %c0_4 = arith.constant 0 : index
    %5 = vector.load %arg3[%c0_3, %c0_4] : memref<1x128xf32, #tpu.memory_space<vmem>>, vector<1x128xf32>
    %6 = vector.broadcast %5 : vector<1x128xf32> to vector<512x128xf32>
    %7 = arith.addf %4, %6 : vector<512x128xf32>
    %cst = arith.constant 0.000000e+00 : f32
    %8 = vector.broadcast %cst : f32 to vector<512x128xf32>
    %9 = arith.maximumf %7, %8 : vector<512x128xf32>
    %10 = arith.truncf %9 : vector<512x128xf32> to vector<512x128xbf16>
    %c0_5 = arith.constant 0 : index
    %c0_6 = arith.constant 0 : index
    %11 = vector.load %arg4[%c0_5, %c0_6] : memref<512x128xbf16, #tpu.memory_space<vmem>>, vector<512x128xbf16>
    tpu.vector_store %arg4[%c0_5, %c0_6], %10 {strides = array<i32>} : memref<512x128xbf16, #tpu.memory_space<vmem>>, vector<512x128xbf16>,
    return
  }
  func.func @transform_0(%arg0: i32) -> (i32, i32) {
    %c0_i32 = arith.constant 0 : i32
    %c0_i32_0 = arith.constant 0 : i32
    return %arg0, %c0_i32 : i32, i32
  }
  func.func @transform_1(%arg0: i32) -> (i32, i32) {
    %c0_i32 = arith.constant 0 : i32
    %c0_i32_0 = arith.constant 0 : i32
    %c0_i32_1 = arith.constant 0 : i32
    return %c0_i32, %c0_i32_0 : i32, i32
  }
  func.func @transform_2(%arg0: i32) -> (i32, i32) {
    %c0_i32 = arith.constant 0 : i32
    %c0_i32_0 = arith.constant 0 : i32
    %c0_i32_1 = arith.constant 0 : i32
    return %c0_i32, %c0_i32_0 : i32, i32
  }
  func.func @transform_3(%arg0: i32) -> (i32, i32) {
    %c0_i32 = arith.constant 0 : i32
    %c0_i32_0 = arith.constant 0 : i32
    return %arg0, %c0_i32 : i32, i32
  }
}

module attributes {stable_mosaic.version = 11 : i64} {
  func.func @kernel(%arg0: i32, %arg1: i32, %arg2: memref<1x1x17x18x128xbf16, #tpu.memory_space<vmem>>, %arg3: memref<3x384x128xbf16, #tpu.memory_space<vmem>>, %arg4: memref<1x1x64x128xbf16, #tpu.memory_space<vmem>>, %arg5: memref<1x1x2x128xf32, #tpu.memory_space<vmem>>) attributes {dimension_semantics = [#tpu.dimension_semantics<parallel>, #tpu.dimension_semantics<parallel>], iteration_bounds = array<i64: 2, 1>, scalar_prefetch = 0 : i64, scratch_operands = 0 : i64, tpu.core_type = #tpu.core_type<tc>, window_params = [{transform_indices = @transform_0, window_bounds = array<i64: 1, 1, 17, 18, 128>}, {pipeline_mode = #tpu.pipeline_mode<synchronous>, transform_indices = @transform_1, window_bounds = array<i64: 3, 384, 128>}, {transform_indices = @transform_2, window_bounds = array<i64: 1, 1, 64, 128>}, {transform_indices = @transform_3, window_bounds = array<i64: 1, 1, 2, 128>}]} {
    %c0 = arith.constant 0 : index
    %c0_0 = arith.constant 0 : index
    %c0_1 = arith.constant 0 : index
    %c0_2 = arith.constant 0 : index
    %c0_3 = arith.constant 0 : index
    %0 = vector.load %arg2[%c0, %c0_0, %c0_1, %c0_2, %c0_3] : memref<1x1x17x18x128xbf16, #tpu.memory_space<vmem>>, vector<1x1x17x18x128xbf16>
    %1 = vector.shape_cast %0 : vector<1x1x17x18x128xbf16> to vector<17x18x128xbf16>
    %c0_4 = arith.constant 0 : index
    %c0_5 = arith.constant 0 : index
    %c0_6 = arith.constant 0 : index
    %2 = vector.load %arg3[%c0_4, %c0_5, %c0_6] : memref<3x384x128xbf16, #tpu.memory_space<vmem>>, vector<3x384x128xbf16>
    %3 = vector.extract_strided_slice %1 {offsets = [0, 0, 0], sizes = [8, 8, 128], strides = [1, 1, 1]} : vector<17x18x128xbf16> to vector<8x8x128xbf16>
    %4 = vector.shape_cast %3 : vector<8x8x128xbf16> to vector<64x128xbf16>
    %5 = vector.extract_strided_slice %1 {offsets = [0, 9, 0], sizes = [8, 8, 128], strides = [1, 1, 1]} : vector<17x18x128xbf16> to vector<8x8x128xbf16>
    %6 = vector.shape_cast %5 : vector<8x8x128xbf16> to vector<64x128xbf16>
    %7 = vector.extract_strided_slice %1 {offsets = [0, 1, 0], sizes = [8, 8, 128], strides = [1, 1, 1]} : vector<17x18x128xbf16> to vector<8x8x128xbf16>
    %8 = vector.shape_cast %7 : vector<8x8x128xbf16> to vector<64x128xbf16>
    %9 = tpu.concatenate %4, %6, %8 in 1 : vector<64x128xbf16>, vector<64x128xbf16>, vector<64x128xbf16> -> vector<64x384xbf16>
    %10 = vector.extract_strided_slice %2 {offsets = [0, 0, 0], sizes = [1, 384, 128], strides = [1, 1, 1]} : vector<3x384x128xbf16> to vector<1x384x128xbf16>
    %11 = vector.shape_cast %10 : vector<1x384x128xbf16> to vector<384x128xbf16>
    %cst = arith.constant dense<0.000000e+00> : vector<64x128xf32>
    %12 = tpu.matmul %9, %11, %cst {dimension_numbers = #tpu.dot_dimension_numbers<[1], [0], [0], [1], [0, 0, 1, 1], [], []>} : vector<64x384xbf16>, vector<384x128xbf16>, vector<64x128xf32> -> vector<64x128xf32>
    %13 = vector.extract_strided_slice %1 {offsets = [9, 0, 0], sizes = [8, 8, 128], strides = [1, 1, 1]} : vector<17x18x128xbf16> to vector<8x8x128xbf16>
    %14 = vector.shape_cast %13 : vector<8x8x128xbf16> to vector<64x128xbf16>
    %15 = vector.extract_strided_slice %1 {offsets = [9, 9, 0], sizes = [8, 8, 128], strides = [1, 1, 1]} : vector<17x18x128xbf16> to vector<8x8x128xbf16>
    %16 = vector.shape_cast %15 : vector<8x8x128xbf16> to vector<64x128xbf16>
    %17 = vector.extract_strided_slice %1 {offsets = [9, 1, 0], sizes = [8, 8, 128], strides = [1, 1, 1]} : vector<17x18x128xbf16> to vector<8x8x128xbf16>
    %18 = vector.shape_cast %17 : vector<8x8x128xbf16> to vector<64x128xbf16>
    %19 = tpu.concatenate %14, %16, %18 in 1 : vector<64x128xbf16>, vector<64x128xbf16>, vector<64x128xbf16> -> vector<64x384xbf16>
    %20 = vector.extract_strided_slice %2 {offsets = [1, 0, 0], sizes = [1, 384, 128], strides = [1, 1, 1]} : vector<3x384x128xbf16> to vector<1x384x128xbf16>
    %21 = vector.shape_cast %20 : vector<1x384x128xbf16> to vector<384x128xbf16>
    %cst_7 = arith.constant dense<0.000000e+00> : vector<64x128xf32>
    %22 = tpu.matmul %19, %21, %cst_7 {dimension_numbers = #tpu.dot_dimension_numbers<[1], [0], [0], [1], [0, 0, 1, 1], [], []>} : vector<64x384xbf16>, vector<384x128xbf16>, vector<64x128xf32> -> vector<64x128xf32>
    %23 = arith.addf %12, %22 : vector<64x128xf32>
    %24 = vector.extract_strided_slice %1 {offsets = [1, 0, 0], sizes = [8, 8, 128], strides = [1, 1, 1]} : vector<17x18x128xbf16> to vector<8x8x128xbf16>
    %25 = vector.shape_cast %24 : vector<8x8x128xbf16> to vector<64x128xbf16>
    %26 = vector.extract_strided_slice %1 {offsets = [1, 9, 0], sizes = [8, 8, 128], strides = [1, 1, 1]} : vector<17x18x128xbf16> to vector<8x8x128xbf16>
    %27 = vector.shape_cast %26 : vector<8x8x128xbf16> to vector<64x128xbf16>
    %28 = vector.extract_strided_slice %1 {offsets = [1, 1, 0], sizes = [8, 8, 128], strides = [1, 1, 1]} : vector<17x18x128xbf16> to vector<8x8x128xbf16>
    %29 = vector.shape_cast %28 : vector<8x8x128xbf16> to vector<64x128xbf16>
    %30 = tpu.concatenate %25, %27, %29 in 1 : vector<64x128xbf16>, vector<64x128xbf16>, vector<64x128xbf16> -> vector<64x384xbf16>
    %31 = vector.extract_strided_slice %2 {offsets = [2, 0, 0], sizes = [1, 384, 128], strides = [1, 1, 1]} : vector<3x384x128xbf16> to vector<1x384x128xbf16>
    %32 = vector.shape_cast %31 : vector<1x384x128xbf16> to vector<384x128xbf16>
    %cst_8 = arith.constant dense<0.000000e+00> : vector<64x128xf32>
    %33 = tpu.matmul %30, %32, %cst_8 {dimension_numbers = #tpu.dot_dimension_numbers<[1], [0], [0], [1], [0, 0, 1, 1], [], []>} : vector<64x384xbf16>, vector<384x128xbf16>, vector<64x128xf32> -> vector<64x128xf32>
    %34 = arith.addf %23, %33 : vector<64x128xf32>
    %35 = vector.shape_cast %34 : vector<64x128xf32> to vector<1x1x64x128xf32>
    %36 = arith.truncf %35 : vector<1x1x64x128xf32> to vector<1x1x64x128xbf16>
    %c0_9 = arith.constant 0 : index
    %c0_10 = arith.constant 0 : index
    %c0_11 = arith.constant 0 : index
    %c0_12 = arith.constant 0 : index
    %37 = vector.load %arg4[%c0_9, %c0_10, %c0_11, %c0_12] : memref<1x1x64x128xbf16, #tpu.memory_space<vmem>>, vector<1x1x64x128xbf16>
    tpu.vector_store %arg4[%c0_9, %c0_10, %c0_11, %c0_12], %36 {strides = array<i32>} : memref<1x1x64x128xbf16, #tpu.memory_space<vmem>>, vector<1x1x64x128xbf16>,
    %cst_13 = arith.constant dense<0.000000e+00> : vector<128xf32>
    %38 = vector.multi_reduction <add>, %34, %cst_13 [0] : vector<64x128xf32> to vector<128xf32>
    %39 = vector.shape_cast %38 : vector<128xf32> to vector<1x128xf32>
    %40 = arith.mulf %34, %34 : vector<64x128xf32>
    %cst_14 = arith.constant dense<0.000000e+00> : vector<128xf32>
    %41 = vector.multi_reduction <add>, %40, %cst_14 [0] : vector<64x128xf32> to vector<128xf32>
    %42 = vector.shape_cast %41 : vector<128xf32> to vector<1x128xf32>
    %43 = tpu.concatenate %39, %42 in 0 : vector<1x128xf32>, vector<1x128xf32> -> vector<2x128xf32>
    %44 = vector.shape_cast %43 : vector<2x128xf32> to vector<1x1x2x128xf32>
    %c0_15 = arith.constant 0 : index
    %c0_16 = arith.constant 0 : index
    %c0_17 = arith.constant 0 : index
    %c0_18 = arith.constant 0 : index
    %45 = vector.load %arg5[%c0_15, %c0_16, %c0_17, %c0_18] : memref<1x1x2x128xf32, #tpu.memory_space<vmem>>, vector<1x1x2x128xf32>
    tpu.vector_store %arg5[%c0_15, %c0_16, %c0_17, %c0_18], %44 {strides = array<i32>} : memref<1x1x2x128xf32, #tpu.memory_space<vmem>>, vector<1x1x2x128xf32>,
    return
  }
  func.func @transform_0(%arg0: i32, %arg1: i32) -> (i32, i32, i32, i32, i32) {
    %c0_i32 = arith.constant 0 : i32
    %c0_i32_0 = arith.constant 0 : i32
    %c0_i32_1 = arith.constant 0 : i32
    %c0_i32_2 = arith.constant 0 : i32
    return %arg0, %arg1, %c0_i32, %c0_i32_0, %c0_i32_1 : i32, i32, i32, i32, i32
  }
  func.func @transform_1(%arg0: i32, %arg1: i32) -> (i32, i32, i32) {
    %c0_i32 = arith.constant 0 : i32
    %c0_i32_0 = arith.constant 0 : i32
    %c0_i32_1 = arith.constant 0 : i32
    %c0_i32_2 = arith.constant 0 : i32
    return %c0_i32, %c0_i32_0, %c0_i32_1 : i32, i32, i32
  }
  func.func @transform_2(%arg0: i32, %arg1: i32) -> (i32, i32, i32, i32) {
    %c0_i32 = arith.constant 0 : i32
    %c0_i32_0 = arith.constant 0 : i32
    %c0_i32_1 = arith.constant 0 : i32
    return %arg0, %arg1, %c0_i32, %c0_i32_0 : i32, i32, i32, i32
  }
  func.func @transform_3(%arg0: i32, %arg1: i32) -> (i32, i32, i32, i32) {
    %c0_i32 = arith.constant 0 : i32
    %c0_i32_0 = arith.constant 0 : i32
    %c0_i32_1 = arith.constant 0 : i32
    return %arg0, %arg1, %c0_i32, %c0_i32_0 : i32, i32, i32, i32
  }
}

module attributes {stable_mosaic.version = 11 : i64} {
  func.func @kernel(%arg0: i32, %arg1: memref<128x128xbf16, #tpu.memory_space<vmem>>, %arg2: memref<1x128xf32, #tpu.memory_space<vmem>>, %arg3: memref<1x128xf32, #tpu.memory_space<vmem>>, %arg4: memref<128x128xbf16, #tpu.memory_space<vmem>>, %arg5: memref<128x128xbf16, #tpu.memory_space<vmem>>, %arg6: memref<1x2x128xf32, #tpu.memory_space<vmem>>) attributes {dimension_semantics = [#tpu.dimension_semantics<parallel>], iteration_bounds = array<i64: 1>, scalar_prefetch = 0 : i64, scratch_operands = 0 : i64, tpu.core_type = #tpu.core_type<tc>, window_params = [{transform_indices = @transform_0, window_bounds = array<i64: 128, 128>}, {pipeline_mode = #tpu.pipeline_mode<synchronous>, transform_indices = @transform_1, window_bounds = array<i64: 1, 128>}, {pipeline_mode = #tpu.pipeline_mode<synchronous>, transform_indices = @transform_2, window_bounds = array<i64: 1, 128>}, {pipeline_mode = #tpu.pipeline_mode<synchronous>, transform_indices = @transform_3, window_bounds = array<i64: 128, 128>}, {transform_indices = @transform_4, window_bounds = array<i64: 128, 128>}, {transform_indices = @transform_5, window_bounds = array<i64: 1, 2, 128>}]} {
    %c0 = arith.constant 0 : index
    %c0_0 = arith.constant 0 : index
    %0 = vector.load %arg1[%c0, %c0_0] : memref<128x128xbf16, #tpu.memory_space<vmem>>, vector<128x128xbf16>
    %1 = arith.extf %0 : vector<128x128xbf16> to vector<128x128xf32>
    %c0_1 = arith.constant 0 : index
    %c0_2 = arith.constant 0 : index
    %2 = vector.load %arg2[%c0_1, %c0_2] : memref<1x128xf32, #tpu.memory_space<vmem>>, vector<1x128xf32>
    %3 = vector.broadcast %2 : vector<1x128xf32> to vector<128x128xf32>
    %4 = arith.mulf %1, %3 : vector<128x128xf32>
    %c0_3 = arith.constant 0 : index
    %c0_4 = arith.constant 0 : index
    %5 = vector.load %arg3[%c0_3, %c0_4] : memref<1x128xf32, #tpu.memory_space<vmem>>, vector<1x128xf32>
    %6 = vector.broadcast %5 : vector<1x128xf32> to vector<128x128xf32>
    %7 = arith.addf %4, %6 : vector<128x128xf32>
    %cst = arith.constant 0.000000e+00 : f32
    %8 = vector.broadcast %cst : f32 to vector<128x128xf32>
    %9 = arith.maximumf %7, %8 : vector<128x128xf32>
    %10 = arith.truncf %9 : vector<128x128xf32> to vector<128x128xbf16>
    %c0_5 = arith.constant 0 : index
    %c0_6 = arith.constant 0 : index
    %11 = vector.load %arg4[%c0_5, %c0_6] : memref<128x128xbf16, #tpu.memory_space<vmem>>, vector<128x128xbf16>
    %cst_7 = arith.constant dense<0.000000e+00> : vector<128x128xf32>
    %12 = tpu.matmul %10, %11, %cst_7 {dimension_numbers = #tpu.dot_dimension_numbers<[1], [0], [0], [1], [0, 0, 1, 1], [], []>} : vector<128x128xbf16>, vector<128x128xbf16>, vector<128x128xf32> -> vector<128x128xf32>
    %13 = arith.truncf %12 : vector<128x128xf32> to vector<128x128xbf16>
    %c0_8 = arith.constant 0 : index
    %c0_9 = arith.constant 0 : index
    %14 = vector.load %arg5[%c0_8, %c0_9] : memref<128x128xbf16, #tpu.memory_space<vmem>>, vector<128x128xbf16>
    tpu.vector_store %arg5[%c0_8, %c0_9], %13 {strides = array<i32>} : memref<128x128xbf16, #tpu.memory_space<vmem>>, vector<128x128xbf16>,
    %cst_10 = arith.constant dense<0.000000e+00> : vector<128xf32>
    %15 = vector.multi_reduction <add>, %12, %cst_10 [0] : vector<128x128xf32> to vector<128xf32>
    %16 = vector.shape_cast %15 : vector<128xf32> to vector<1x128xf32>
    %17 = arith.mulf %12, %12 : vector<128x128xf32>
    %cst_11 = arith.constant dense<0.000000e+00> : vector<128xf32>
    %18 = vector.multi_reduction <add>, %17, %cst_11 [0] : vector<128x128xf32> to vector<128xf32>
    %19 = vector.shape_cast %18 : vector<128xf32> to vector<1x128xf32>
    %20 = tpu.concatenate %16, %19 in 0 : vector<1x128xf32>, vector<1x128xf32> -> vector<2x128xf32>
    %21 = vector.shape_cast %20 : vector<2x128xf32> to vector<1x2x128xf32>
    %c0_12 = arith.constant 0 : index
    %c0_13 = arith.constant 0 : index
    %c0_14 = arith.constant 0 : index
    %22 = vector.load %arg6[%c0_12, %c0_13, %c0_14] : memref<1x2x128xf32, #tpu.memory_space<vmem>>, vector<1x2x128xf32>
    tpu.vector_store %arg6[%c0_12, %c0_13, %c0_14], %21 {strides = array<i32>} : memref<1x2x128xf32, #tpu.memory_space<vmem>>, vector<1x2x128xf32>,
    return
  }
  func.func @transform_0(%arg0: i32) -> (i32, i32) {
    %c0_i32 = arith.constant 0 : i32
    %c0_i32_0 = arith.constant 0 : i32
    return %arg0, %c0_i32 : i32, i32
  }
  func.func @transform_1(%arg0: i32) -> (i32, i32) {
    %c0_i32 = arith.constant 0 : i32
    %c0_i32_0 = arith.constant 0 : i32
    %c0_i32_1 = arith.constant 0 : i32
    return %c0_i32, %c0_i32_0 : i32, i32
  }
  func.func @transform_2(%arg0: i32) -> (i32, i32) {
    %c0_i32 = arith.constant 0 : i32
    %c0_i32_0 = arith.constant 0 : i32
    %c0_i32_1 = arith.constant 0 : i32
    return %c0_i32, %c0_i32_0 : i32, i32
  }
  func.func @transform_3(%arg0: i32) -> (i32, i32) {
    %c0_i32 = arith.constant 0 : i32
    %c0_i32_0 = arith.constant 0 : i32
    %c0_i32_1 = arith.constant 0 : i32
    return %c0_i32, %c0_i32_0 : i32, i32
  }
  func.func @transform_4(%arg0: i32) -> (i32, i32) {
    %c0_i32 = arith.constant 0 : i32
    %c0_i32_0 = arith.constant 0 : i32
    return %arg0, %c0_i32 : i32, i32
  }
  func.func @transform_5(%arg0: i32) -> (i32, i32, i32) {
    %c0_i32 = arith.constant 0 : i32
    %c0_i32_0 = arith.constant 0 : i32
    %c0_i32_1 = arith.constant 0 : i32
    return %arg0, %c0_i32, %c0_i32_0 : i32, i32, i32
  }
}

module attributes {stable_mosaic.version = 11 : i64} {
  func.func @_mm_stats_kernel(%arg0: i32, %arg1: memref<128x128xbf16, #tpu.memory_space<vmem>>, %arg2: memref<128x128xbf16, #tpu.memory_space<vmem>>, %arg3: memref<128x128xbf16, #tpu.memory_space<vmem>>, %arg4: memref<1x2x128xf32, #tpu.memory_space<vmem>>) attributes {dimension_semantics = [#tpu.dimension_semantics<parallel>], iteration_bounds = array<i64: 1>, scalar_prefetch = 0 : i64, scratch_operands = 0 : i64, tpu.core_type = #tpu.core_type<tc>, window_params = [{transform_indices = @transform_0, window_bounds = array<i64: 128, 128>}, {pipeline_mode = #tpu.pipeline_mode<synchronous>, transform_indices = @transform_1, window_bounds = array<i64: 128, 128>}, {transform_indices = @transform_2, window_bounds = array<i64: 128, 128>}, {transform_indices = @transform_3, window_bounds = array<i64: 1, 2, 128>}]} {
    %c0 = arith.constant 0 : index
    %c0_0 = arith.constant 0 : index
    %0 = vector.load %arg1[%c0, %c0_0] : memref<128x128xbf16, #tpu.memory_space<vmem>>, vector<128x128xbf16>
    %c0_1 = arith.constant 0 : index
    %c0_2 = arith.constant 0 : index
    %1 = vector.load %arg2[%c0_1, %c0_2] : memref<128x128xbf16, #tpu.memory_space<vmem>>, vector<128x128xbf16>
    %cst = arith.constant dense<0.000000e+00> : vector<128x128xf32>
    %2 = tpu.matmul %0, %1, %cst {dimension_numbers = #tpu.dot_dimension_numbers<[1], [0], [0], [1], [0, 0, 1, 1], [], []>} : vector<128x128xbf16>, vector<128x128xbf16>, vector<128x128xf32> -> vector<128x128xf32>
    %3 = arith.truncf %2 : vector<128x128xf32> to vector<128x128xbf16>
    %c0_3 = arith.constant 0 : index
    %c0_4 = arith.constant 0 : index
    %4 = vector.load %arg3[%c0_3, %c0_4] : memref<128x128xbf16, #tpu.memory_space<vmem>>, vector<128x128xbf16>
    tpu.vector_store %arg3[%c0_3, %c0_4], %3 {strides = array<i32>} : memref<128x128xbf16, #tpu.memory_space<vmem>>, vector<128x128xbf16>,
    %cst_5 = arith.constant dense<0.000000e+00> : vector<128xf32>
    %5 = vector.multi_reduction <add>, %2, %cst_5 [0] : vector<128x128xf32> to vector<128xf32>
    %6 = vector.shape_cast %5 : vector<128xf32> to vector<1x128xf32>
    %7 = arith.mulf %2, %2 : vector<128x128xf32>
    %cst_6 = arith.constant dense<0.000000e+00> : vector<128xf32>
    %8 = vector.multi_reduction <add>, %7, %cst_6 [0] : vector<128x128xf32> to vector<128xf32>
    %9 = vector.shape_cast %8 : vector<128xf32> to vector<1x128xf32>
    %10 = tpu.concatenate %6, %9 in 0 : vector<1x128xf32>, vector<1x128xf32> -> vector<2x128xf32>
    %11 = vector.shape_cast %10 : vector<2x128xf32> to vector<1x2x128xf32>
    %c0_7 = arith.constant 0 : index
    %c0_8 = arith.constant 0 : index
    %c0_9 = arith.constant 0 : index
    %12 = vector.load %arg4[%c0_7, %c0_8, %c0_9] : memref<1x2x128xf32, #tpu.memory_space<vmem>>, vector<1x2x128xf32>
    tpu.vector_store %arg4[%c0_7, %c0_8, %c0_9], %11 {strides = array<i32>} : memref<1x2x128xf32, #tpu.memory_space<vmem>>, vector<1x2x128xf32>,
    return
  }
  func.func @transform_0(%arg0: i32) -> (i32, i32) {
    %c0_i32 = arith.constant 0 : i32
    %c0_i32_0 = arith.constant 0 : i32
    return %arg0, %c0_i32 : i32, i32
  }
  func.func @transform_1(%arg0: i32) -> (i32, i32) {
    %c0_i32 = arith.constant 0 : i32
    %c0_i32_0 = arith.constant 0 : i32
    %c0_i32_1 = arith.constant 0 : i32
    return %c0_i32, %c0_i32_0 : i32, i32
  }
  func.func @transform_2(%arg0: i32) -> (i32, i32) {
    %c0_i32 = arith.constant 0 : i32
    %c0_i32_0 = arith.constant 0 : i32
    return %arg0, %c0_i32 : i32, i32
  }
  func.func @transform_3(%arg0: i32) -> (i32, i32, i32) {
    %c0_i32 = arith.constant 0 : i32
    %c0_i32_0 = arith.constant 0 : i32
    %c0_i32_1 = arith.constant 0 : i32
    return %arg0, %c0_i32, %c0_i32_0 : i32, i32, i32
  }
}

module attributes {stable_mosaic.version = 11 : i64} {
  func.func @_final_conv_shortcut_kernel(%arg0: i32, %arg1: memref<128x128xbf16, #tpu.memory_space<vmem>>, %arg2: memref<128x128xbf16, #tpu.memory_space<vmem>>, %arg3: memref<1x128xf32, #tpu.memory_space<vmem>>, %arg4: memref<1x128xf32, #tpu.memory_space<vmem>>, %arg5: memref<1x128xf32, #tpu.memory_space<vmem>>, %arg6: memref<1x128xf32, #tpu.memory_space<vmem>>, %arg7: memref<128x128xf32, #tpu.memory_space<vmem>>) attributes {dimension_semantics = [#tpu.dimension_semantics<parallel>], iteration_bounds = array<i64: 1>, scalar_prefetch = 0 : i64, scratch_operands = 0 : i64, tpu.core_type = #tpu.core_type<tc>, window_params = [{transform_indices = @transform_0, window_bounds = array<i64: 128, 128>}, {transform_indices = @transform_1, window_bounds = array<i64: 128, 128>}, {pipeline_mode = #tpu.pipeline_mode<synchronous>, transform_indices = @transform_2, window_bounds = array<i64: 1, 128>}, {pipeline_mode = #tpu.pipeline_mode<synchronous>, transform_indices = @transform_3, window_bounds = array<i64: 1, 128>}, {pipeline_mode = #tpu.pipeline_mode<synchronous>, transform_indices = @transform_4, window_bounds = array<i64: 1, 128>}, {pipeline_mode = #tpu.pipeline_mode<synchronous>, transform_indices = @transform_5, window_bounds = array<i64: 1, 128>}, {transform_indices = @transform_6, window_bounds = array<i64: 128, 128>}]} {
    %c0 = arith.constant 0 : index
    %c0_0 = arith.constant 0 : index
    %0 = vector.load %arg1[%c0, %c0_0] : memref<128x128xbf16, #tpu.memory_space<vmem>>, vector<128x128xbf16>
    %1 = arith.extf %0 : vector<128x128xbf16> to vector<128x128xf32>
    %c0_1 = arith.constant 0 : index
    %c0_2 = arith.constant 0 : index
    %2 = vector.load %arg3[%c0_1, %c0_2] : memref<1x128xf32, #tpu.memory_space<vmem>>, vector<1x128xf32>
    %3 = vector.broadcast %2 : vector<1x128xf32> to vector<128x128xf32>
    %4 = arith.mulf %1, %3 : vector<128x128xf32>
    %c0_3 = arith.constant 0 : index
    %c0_4 = arith.constant 0 : index
    %5 = vector.load %arg4[%c0_3, %c0_4] : memref<1x128xf32, #tpu.memory_space<vmem>>, vector<1x128xf32>
    %6 = vector.broadcast %5 : vector<1x128xf32> to vector<128x128xf32>
    %7 = arith.addf %4, %6 : vector<128x128xf32>
    %c0_5 = arith.constant 0 : index
    %c0_6 = arith.constant 0 : index
    %8 = vector.load %arg2[%c0_5, %c0_6] : memref<128x128xbf16, #tpu.memory_space<vmem>>, vector<128x128xbf16>
    %9 = arith.extf %8 : vector<128x128xbf16> to vector<128x128xf32>
    %c0_7 = arith.constant 0 : index
    %c0_8 = arith.constant 0 : index
    %10 = vector.load %arg5[%c0_7, %c0_8] : memref<1x128xf32, #tpu.memory_space<vmem>>, vector<1x128xf32>
    %11 = vector.broadcast %10 : vector<1x128xf32> to vector<128x128xf32>
    %12 = arith.mulf %9, %11 : vector<128x128xf32>
    %13 = arith.addf %7, %12 : vector<128x128xf32>
    %c0_9 = arith.constant 0 : index
    %c0_10 = arith.constant 0 : index
    %14 = vector.load %arg6[%c0_9, %c0_10] : memref<1x128xf32, #tpu.memory_space<vmem>>, vector<1x128xf32>
    %15 = vector.broadcast %14 : vector<1x128xf32> to vector<128x128xf32>
    %16 = arith.addf %13, %15 : vector<128x128xf32>
    %cst = arith.constant 0.000000e+00 : f32
    %17 = vector.broadcast %cst : f32 to vector<128x128xf32>
    %18 = arith.maximumf %16, %17 : vector<128x128xf32>
    %c0_11 = arith.constant 0 : index
    %c0_12 = arith.constant 0 : index
    %19 = vector.load %arg7[%c0_11, %c0_12] : memref<128x128xf32, #tpu.memory_space<vmem>>, vector<128x128xf32>
    tpu.vector_store %arg7[%c0_11, %c0_12], %18 {strides = array<i32>} : memref<128x128xf32, #tpu.memory_space<vmem>>, vector<128x128xf32>,
    return
  }
  func.func @transform_0(%arg0: i32) -> (i32, i32) {
    %c0_i32 = arith.constant 0 : i32
    %c0_i32_0 = arith.constant 0 : i32
    return %arg0, %c0_i32 : i32, i32
  }
  func.func @transform_1(%arg0: i32) -> (i32, i32) {
    %c0_i32 = arith.constant 0 : i32
    %c0_i32_0 = arith.constant 0 : i32
    return %arg0, %c0_i32 : i32, i32
  }
  func.func @transform_2(%arg0: i32) -> (i32, i32) {
    %c0_i32 = arith.constant 0 : i32
    %c0_i32_0 = arith.constant 0 : i32
    %c0_i32_1 = arith.constant 0 : i32
    return %c0_i32, %c0_i32_0 : i32, i32
  }
  func.func @transform_3(%arg0: i32) -> (i32, i32) {
    %c0_i32 = arith.constant 0 : i32
    %c0_i32_0 = arith.constant 0 : i32
    %c0_i32_1 = arith.constant 0 : i32
    return %c0_i32, %c0_i32_0 : i32, i32
  }
  func.func @transform_4(%arg0: i32) -> (i32, i32) {
    %c0_i32 = arith.constant 0 : i32
    %c0_i32_0 = arith.constant 0 : i32
    %c0_i32_1 = arith.constant 0 : i32
    return %c0_i32, %c0_i32_0 : i32, i32
  }
  func.func @transform_5(%arg0: i32) -> (i32, i32) {
    %c0_i32 = arith.constant 0 : i32
    %c0_i32_0 = arith.constant 0 : i32
    %c0_i32_1 = arith.constant 0 : i32
    return %c0_i32, %c0_i32_0 : i32, i32
  }
  func.func @transform_6(%arg0: i32) -> (i32, i32) {
    %c0_i32 = arith.constant 0 : i32
    %c0_i32_0 = arith.constant 0 : i32
    return %arg0, %c0_i32 : i32, i32
  }
}

</mosaic_0001>

<bundles_post_ra>
// kernel: residual_bottleneck_blk.6
= control target key start
LH: loop header
LB: loop body
LE: loop exit
PB: predicated region body
PF: predicated region fallthrough
CT: control target
= control target key end

     0   :  { %vm1145_vm0 = vcmask 1040384   ;;  %s2122_s1 = inlined_call_operand.vmem [shape: bf16[128,128], index: 1, kind: input, shape index: {}]   ;;  %s2123_s0 = inlined_call_operand.vmem [shape: bf16[512,128], index: 0, kind: input, shape index: {}]   ;;  %s2124_s2 = inlined_call_operand.vmem [shape: bf16[512,128], index: 2, kind: output, shape index: {0}]   ;;  %s2125_s3 = inlined_call_operand.vmem [shape: f32[1,2,128], index: 3, kind: output, shape index: {1}]  }
   0x1   :  { %v1651_v0 = vld [vmem:[%s2122_s1] sm:$0xff]   ;;  %v1652_v1 = vld [vmem:[%s2122_s1 + $0x8] sm:$0xff]   ;;  %v1653_v2 = vld [vmem:[%s2122_s1 + $0x10] sm:$0xff]  }
   0x2   :  { %1555 = vmatprep.subr.bf16.mxu0 %v1651_v0  ;;  %1635 = vmatprep.subr.bf16.mxu1 %v1651_v0  ;;  %v1654_v3 = vld [vmem:[%s2122_s1 + $0x18] sm:$0xff]   ;;  %v1659_v4 = vld [vmem:[%s2123_s0] sm:$0xff]   ;;  %v1656_v6 = vld [vmem:[%s2122_s1 + $0x28] sm:$0xff]  }
   0x3   :  { %1556 = vmatpush3.bf16.msra.mxu0 %v1651_v0  ;;  %1643 = vmatpush3.bf16.msra.mxu1 %v1651_v0  ;;  %v1655_v5 = vld [vmem:[%s2122_s1 + $0x20] sm:$0xff]   ;;  %v1657_v7 = vld [vmem:[%s2122_s1 + $0x30] sm:$0xff]   ;;  %v1658_v8 = vld [vmem:[%s2122_s1 + $0x38] sm:$0xff]  }
   0x4   :  { %1557 = vmatprep.subr.bf16.mxu0 %v1652_v1  ;;  %1636 = vmatprep.subr.bf16.mxu1 %v1652_v1  ;;  %v1675_v9 = vld [vmem:[%s2123_s0 + $0x80] sm:$0xff]   ;;  %v1660_v10 = vld [vmem:[%s2123_s0 + $0x8] sm:$0xff]   ;;  %v1661_v11 = vld [vmem:[%s2123_s0 + $0x10] sm:$0xff]  }
   0x5   :  { %1571 = vmatprep.mubr.bf16.mxu0 %v1659_v4  ;;  %1603 = vmatprep.mubr.bf16.mxu1 %v1675_v9  ;;  %v1676_v12 = vld [vmem:[%s2123_s0 + $0x88] sm:$0xff]   ;;  %v1677_v13 = vld [vmem:[%s2123_s0 + $0x90] sm:$0xff]   ;;  %v1662_v14 = vld [vmem:[%s2123_s0 + $0x18] sm:$0xff]  }
   0x6   :  { %v1663_v15 = vld [vmem:[%s2123_s0 + $0x20] sm:$0xff]   ;;  %v1678_v16 = vld [vmem:[%s2123_s0 + $0x98] sm:$0xff]   ;;  %v1664_v18 = vld [vmem:[%s2123_s0 + $0x28] sm:$0xff]  }
   0x7   :  { %1558 = vmatpush3.bf16.msra.mxu0 %v1652_v1  ;;  %1644 = vmatpush3.bf16.msra.mxu1 %v1652_v1  ;;  %v1679_v17 = vld [vmem:[%s2123_s0 + $0xa0] sm:$0xff]   ;;  %v1680_v19 = vld [vmem:[%s2123_s0 + $0xa8] sm:$0xff]   ;;  %v1665_v20 = vld [vmem:[%s2123_s0 + $0x30] sm:$0xff]  }
   0x8   :  { %1559 = vmatprep.subr.bf16.mxu0 %v1653_v2  ;;  %1637 = vmatprep.subr.bf16.mxu1 %v1653_v2  ;;  %v1681_v21 = vld [vmem:[%s2123_s0 + $0xb0] sm:$0xff]   ;;  %v1666_v22 = vld [vmem:[%s2123_s0 + $0x38] sm:$0xff]   ;;  %v1667_v24 = vld [vmem:[%s2123_s0 + $0x40] sm:$0xff]  }
   0x9   :  { %v1682_v23 = vld [vmem:[%s2123_s0 + $0xb8] sm:$0xff]   ;;  %v1683_v25 = vld [vmem:[%s2123_s0 + $0xc0] sm:$0xff]   ;;  %v1668_v26 = vld [vmem:[%s2123_s0 + $0x48] sm:$0xff]  }
   0xa   :  { %v1684_v27 = vld [vmem:[%s2123_s0 + $0xc8] sm:$0xff]   ;;  %v1669_v28 = vld [vmem:[%s2123_s0 + $0x50] sm:$0xff]   ;;  %v1670_v30 = vld [vmem:[%s2123_s0 + $0x58] sm:$0xff]  }
   0xb   :  { %1560 = vmatpush3.bf16.msra.mxu0 %v1653_v2  ;;  %1645 = vmatpush3.bf16.msra.mxu1 %v1653_v2  ;;  %v1685_v29 = vld [vmem:[%s2123_s0 + $0xd0] sm:$0xff]   ;;  %v1686_v31 = vld [vmem:[%s2123_s0 + $0xd8] sm:$0xff]   ;;  %v1671_v32 = vld [vmem:[%s2123_s0 + $0x60] sm:$0xff]  }
   0xc   :  { %1561 = vmatprep.subr.bf16.mxu0 %v1654_v3  ;;  %1638 = vmatprep.subr.bf16.mxu1 %v1654_v3  ;;  %v1687_v33 = vld [vmem:[%s2123_s0 + $0xe0] sm:$0xff]   ;;  %v1672_v34 = vld [vmem:[%s2123_s0 + $0x68] sm:$0xff]   ;;  %v1673_v36 = vld [vmem:[%s2123_s0 + $0x70] sm:$0xff]  }
   0xd   :  { %v1688_v35 = vld [vmem:[%s2123_s0 + $0xe8] sm:$0xff]   ;;  %v1689_v37 = vld [vmem:[%s2123_s0 + $0xf0] sm:$0xff]   ;;  %v1674_v38 = vld [vmem:[%s2123_s0 + $0x78] sm:$0xff]  }
   0xe   :  { %v1690_v39 = vld [vmem:[%s2123_s0 + $0xf8] sm:$0xff]  }
   0xf   :  { %1562 = vmatpush3.bf16.msra.mxu0 %v1654_v3  ;;  %1646 = vmatpush3.bf16.msra.mxu1 %v1654_v3 }
  0x10   :  { %1563 = vmatprep.subr.bf16.mxu0 %v1655_v5  ;;  %1639 = vmatprep.subr.bf16.mxu1 %v1655_v5 }
  0x13   :  { %1564 = vmatpush3.bf16.msra.mxu0 %v1655_v5  ;;  %1647 = vmatpush3.bf16.msra.mxu1 %v1655_v5 }
  0x14   :  { %1565 = vmatprep.subr.bf16.mxu0 %v1656_v6  ;;  %1640 = vmatprep.subr.bf16.mxu1 %v1656_v6 }
  0x17   :  { %1566 = vmatpush3.bf16.msra.mxu0 %v1656_v6  ;;  %1648 = vmatpush3.bf16.msra.mxu1 %v1656_v6 }
  0x18   :  { %1567 = vmatprep.subr.bf16.mxu0 %v1657_v7  ;;  %1641 = vmatprep.subr.bf16.mxu1 %v1657_v7 }
  0x1b   :  { %1568 = vmatpush3.bf16.msra.mxu0 %v1657_v7  ;;  %1649 = vmatpush3.bf16.msra.mxu1 %v1657_v7 }
  0x1c   :  { %1569 = vmatprep.subr.bf16.mxu0 %v1658_v8  ;;  %1642 = vmatprep.subr.bf16.mxu1 %v1658_v8 }
  0x1f   :  { %1570 = vmatpush3.bf16.msra.mxu0 %v1658_v8  ;;  %1650 = vmatpush3.bf16.msra.mxu1 %v1658_v8 }
  0x22   :  { %1572 = vmatmul.mubr.bf16.vlgmr.msra.gmra.mrb[0].mxu0 %v1660_v10  ;;  %1604 = vmatmul.mubr.bf16.vlgmr.msra.gmra.mrb[0].mxu1 %v1676_v12 }
  0x23   :  { %1575 = vmatprep.mubr.bf16.mxu0 %v1661_v11  ;;  %1607 = vmatprep.mubr.bf16.mxu1 %v1677_v13 }
  0x2a   :  { %1576 = vmatmul.mubr.bf16.gmra.mrb[4].mxu0 %v1662_v14  ;;  %1608 = vmatmul.mubr.bf16.gmra.mrb[4].mxu1 %v1678_v16 }
  0x2b   :  { %1579 = vmatprep.mubr.bf16.mxu0 %v1663_v15  ;;  %1611 = vmatprep.mubr.bf16.mxu1 %v1679_v17 }
  0x32   :  { %1580 = vmatmul.mubr.bf16.gmra.mrb[8].mxu0 %v1664_v18  ;;  %1612 = vmatmul.mubr.bf16.gmra.mrb[8].mxu1 %v1680_v19 }
  0x33   :  { %1583 = vmatprep.mubr.bf16.mxu0 %v1665_v20  ;;  %1615 = vmatprep.mubr.bf16.mxu1 %v1681_v21 }
  0x3a   :  { %1584 = vmatmul.mubr.bf16.gmra.mrb[12].mxu0 %v1666_v22  ;;  %1616 = vmatmul.mubr.bf16.gmra.mrb[12].mxu1 %v1682_v23 }
  0x3b   :  { %1587 = vmatprep.mubr.bf16.mxu0 %v1667_v24  ;;  %1619 = vmatprep.mubr.bf16.mxu1 %v1683_v25 }
  0x42   :  { %1588 = vmatmul.mubr.bf16.gmra.mrb[16].mxu0 %v1668_v26  ;;  %1620 = vmatmul.mubr.bf16.gmra.mrb[16].mxu1 %v1684_v27 }
  0x43   :  { %1591 = vmatprep.mubr.bf16.mxu0 %v1669_v28  ;;  %1623 = vmatprep.mubr.bf16.mxu1 %v1685_v29 }
  0x4a   :  { %1592 = vmatmul.mubr.bf16.gmra.mrb[20].mxu0 %v1670_v30  ;;  %1624 = vmatmul.mubr.bf16.gmra.mrb[20].mxu1 %v1686_v31 }
  0x4b   :  { %1595 = vmatprep.mubr.bf16.mxu0 %v1671_v32  ;;  %1627 = vmatprep.mubr.bf16.mxu1 %v1687_v33 }
  0x52   :  { %1596 = vmatmul.mubr.bf16.gmra.mrb[24].mxu0 %v1672_v34  ;;  %1628 = vmatmul.mubr.bf16.gmra.mrb[24].mxu1 %v1688_v35 }
  0x53   :  { %1599 = vmatprep.mubr.bf16.mxu0 %v1673_v36  ;;  %1631 = vmatprep.mubr.bf16.mxu1 %v1689_v37 }
  0x5a   :  { %1600 = vmatmul.mubr.bf16.gmra.mrb[28].mxu0 %v1674_v38  ;;  %1632 = vmatmul.mubr.bf16.gmra.mrb[28].mxu1 %v1690_v39 }
  0xf5   :  { %v1573_v40 = vpop.f32.mrb[0].mxu0  ;;  %v1831_v41 = vpop.f32.mrb[0].mxu1 }
  0xf6   :  { %v368_v42 = vpop.f32.mrb[1].mxu0  ;;  %v1833_v43 = vpop.f32.mrb[1].mxu1  ;;  %v1014_v55 = vmul.f32 %v1573_v40, %v1573_v40 }
  0xf7   :  { %v1574_v44 = vpop.f32.mrb[2].mxu0  ;;  %v1835_v45 = vpop.f32.mrb[2].mxu1  ;;  %v1012_v46 = vmul.f32 %v368_v42, %v368_v42 }
  0xf8   :  { %v1332_v47 = vpack.c.bf16 %v1574_v44, %v1573_v40  ;;  %v371_v48 = vpop.f32.mrb[3].mxu0  ;;  %v1412_v49 = vpack.c.bf16 %v1835_v45, %v1831_v41  ;;  %v1839_v50 = vpop.f32.mrb[3].mxu1  ;;  %v1015_v58 = vmul.f32 %v1574_v44, %v1574_v44 }
  0xf9   :  { %v1327_v51 = vpack.c.bf16 %v371_v48, %v368_v42  ;;  %v943_v52 = vadd.f32 %v371_v48, %v368_v42  ;;  %v1013_v53 = vmul.f32 %v371_v48, %v371_v48  ;;  %v1407_v54 = vpack.c.bf16 %v1839_v50, %v1833_v43 }
  0xfa   :  { %1484 = vst [vmem:[%s2124_s2 + $0x8] sm:$0xff] %v1332_v47   ;;  %1500 = vst [vmem:[%s2124_s2 + $0x88] sm:$0xff] %v1412_v49  }
  0xfb   :  { %1328 = vst [vmem:[%s2124_s2] sm:$0xff] %v1327_v51   ;;  %v944_v56 = vadd.f32 %v1573_v40, %v943_v52  ;;  %v1076_v57 = vadd.f32 %v1013_v53, %v1012_v46  ;;  %1499 = vst [vmem:[%s2124_s2 + $0x80] sm:$0xff] %v1407_v54  }
  0xfd   :  { %v1077_v59 = vadd.f32 %v1076_v57, %v1014_v55  ;;  %v1577_v60 = vpop.f32.mrb[4].mxu0  ;;  %v945_v61 = vadd.f32 %v1574_v44, %v944_v56  ;;  %v1855_v62 = vpop.f32.mrb[4].mxu1 }
  0xfe   :  { %v384_v63 = vpop.f32.mrb[5].mxu0  ;;  %v1857_v0 = vpop.f32.mrb[5].mxu1  ;;  %v1018_v15 = vmul.f32 %v1577_v60, %v1577_v60 }
  0xff   :  { %v946_v1 = vadd.f32 %v945_v61, %v384_v63  ;;  %v1016_v2 = vmul.f32 %v384_v63, %v384_v63  ;;  %v1078_v3 = vadd.f32 %v1077_v59, %v1015_v58  ;;  %v1578_v4 = vpop.f32.mrb[6].mxu0  ;;  %v1859_v5 = vpop.f32.mrb[6].mxu1 }
 0x100   :  { %v1342_v6 = vpack.c.bf16 %v1578_v4, %v1577_v60  ;;  %v387_v7 = vpop.f32.mrb[7].mxu0  ;;  %v1422_v8 = vpack.c.bf16 %v1859_v5, %v1855_v62  ;;  %v1863_v9 = vpop.f32.mrb[7].mxu1  ;;  %v1019_v18 = vmul.f32 %v1578_v4, %v1578_v4 }
 0x101   :  { %v1079_v10 = vadd.f32 %v1078_v3, %v1016_v2  ;;  %v1337_v11 = vpack.c.bf16 %v387_v7, %v384_v63  ;;  %v947_v12 = vadd.f32 %v946_v1, %v387_v7  ;;  %v1017_v13 = vmul.f32 %v387_v7, %v387_v7 }
 0x102   :  { %1486 = vst [vmem:[%s2124_s2 + $0x18] sm:$0xff] %v1342_v6   ;;  %1502 = vst [vmem:[%s2124_s2 + $0x98] sm:$0xff] %v1422_v8   ;;  %v1417_v14 = vpack.c.bf16 %v1863_v9, %v1857_v0 }
 0x103   :  { %1485 = vst [vmem:[%s2124_s2 + $0x10] sm:$0xff] %v1337_v11   ;;  %v948_v16 = vadd.f32 %v1577_v60, %v947_v12  ;;  %v1080_v17 = vadd.f32 %v1079_v10, %v1017_v13 }
 0x104   :  { %1501 = vst [vmem:[%s2124_s2 + $0x90] sm:$0xff] %v1417_v14  }
 0x105   :  { %v1081_v19 = vadd.f32 %v1080_v17, %v1018_v15  ;;  %v1581_v20 = vpop.f32.mrb[8].mxu0  ;;  %v949_v21 = vadd.f32 %v1578_v4, %v948_v16  ;;  %v1879_v22 = vpop.f32.mrb[8].mxu1 }
 0x106   :  { %v400_v23 = vpop.f32.mrb[9].mxu0  ;;  %v1881_v24 = vpop.f32.mrb[9].mxu1  ;;  %v1022_v39 = vmul.f32 %v1581_v20, %v1581_v20 }
 0x107   :  { %v950_v25 = vadd.f32 %v949_v21, %v400_v23  ;;  %v1020_v26 = vmul.f32 %v400_v23, %v400_v23  ;;  %v1082_v27 = vadd.f32 %v1081_v19, %v1019_v18  ;;  %v1582_v28 = vpop.f32.mrb[10].mxu0  ;;  %v1883_v29 = vpop.f32.mrb[10].mxu1 }
 0x108   :  { %v1352_v30 = vpack.c.bf16 %v1582_v28, %v1581_v20  ;;  %v403_v31 = vpop.f32.mrb[11].mxu0  ;;  %v1432_v32 = vpack.c.bf16 %v1883_v29, %v1879_v22  ;;  %v1887_v33 = vpop.f32.mrb[11].mxu1  ;;  %v1023_v44 = vmul.f32 %v1582_v28, %v1582_v28 }
 0x109   :  { %v1083_v34 = vadd.f32 %v1082_v27, %v1020_v26  ;;  %v1347_v35 = vpack.c.bf16 %v403_v31, %v400_v23  ;;  %v951_v36 = vadd.f32 %v950_v25, %v403_v31  ;;  %v1021_v37 = vmul.f32 %v403_v31, %v403_v31 }
 0x10a   :  { %1488 = vst [vmem:[%s2124_s2 + $0x28] sm:$0xff] %v1352_v30   ;;  %1504 = vst [vmem:[%s2124_s2 + $0xa8] sm:$0xff] %v1432_v32   ;;  %v1427_v38 = vpack.c.bf16 %v1887_v33, %v1881_v24 }
 0x10b   :  { %1487 = vst [vmem:[%s2124_s2 + $0x20] sm:$0xff] %v1347_v35   ;;  %v952_v40 = vadd.f32 %v1581_v20, %v951_v36  ;;  %v1084_v42 = vadd.f32 %v1083_v34, %v1021_v37 }
 0x10c   :  { %1503 = vst [vmem:[%s2124_s2 + $0xa0] sm:$0xff] %v1427_v38  }
 0x10d   :  { %v1085_v46 = vadd.f32 %v1084_v42, %v1022_v39  ;;  %v1585_v47 = vpop.f32.mrb[12].mxu0  ;;  %v953_v48 = vadd.f32 %v1582_v28, %v952_v40  ;;  %v1903_v49 = vpop.f32.mrb[12].mxu1 }
 0x10e   :  { %v416_v51 = vpop.f32.mrb[13].mxu0  ;;  %v1905_v52 = vpop.f32.mrb[13].mxu1  ;;  %v1026_v6 = vmul.f32 %v1585_v47, %v1585_v47 }
 0x10f   :  { %v954_v53 = vadd.f32 %v953_v48, %v416_v51  ;;  %v1024_v54 = vmul.f32 %v416_v51, %v416_v51  ;;  %v1086_v55 = vadd.f32 %v1085_v46, %v1023_v44  ;;  %v1586_v56 = vpop.f32.mrb[14].mxu0  ;;  %v1907_v57 = vpop.f32.mrb[14].mxu1 }
 0x110   :  { %v1362_v58 = vpack.c.bf16 %v1586_v56, %v1585_v47  ;;  %v419_v59 = vpop.f32.mrb[15].mxu0  ;;  %v1442_v60 = vpack.c.bf16 %v1907_v57, %v1903_v49  ;;  %v1911_v61 = vpop.f32.mrb[15].mxu1  ;;  %v1027_v10 = vmul.f32 %v1586_v56, %v1586_v56 }
 0x111   :  { %v1087_v63 = vadd.f32 %v1086_v55, %v1024_v54  ;;  %v1357_v1 = vpack.c.bf16 %v419_v59, %v416_v51  ;;  %v955_v2 = vadd.f32 %v954_v53, %v419_v59  ;;  %v1025_v3 = vmul.f32 %v419_v59, %v419_v59 }
 0x112   :  { %1490 = vst [vmem:[%s2124_s2 + $0x38] sm:$0xff] %v1362_v58   ;;  %1506 = vst [vmem:[%s2124_s2 + $0xb8] sm:$0xff] %v1442_v60   ;;  %v1437_v4 = vpack.c.bf16 %v1911_v61, %v1905_v52 }
 0x113   :  { %1489 = vst [vmem:[%s2124_s2 + $0x30] sm:$0xff] %v1357_v1   ;;  %v956_v7 = vadd.f32 %v1585_v47, %v955_v2  ;;  %v1088_v8 = vadd.f32 %v1087_v63, %v1025_v3 }
 0x114   :  { %1505 = vst [vmem:[%s2124_s2 + $0xb0] sm:$0xff] %v1437_v4  }
 0x115   :  { %v1089_v11 = vadd.f32 %v1088_v8, %v1026_v6  ;;  %v1589_v12 = vpop.f32.mrb[16].mxu0  ;;  %v957_v13 = vadd.f32 %v1586_v56, %v956_v7  ;;  %v1927_v14 = vpop.f32.mrb[16].mxu1 }
 0x116   :  { %v432_v15 = vpop.f32.mrb[17].mxu0  ;;  %v1929_v16 = vpop.f32.mrb[17].mxu1  ;;  %v1030_v35 = vmul.f32 %v1589_v12, %v1589_v12 }
 0x117   :  { %v958_v17 = vadd.f32 %v957_v13, %v432_v15  ;;  %v1028_v18 = vmul.f32 %v432_v15, %v432_v15  ;;  %v1090_v19 = vadd.f32 %v1089_v11, %v1027_v10  ;;  %v1590_v20 = vpop.f32.mrb[18].mxu0  ;;  %v1931_v21 = vpop.f32.mrb[18].mxu1 }
 0x118   :  { %v1372_v23 = vpack.c.bf16 %v1590_v20, %v1589_v12  ;;  %v435_v25 = vpop.f32.mrb[19].mxu0  ;;  %v1452_v26 = vpack.c.bf16 %v1931_v21, %v1927_v14  ;;  %v1935_v27 = vpop.f32.mrb[19].mxu1  ;;  %v1031_v38 = vmul.f32 %v1590_v20, %v1590_v20 }
 0x119   :  { %v1091_v28 = vadd.f32 %v1090_v19, %v1028_v18  ;;  %v1367_v30 = vpack.c.bf16 %v435_v25, %v432_v15  ;;  %v959_v31 = vadd.f32 %v958_v17, %v435_v25  ;;  %v1029_v32 = vmul.f32 %v435_v25, %v435_v25 }
 0x11a   :  { %1492 = vst [vmem:[%s2124_s2 + $0x48] sm:$0xff] %v1372_v23   ;;  %1508 = vst [vmem:[%s2124_s2 + $0xc8] sm:$0xff] %v1452_v26   ;;  %v1447_v34 = vpack.c.bf16 %v1935_v27, %v1929_v16 }
 0x11b   :  { %1491 = vst [vmem:[%s2124_s2 + $0x40] sm:$0xff] %v1367_v30   ;;  %v960_v36 = vadd.f32 %v1589_v12, %v959_v31  ;;  %v1092_v37 = vadd.f32 %v1091_v28, %v1029_v32 }
 0x11c   :  { %1507 = vst [vmem:[%s2124_s2 + $0xc0] sm:$0xff] %v1447_v34  }
 0x11d   :  { %v1093_v39 = vadd.f32 %v1092_v37, %v1030_v35  ;;  %v1593_v40 = vpop.f32.mrb[20].mxu0  ;;  %v961_v42 = vadd.f32 %v1590_v20, %v960_v36  ;;  %v1951_v44 = vpop.f32.mrb[20].mxu1 }
 0x11e   :  { %v448_v46 = vpop.f32.mrb[21].mxu0  ;;  %v1953_v47 = vpop.f32.mrb[21].mxu1  ;;  %v1034_v6 = vmul.f32 %v1593_v40, %v1593_v40 }
 0x11f   :  { %v962_v48 = vadd.f32 %v961_v42, %v448_v46  ;;  %v1032_v51 = vmul.f32 %v448_v46, %v448_v46  ;;  %v1094_v53 = vadd.f32 %v1093_v39, %v1031_v38  ;;  %v1594_v54 = vpop.f32.mrb[22].mxu0  ;;  %v1955_v55 = vpop.f32.mrb[22].mxu1 }
 0x120   :  { %v1382_v56 = vpack.c.bf16 %v1594_v54, %v1593_v40  ;;  %v451_v58 = vpop.f32.mrb[23].mxu0  ;;  %v1462_v59 = vpack.c.bf16 %v1955_v55, %v1951_v44  ;;  %v1959_v60 = vpop.f32.mrb[23].mxu1  ;;  %v1035_v10 = vmul.f32 %v1594_v54, %v1594_v54 }
 0x121   :  { %v1095_v63 = vadd.f32 %v1094_v53, %v1032_v51  ;;  %v1377_v1 = vpack.c.bf16 %v451_v58, %v448_v46  ;;  %v963_v2 = vadd.f32 %v962_v48, %v451_v58  ;;  %v1033_v3 = vmul.f32 %v451_v58, %v451_v58 }
 0x122   :  { %1494 = vst [vmem:[%s2124_s2 + $0x58] sm:$0xff] %v1382_v56   ;;  %1510 = vst [vmem:[%s2124_s2 + $0xd8] sm:$0xff] %v1462_v59   ;;  %v1457_v4 = vpack.c.bf16 %v1959_v60, %v1953_v47 }
 0x123   :  { %1493 = vst [vmem:[%s2124_s2 + $0x50] sm:$0xff] %v1377_v1   ;;  %v964_v7 = vadd.f32 %v1593_v40, %v963_v2  ;;  %v1096_v8 = vadd.f32 %v1095_v63, %v1033_v3 }
 0x124   :  { %1509 = vst [vmem:[%s2124_s2 + $0xd0] sm:$0xff] %v1457_v4  }
 0x125   :  { %v1097_v11 = vadd.f32 %v1096_v8, %v1034_v6  ;;  %v1597_v12 = vpop.f32.mrb[24].mxu0  ;;  %v965_v13 = vadd.f32 %v1594_v54, %v964_v7  ;;  %v1975_v15 = vpop.f32.mrb[24].mxu1 }
 0x126   :  { %v464_v17 = vpop.f32.mrb[25].mxu0  ;;  %v1977_v18 = vpop.f32.mrb[25].mxu1  ;;  %v1038_v39 = vmul.f32 %v1597_v12, %v1597_v12 }
 0x127   :  { %v966_v19 = vadd.f32 %v965_v13, %v464_v17  ;;  %v1036_v20 = vmul.f32 %v464_v17, %v464_v17  ;;  %v1098_v23 = vadd.f32 %v1097_v11, %v1035_v10  ;;  %v1598_v25 = vpop.f32.mrb[26].mxu0  ;;  %v1979_v26 = vpop.f32.mrb[26].mxu1 }
 0x128   :  { %v1392_v28 = vpack.c.bf16 %v1598_v25, %v1597_v12  ;;  %v467_v30 = vpop.f32.mrb[27].mxu0  ;;  %v1472_v31 = vpack.c.bf16 %v1979_v26, %v1975_v15  ;;  %v1983_v32 = vpop.f32.mrb[27].mxu1  ;;  %v1039_v46 = vmul.f32 %v1598_v25, %v1598_v25 }
 0x129   :  { %v1099_v34 = vadd.f32 %v1098_v23, %v1036_v20  ;;  %v1387_v35 = vpack.c.bf16 %v467_v30, %v464_v17  ;;  %v967_v36 = vadd.f32 %v966_v19, %v467_v30  ;;  %v1037_v37 = vmul.f32 %v467_v30, %v467_v30 }
 0x12a   :  { %1496 = vst [vmem:[%s2124_s2 + $0x68] sm:$0xff] %v1392_v28   ;;  %1512 = vst [vmem:[%s2124_s2 + $0xe8] sm:$0xff] %v1472_v31   ;;  %v1467_v38 = vpack.c.bf16 %v1983_v32, %v1977_v18  ;;  %v1044_v31 = vmul.f32 %v1833_v43, %v1833_v43 }
 0x12b   :  { %1495 = vst [vmem:[%s2124_s2 + $0x60] sm:$0xff] %v1387_v35   ;;  %v968_v40 = vadd.f32 %v1597_v12, %v967_v36  ;;  %v1100_v42 = vadd.f32 %v1099_v34, %v1037_v37 }
 0x12c   :  { %1511 = vst [vmem:[%s2124_s2 + $0xe0] sm:$0xff] %v1467_v38   ;;  %v1045_v38 = vmul.f32 %v1839_v50, %v1839_v50 }
 0x12d   :  { %v1101_v48 = vadd.f32 %v1100_v42, %v1038_v39  ;;  %v1601_v51 = vpop.f32.mrb[28].mxu0  ;;  %v969_v53 = vadd.f32 %v1598_v25, %v968_v40  ;;  %v1999_v54 = vpop.f32.mrb[28].mxu1  ;;  %v1046_v39 = vmul.f32 %v1831_v41, %v1831_v41 }
 0x12e   :  { %v480_v56 = vpop.f32.mrb[29].mxu0  ;;  %v2001_v58 = vpop.f32.mrb[29].mxu1  ;;  %v1042_v19 = vmul.f32 %v1601_v51, %v1601_v51 }
 0x12f   :  { %v970_v59 = vadd.f32 %v969_v53, %v480_v56  ;;  %v1040_v63 = vmul.f32 %v480_v56, %v480_v56  ;;  %v1102_v1 = vadd.f32 %v1101_v48, %v1039_v46  ;;  %v1602_v2 = vpop.f32.mrb[30].mxu0  ;;  %v2003_v3 = vpop.f32.mrb[30].mxu1  ;;  %v1047_v46 = vmul.f32 %v1835_v45, %v1835_v45 }
 0x130   :  { %v1402_v4 = vpack.c.bf16 %v1602_v2, %v1601_v51  ;;  %v483_v6 = vpop.f32.mrb[31].mxu0  ;;  %v1482_v7 = vpack.c.bf16 %v2003_v3, %v1999_v54  ;;  %v2007_v8 = vpop.f32.mrb[31].mxu1  ;;  %v1043_v25 = vmul.f32 %v1602_v2, %v1602_v2 }
 0x131   :  { %v1103_v10 = vadd.f32 %v1102_v1, %v1040_v63  ;;  %v1397_v11 = vpack.c.bf16 %v483_v6, %v480_v56  ;;  %v971_v12 = vadd.f32 %v970_v59, %v483_v6  ;;  %v1041_v13 = vmul.f32 %v483_v6, %v483_v6 }
 0x132   :  { %1498 = vst [vmem:[%s2124_s2 + $0x78] sm:$0xff] %v1402_v4   ;;  %1514 = vst [vmem:[%s2124_s2 + $0xf8] sm:$0xff] %v1482_v7   ;;  %v1477_v17 = vpack.c.bf16 %v2007_v8, %v2001_v58  ;;  %v1049_v63 = vmul.f32 %v1863_v9, %v1863_v9 }
 0x133   :  { %1497 = vst [vmem:[%s2124_s2 + $0x70] sm:$0xff] %v1397_v11   ;;  %v972_v20 = vadd.f32 %v1601_v51, %v971_v12  ;;  %v1104_v23 = vadd.f32 %v1103_v10, %v1041_v13  ;;  %v1053_v12 = vmul.f32 %v1887_v33, %v1887_v33 }
 0x134   :  { %1513 = vst [vmem:[%s2124_s2 + $0xf0] sm:$0xff] %v1477_v17  }
 0x135   :  { %v1105_v28 = vadd.f32 %v1104_v23, %v1042_v19  ;;  %v973_v30 = vadd.f32 %v1602_v2, %v972_v20 }
 0x137   :  { %v974_v34 = vadd.f32 %v973_v30, %v1833_v43  ;;  %v1106_v35 = vadd.f32 %v1105_v28, %v1043_v25  ;;  %v1048_v43 = vmul.f32 %v1857_v0, %v1857_v0  ;;  %v1057_v30 = vmul.f32 %v1911_v61, %v1911_v61 }
 0x139   :  { %v1107_v36 = vadd.f32 %v1106_v35, %v1044_v31  ;;  %v975_v37 = vadd.f32 %v974_v34, %v1839_v50 }
 0x13b   :  { %v976_v40 = vadd.f32 %v1831_v41, %v975_v37  ;;  %v1108_v42 = vadd.f32 %v1107_v36, %v1045_v38  ;;  %v1050_v41 = vmul.f32 %v1855_v62, %v1855_v62 }
 0x13d   :  { %v1109_v48 = vadd.f32 %v1108_v42, %v1046_v39  ;;  %v977_v51 = vadd.f32 %v1835_v45, %v976_v40  ;;  %v1051_v45 = vmul.f32 %v1859_v5, %v1859_v5  ;;  %v1061_v40 = vmul.f32 %v1935_v27, %v1935_v27 }
 0x13f   :  { %v978_v53 = vadd.f32 %v977_v51, %v1857_v0  ;;  %v1110_v56 = vadd.f32 %v1109_v48, %v1047_v46  ;;  %v1052_v0 = vmul.f32 %v1881_v24, %v1881_v24 }
 0x141   :  { %v1111_v59 = vadd.f32 %v1110_v56, %v1048_v43  ;;  %v979_v50 = vadd.f32 %v978_v53, %v1863_v9 }
 0x143   :  { %v980_v1 = vadd.f32 %v1855_v62, %v979_v50  ;;  %v1112_v2 = vadd.f32 %v1111_v59, %v1049_v63  ;;  %v1054_v62 = vmul.f32 %v1879_v22, %v1879_v22  ;;  %v1065_v59 = vmul.f32 %v1959_v60, %v1959_v60 }
 0x145   :  { %v1113_v4 = vadd.f32 %v1112_v2, %v1050_v41  ;;  %v981_v6 = vadd.f32 %v1859_v5, %v980_v1  ;;  %v1055_v5 = vmul.f32 %v1883_v29, %v1883_v29 }
 0x147   :  { %v982_v7 = vadd.f32 %v981_v6, %v1881_v24  ;;  %v1114_v10 = vadd.f32 %v1113_v4, %v1051_v45  ;;  %v1056_v24 = vmul.f32 %v1905_v52, %v1905_v52  ;;  %v1069_v6 = vmul.f32 %v1983_v32, %v1983_v32 }
 0x149   :  { %v1115_v11 = vadd.f32 %v1114_v10, %v1052_v0  ;;  %v983_v9 = vadd.f32 %v982_v7, %v1887_v33 }
 0x14b   :  { %v984_v13 = vadd.f32 %v1879_v22, %v983_v9  ;;  %v1116_v17 = vadd.f32 %v1115_v11, %v1053_v12  ;;  %v1058_v22 = vmul.f32 %v1903_v49, %v1903_v49 }
 0x14d   :  { %v1117_v19 = vadd.f32 %v1116_v17, %v1054_v62  ;;  %v985_v20 = vadd.f32 %v1883_v29, %v984_v13  ;;  %v1059_v29 = vmul.f32 %v1907_v57, %v1907_v57  ;;  %v1073_v13 = vmul.f32 %v2007_v8, %v2007_v8 }
 0x14f   :  { %v986_v23 = vadd.f32 %v985_v20, %v1905_v52  ;;  %v1118_v25 = vadd.f32 %v1117_v19, %v1055_v5  ;;  %v1060_v52 = vmul.f32 %v1929_v16, %v1929_v16 }
 0x151   :  { %v1119_v28 = vadd.f32 %v1118_v25, %v1056_v24  ;;  %v987_v33 = vadd.f32 %v986_v23, %v1911_v61 }
 0x153   :  { %v988_v31 = vadd.f32 %v1903_v49, %v987_v33  ;;  %v1120_v34 = vadd.f32 %v1119_v28, %v1057_v30  ;;  %v1062_v49 = vmul.f32 %v1927_v14, %v1927_v14 }
 0x155   :  { %v1121_v35 = vadd.f32 %v1120_v34, %v1058_v22  ;;  %v989_v36 = vadd.f32 %v1907_v57, %v988_v31  ;;  %v1063_v57 = vmul.f32 %v1931_v21, %v1931_v21 }
 0x157   :  { %v990_v37 = vadd.f32 %v989_v36, %v1929_v16  ;;  %v1122_v38 = vadd.f32 %v1121_v35, %v1059_v29  ;;  %v1064_v16 = vmul.f32 %v1953_v47, %v1953_v47 }
 0x159   :  { %v1123_v39 = vadd.f32 %v1122_v38, %v1060_v52  ;;  %v991_v61 = vadd.f32 %v990_v37, %v1935_v27 }
 0x15b   :  { %v992_v42 = vadd.f32 %v1927_v14, %v991_v61  ;;  %v1124_v46 = vadd.f32 %v1123_v39, %v1061_v40  ;;  %v1066_v14 = vmul.f32 %v1951_v44, %v1951_v44 }
 0x15d   :  { %v1125_v48 = vadd.f32 %v1124_v46, %v1062_v49  ;;  %v993_v51 = vadd.f32 %v1931_v21, %v992_v42  ;;  %v1067_v21 = vmul.f32 %v1955_v55, %v1955_v55 }
 0x15f   :  { %v994_v43 = vadd.f32 %v993_v51, %v1953_v47  ;;  %v1126_v53 = vadd.f32 %v1125_v48, %v1063_v57  ;;  %v1068_v47 = vmul.f32 %v1977_v18, %v1977_v18 }
 0x161   :  { %v1127_v56 = vadd.f32 %v1126_v53, %v1064_v16  ;;  %v995_v27 = vadd.f32 %v994_v43, %v1959_v60 }
 0x163   :  { %v996_v50 = vadd.f32 %v1951_v44, %v995_v27  ;;  %v1128_v63 = vadd.f32 %v1127_v56, %v1065_v59  ;;  %v1070_v44 = vmul.f32 %v1975_v15, %v1975_v15 }
 0x165   :  { %v1129_v41 = vadd.f32 %v1128_v63, %v1066_v14  ;;  %v997_v1 = vadd.f32 %v1955_v55, %v996_v50  ;;  %v1071_v55 = vmul.f32 %v1979_v26, %v1979_v26 }
 0x167   :  { %v998_v2 = vadd.f32 %v997_v1, %v1977_v18  ;;  %v1130_v45 = vadd.f32 %v1129_v41, %v1067_v21  ;;  %v1072_v18 = vmul.f32 %v2001_v58, %v2001_v58 }
 0x169   :  { %v1131_v4 = vadd.f32 %v1130_v45, %v1068_v47  ;;  %v999_v60 = vadd.f32 %v998_v2, %v1983_v32 }
 0x16b   :  { %v1000_v0 = vadd.f32 %v1975_v15, %v999_v60  ;;  %v1132_v7 = vadd.f32 %v1131_v4, %v1069_v6  ;;  %v1074_v15 = vmul.f32 %v1999_v54, %v1999_v54 }
 0x16d   :  { %v1133_v10 = vadd.f32 %v1132_v7, %v1070_v44  ;;  %v1001_v11 = vadd.f32 %v1979_v26, %v1000_v0  ;;  %v1075_v26 = vmul.f32 %v2003_v3, %v2003_v3 }
 0x16f   :  { %v1002_v9 = vadd.f32 %v1001_v11, %v2001_v58  ;;  %v1134_v12 = vadd.f32 %v1133_v10, %v1071_v55 }
 0x171   :  { %v1135_v62 = vadd.f32 %v1134_v12, %v1072_v18  ;;  %v1003_v32 = vadd.f32 %v1002_v9, %v2007_v8 }
 0x173   :  { %v1004_v17 = vadd.f32 %v1999_v54, %v1003_v32  ;;  %v1136_v5 = vadd.f32 %v1135_v62, %v1073_v13 }
 0x175   :  { %v1005_v19 = vadd.f32 %v2003_v3, %v1004_v17  ;;  %v1137_v20 = vadd.f32 %v1136_v5, %v1074_v15 }
 0x177   :  { %v1006_v58 = vrot.slane %v1005_v19, 4  ;;  %v1138_v24 = vadd.f32 %v1137_v20, %v1075_v26 }
 0x179   :  { %v1007_v23 = vadd.f32 %v1006_v58, %v1005_v19  ;;  %v1139_v25 = vrot.slane %v1138_v24, 4 }
 0x17b   :  { %v1008_v28 = vrot.slane %v1007_v23, 2  ;;  %v1140_v33 = vadd.f32 %v1139_v25, %v1138_v24 }
 0x17d   :  { %v1009_v30 = vadd.f32 %v1008_v28, %v1007_v23  ;;  %v1141_v8 = vrot.slane %v1140_v33, 2 }
 0x17f   :  { %v1010_v22 = vrot.slane %v1009_v30, 1  ;;  %v1142_v31 = vadd.f32 %v1141_v8, %v1140_v33 }
 0x181   :  { %v1143_v34 = vrot.slane %v1142_v31, 1  ;;  %v1011_v54 = vadd.f32 %v1010_v22, %v1009_v30 }
 0x183   :  { %v1144_v29 = vadd.f32 %v1143_v34, %v1142_v31 }
 0x185   :  { %v1146_v35 = vsel %vm1145_vm0, %v1011_v54, %v1144_v29 }
 0x186   :  { %1147 = vst [vmem:[%s2125_s3] sm:$0x3] %v1146_v35 }

// kernel: residual_bottleneck_blk.7
= control target key start
LH: loop header
LB: loop body
LE: loop exit
PB: predicated region body
PF: predicated region fallthrough
CT: control target
= control target key end

     0   :  { %s1502_s0 = inlined_call_operand.vmem [shape: bf16[512,128], index: 0, kind: input, shape index: {}]   ;;  %s1503_s1 = inlined_call_operand.vmem [shape: f32[1,128], index: 1, kind: input, shape index: {}]   ;;  %s1504_s2 = inlined_call_operand.vmem [shape: f32[1,128], index: 2, kind: input, shape index: {}]   ;;  %s1505_s3 = inlined_call_operand.vmem [shape: bf16[512,128], index: 3, kind: output, shape index: {}]  }
   0x1   :  { %v803_v0 = vld [vmem:[%s1502_s0] sm:$0xff]   ;;  %v1090_v4 = vld [vmem:[%s1502_s0 + $0x8] sm:$0xff]   ;;  %v1091_v5 = vld [vmem:[%s1502_s0 + $0x10] sm:$0xff]  }
   0x2   :  { %v1178_v1 = vld [vmem:[%s1503_s1] ss:$0 sm:$0xff]  ;;  %v804_v2 = vunpack.c.l.bf16 %v803_v0  ;;  %v805_v3 = vunpack.c.h.bf16 %v803_v0  ;;  %v1092_v6 = vld [vmem:[%s1502_s0 + $0x18] sm:$0xff]   ;;  %v808_v8 = vunpack.c.l.bf16 %v1090_v4  ;;  %v809_v9 = vunpack.c.h.bf16 %v1090_v4  ;;  %v1094_v33 = vld [vmem:[%s1502_s0 + $0x28] sm:$0xff]  }
   0x3   :  { %v1192_v7 = vld [vmem:[%s1504_s2] ss:$0 sm:$0xff]  ;;  %v812_v10 = vunpack.c.l.bf16 %v1091_v5  ;;  %v813_v11 = vunpack.c.h.bf16 %v1091_v5  ;;  %v816_v14 = vunpack.c.l.bf16 %v1092_v6  ;;  %v817_v15 = vunpack.c.h.bf16 %v1092_v6  ;;  %v1095_v38 = vld [vmem:[%s1502_s0 + $0x30] sm:$0xff]   ;;  %v1096_v43 = vld [vmem:[%s1502_s0 + $0x38] sm:$0xff]  }
   0x4   :  { %v149_v12 = vmul.f32 %v804_v2, %v1178_v1  ;;  %v150_v13 = vmul.f32 %v805_v3, %v1178_v1  ;;  %v151_v16 = vmul.f32 %v808_v8, %v1178_v1  ;;  %v152_v17 = vmul.f32 %v809_v9, %v1178_v1  ;;  %v1093_v28 = vld [vmem:[%s1502_s0 + $0x20] sm:$0xff]  }
   0x5   :  { %v153_v18 = vmul.f32 %v812_v10, %v1178_v1  ;;  %v154_v19 = vmul.f32 %v813_v11, %v1178_v1  ;;  %v155_v22 = vmul.f32 %v816_v14, %v1178_v1  ;;  %v156_v23 = vmul.f32 %v817_v15, %v1178_v1  ;;  %v1097_v0 = vld [vmem:[%s1502_s0 + $0x40] sm:$0xff]   ;;  %v1098_v11 = vld [vmem:[%s1502_s0 + $0x48] sm:$0xff]  }
   0x6   :  { %v220_v20 = vadd.f32 %v1192_v7, %v149_v12  ;;  %v221_v21 = vadd.f32 %v1192_v7, %v150_v13  ;;  %v222_v24 = vadd.f32 %v1192_v7, %v151_v16  ;;  %v223_v25 = vadd.f32 %v1192_v7, %v152_v17  ;;  %v1099_v16 = vld [vmem:[%s1502_s0 + $0x50] sm:$0xff]  }
   0x7   :  { %v224_v26 = vadd.f32 %v1192_v7, %v153_v18  ;;  %v225_v27 = vadd.f32 %v1192_v7, %v154_v19  ;;  %v226_v31 = vadd.f32 %v1192_v7, %v155_v22  ;;  %v227_v32 = vadd.f32 %v1192_v7, %v156_v23 }
   0x8   :  { %v284_v29 = vmax.f32 %v220_v20, 0.0  ;;  %v285_v30 = vmax.f32 %v221_v21, 0.0  ;;  %v286_v34 = vmax.f32 %v222_v24, 0.0  ;;  %v287_v35 = vmax.f32 %v223_v25, 0.0  ;;  %v1100_v25 = vld [vmem:[%s1502_s0 + $0x58] sm:$0xff]  }
   0x9   :  { %v288_v36 = vmax.f32 %v224_v26, 0.0  ;;  %v289_v37 = vmax.f32 %v225_v27, 0.0  ;;  %v290_v40 = vmax.f32 %v226_v31, 0.0  ;;  %v291_v41 = vmax.f32 %v227_v32, 0.0 }
   0xa   :  { %v933_v39 = vpack.c.bf16 %v285_v30, %v284_v29  ;;  %v820_v42 = vunpack.c.l.bf16 %v1093_v28  ;;  %v938_v44 = vpack.c.bf16 %v287_v35, %v286_v34  ;;  %v821_v46 = vunpack.c.h.bf16 %v1093_v28 }
   0xb   :  { %v943_v45 = vpack.c.bf16 %v289_v37, %v288_v36  ;;  %v824_v47 = vunpack.c.l.bf16 %v1094_v33  ;;  %v948_v48 = vpack.c.bf16 %v291_v41, %v290_v40  ;;  %v825_v50 = vunpack.c.h.bf16 %v1094_v33 }
   0xc   :  { %934 = vst [vmem:[%s1505_s3] sm:$0xff] %v933_v39   ;;  %v157_v49 = vmul.f32 %v820_v42, %v1178_v1  ;;  %v828_v51 = vunpack.c.l.bf16 %v1095_v38  ;;  %1121 = vst [vmem:[%s1505_s3 + $0x8] sm:$0xff] %v938_v44   ;;  %v158_v52 = vmul.f32 %v821_v46, %v1178_v1  ;;  %v829_v54 = vunpack.c.h.bf16 %v1095_v38  ;;  %v1101_v38 = vld [vmem:[%s1502_s0 + $0x60] sm:$0xff]  }
   0xd   :  { %1122 = vst [vmem:[%s1505_s3 + $0x10] sm:$0xff] %v943_v45   ;;  %v159_v53 = vmul.f32 %v824_v47, %v1178_v1  ;;  %v832_v55 = vunpack.c.l.bf16 %v1096_v43  ;;  %1123 = vst [vmem:[%s1505_s3 + $0x18] sm:$0xff] %v948_v48   ;;  %v160_v57 = vmul.f32 %v825_v50, %v1178_v1  ;;  %v833_v59 = vunpack.c.h.bf16 %v1096_v43 }
   0xe   :  { %v228_v56 = vadd.f32 %v1192_v7, %v157_v49  ;;  %v161_v58 = vmul.f32 %v828_v51, %v1178_v1  ;;  %v229_v60 = vadd.f32 %v1192_v7, %v158_v52  ;;  %v162_v62 = vmul.f32 %v829_v54, %v1178_v1  ;;  %v1102_v51 = vld [vmem:[%s1502_s0 + $0x68] sm:$0xff]  }
   0xf   :  { %v230_v61 = vadd.f32 %v1192_v7, %v159_v53  ;;  %v163_v63 = vmul.f32 %v832_v55, %v1178_v1  ;;  %v231_v3 = vadd.f32 %v1192_v7, %v160_v57  ;;  %v164_v5 = vmul.f32 %v833_v59, %v1178_v1 }
  0x10   :  { %v292_v2 = vmax.f32 %v228_v56, 0.0  ;;  %v232_v4 = vadd.f32 %v1192_v7, %v161_v58  ;;  %v293_v6 = vmax.f32 %v229_v60, 0.0  ;;  %v233_v9 = vadd.f32 %v1192_v7, %v162_v62  ;;  %v1103_v60 = vld [vmem:[%s1502_s0 + $0x70] sm:$0xff]  }
  0x11   :  { %v294_v8 = vmax.f32 %v230_v61, 0.0  ;;  %v234_v10 = vadd.f32 %v1192_v7, %v163_v63  ;;  %v295_v12 = vmax.f32 %v231_v3, 0.0  ;;  %v235_v14 = vadd.f32 %v1192_v7, %v164_v5 }
  0x12   :  { %v296_v13 = vmax.f32 %v232_v4, 0.0  ;;  %v836_v15 = vunpack.c.l.bf16 %v1097_v0  ;;  %v953_v17 = vpack.c.bf16 %v293_v6, %v292_v2  ;;  %v297_v18 = vmax.f32 %v233_v9, 0.0  ;;  %v1104_v2 = vld [vmem:[%s1502_s0 + $0x78] sm:$0xff]  }
  0x13   :  { %v298_v19 = vmax.f32 %v234_v10, 0.0  ;;  %v837_v20 = vunpack.c.h.bf16 %v1097_v0  ;;  %v958_v21 = vpack.c.bf16 %v295_v12, %v294_v8  ;;  %v299_v22 = vmax.f32 %v235_v14, 0.0  ;;  %v1105_v12 = vld [vmem:[%s1502_s0 + $0x80] sm:$0xff]  }
  0x14   :  { %v165_v23 = vmul.f32 %v836_v15, %v1178_v1  ;;  %v840_v24 = vunpack.c.l.bf16 %v1098_v11  ;;  %1124 = vst [vmem:[%s1505_s3 + $0x20] sm:$0xff] %v953_v17   ;;  %v963_v26 = vpack.c.bf16 %v297_v18, %v296_v13  ;;  %v841_v28 = vunpack.c.h.bf16 %v1098_v11 }
  0x15   :  { %v166_v27 = vmul.f32 %v837_v20, %v1178_v1  ;;  %v844_v29 = vunpack.c.l.bf16 %v1099_v16  ;;  %1125 = vst [vmem:[%s1505_s3 + $0x28] sm:$0xff] %v958_v21   ;;  %v968_v30 = vpack.c.bf16 %v299_v22, %v298_v19  ;;  %v845_v33 = vunpack.c.h.bf16 %v1099_v16 }
  0x16   :  { %v236_v31 = vadd.f32 %v1192_v7, %v165_v23  ;;  %v167_v32 = vmul.f32 %v840_v24, %v1178_v1  ;;  %1126 = vst [vmem:[%s1505_s3 + $0x30] sm:$0xff] %v963_v26   ;;  %v168_v35 = vmul.f32 %v841_v28, %v1178_v1  ;;  %v848_v37 = vunpack.c.l.bf16 %v1100_v25 }
  0x17   :  { %v237_v34 = vadd.f32 %v1192_v7, %v166_v27  ;;  %v169_v36 = vmul.f32 %v844_v29, %v1178_v1  ;;  %1127 = vst [vmem:[%s1505_s3 + $0x38] sm:$0xff] %v968_v30   ;;  %v170_v41 = vmul.f32 %v845_v33, %v1178_v1  ;;  %v849_v42 = vunpack.c.h.bf16 %v1100_v25  ;;  %v1106_v29 = vld [vmem:[%s1502_s0 + $0x88] sm:$0xff]  }
  0x18   :  { %v300_v39 = vmax.f32 %v236_v31, 0.0  ;;  %v238_v40 = vadd.f32 %v1192_v7, %v167_v32  ;;  %v239_v44 = vadd.f32 %v1192_v7, %v168_v35  ;;  %v171_v46 = vmul.f32 %v848_v37, %v1178_v1 }
  0x19   :  { %v301_v43 = vmax.f32 %v237_v34, 0.0  ;;  %v240_v45 = vadd.f32 %v1192_v7, %v169_v36  ;;  %v241_v48 = vadd.f32 %v1192_v7, %v170_v41  ;;  %v172_v49 = vmul.f32 %v849_v42, %v1178_v1  ;;  %v1107_v34 = vld [vmem:[%s1502_s0 + $0x90] sm:$0xff]  }
  0x1a   :  { %v302_v47 = vmax.f32 %v238_v40, 0.0  ;;  %v852_v50 = vunpack.c.l.bf16 %v1101_v38  ;;  %v303_v53 = vmax.f32 %v239_v44, 0.0  ;;  %v242_v55 = vadd.f32 %v1192_v7, %v171_v46 }
  0x1b   :  { %v973_v52 = vpack.c.bf16 %v301_v43, %v300_v39  ;;  %v304_v54 = vmax.f32 %v240_v45, 0.0  ;;  %v305_v56 = vmax.f32 %v241_v48, 0.0  ;;  %v243_v57 = vadd.f32 %v1192_v7, %v172_v49  ;;  %v1108_v43 = vld [vmem:[%s1502_s0 + $0x98] sm:$0xff]  }
  0x1c   :  { %v853_v58 = vunpack.c.h.bf16 %v1101_v38  ;;  %v173_v59 = vmul.f32 %v852_v50, %v1178_v1  ;;  %v978_v61 = vpack.c.bf16 %v303_v53, %v302_v47  ;;  %v306_v62 = vmax.f32 %v242_v55, 0.0 }
  0x1d   :  { %1128 = vst [vmem:[%s1505_s3 + $0x40] sm:$0xff] %v973_v52   ;;  %v856_v63 = vunpack.c.l.bf16 %v1102_v51  ;;  %v857_v0 = vunpack.c.h.bf16 %v1102_v51  ;;  %v983_v3 = vpack.c.bf16 %v305_v56, %v304_v54  ;;  %v307_v4 = vmax.f32 %v243_v57, 0.0  ;;  %v1109_v56 = vld [vmem:[%s1502_s0 + $0xa0] sm:$0xff]  }
  0x1e   :  { %v174_v5 = vmul.f32 %v853_v58, %v1178_v1  ;;  %v244_v6 = vadd.f32 %v1192_v7, %v173_v59  ;;  %1129 = vst [vmem:[%s1505_s3 + $0x48] sm:$0xff] %v978_v61   ;;  %v860_v10 = vunpack.c.l.bf16 %v1103_v60  ;;  %v861_v11 = vunpack.c.h.bf16 %v1103_v60 }
  0x1f   :  { %v175_v8 = vmul.f32 %v856_v63, %v1178_v1  ;;  %v176_v9 = vmul.f32 %v857_v0, %v1178_v1  ;;  %1130 = vst [vmem:[%s1505_s3 + $0x50] sm:$0xff] %v983_v3   ;;  %v988_v13 = vpack.c.bf16 %v307_v4, %v306_v62  ;;  %v864_v16 = vunpack.c.l.bf16 %v1104_v2 }
  0x20   :  { %v245_v14 = vadd.f32 %v1192_v7, %v174_v5  ;;  %v308_v15 = vmax.f32 %v244_v6, 0.0  ;;  %v177_v19 = vmul.f32 %v860_v10, %v1178_v1  ;;  %v178_v20 = vmul.f32 %v861_v11, %v1178_v1 }
  0x21   :  { %v246_v17 = vadd.f32 %v1192_v7, %v175_v8  ;;  %v247_v18 = vadd.f32 %v1192_v7, %v176_v9  ;;  %1131 = vst [vmem:[%s1505_s3 + $0x58] sm:$0xff] %v988_v13   ;;  %v865_v22 = vunpack.c.h.bf16 %v1104_v2  ;;  %v179_v23 = vmul.f32 %v864_v16, %v1178_v1  ;;  %v1110_v2 = vld [vmem:[%s1502_s0 + $0xa8] sm:$0xff]   ;;  %v1111_v16 = vld [vmem:[%s1502_s0 + $0xb0] sm:$0xff]  }
  0x22   :  { %v309_v21 = vmax.f32 %v245_v14, 0.0  ;;  %v868_v24 = vunpack.c.l.bf16 %v1105_v12  ;;  %v248_v27 = vadd.f32 %v1192_v7, %v177_v19  ;;  %v249_v28 = vadd.f32 %v1192_v7, %v178_v20 }
  0x23   :  { %v310_v25 = vmax.f32 %v246_v17, 0.0  ;;  %v311_v26 = vmax.f32 %v247_v18, 0.0  ;;  %v180_v31 = vmul.f32 %v865_v22, %v1178_v1  ;;  %v250_v32 = vadd.f32 %v1192_v7, %v179_v23 }
  0x24   :  { %v993_v30 = vpack.c.bf16 %v309_v21, %v308_v15  ;;  %v869_v33 = vunpack.c.h.bf16 %v1105_v12  ;;  %v312_v36 = vmax.f32 %v248_v27, 0.0  ;;  %v313_v37 = vmax.f32 %v249_v28, 0.0  ;;  %v1112_v21 = vld [vmem:[%s1502_s0 + $0xb8] sm:$0xff]  }
  0x25   :  { %v998_v35 = vpack.c.bf16 %v311_v26, %v310_v25  ;;  %v181_v38 = vmul.f32 %v868_v24, %v1178_v1  ;;  %v251_v39 = vadd.f32 %v1192_v7, %v180_v31  ;;  %v314_v40 = vmax.f32 %v250_v32, 0.0 }
  0x26   :  { %1132 = vst [vmem:[%s1505_s3 + $0x60] sm:$0xff] %v993_v30   ;;  %v182_v41 = vmul.f32 %v869_v33, %v1178_v1  ;;  %v872_v42 = vunpack.c.l.bf16 %v1106_v29  ;;  %v1003_v44 = vpack.c.bf16 %v313_v37, %v312_v36  ;;  %v873_v46 = vunpack.c.h.bf16 %v1106_v29 }
  0x27   :  { %1133 = vst [vmem:[%s1505_s3 + $0x68] sm:$0xff] %v998_v35   ;;  %v252_v45 = vadd.f32 %v1192_v7, %v181_v38  ;;  %v876_v47 = vunpack.c.l.bf16 %v1107_v34  ;;  %v315_v48 = vmax.f32 %v251_v39, 0.0  ;;  %v877_v51 = vunpack.c.h.bf16 %v1107_v34  ;;  %v1113_v34 = vld [vmem:[%s1502_s0 + $0xc0] sm:$0xff]  }
  0x28   :  { %v253_v49 = vadd.f32 %v1192_v7, %v182_v41  ;;  %v183_v50 = vmul.f32 %v872_v42, %v1178_v1  ;;  %1134 = vst [vmem:[%s1505_s3 + $0x70] sm:$0xff] %v1003_v44   ;;  %v184_v53 = vmul.f32 %v873_v46, %v1178_v1  ;;  %v880_v55 = vunpack.c.l.bf16 %v1108_v43 }
  0x29   :  { %v316_v52 = vmax.f32 %v252_v45, 0.0  ;;  %v185_v54 = vmul.f32 %v876_v47, %v1178_v1  ;;  %v1008_v57 = vpack.c.bf16 %v315_v48, %v314_v40  ;;  %v186_v60 = vmul.f32 %v877_v51, %v1178_v1  ;;  %v1114_v47 = vld [vmem:[%s1502_s0 + $0xc8] sm:$0xff]  }
  0x2a   :  { %v317_v58 = vmax.f32 %v253_v49, 0.0  ;;  %v254_v59 = vadd.f32 %v1192_v7, %v183_v50  ;;  %v255_v61 = vadd.f32 %v1192_v7, %v184_v53  ;;  %v881_v63 = vunpack.c.h.bf16 %v1108_v43 }
  0x2b   :  { %v256_v62 = vadd.f32 %v1192_v7, %v185_v54  ;;  %v187_v0 = vmul.f32 %v880_v55, %v1178_v1  ;;  %1135 = vst [vmem:[%s1505_s3 + $0x78] sm:$0xff] %v1008_v57   ;;  %v257_v5 = vadd.f32 %v1192_v7, %v186_v60  ;;  %v884_v6 = vunpack.c.l.bf16 %v1109_v56 }
  0x2c   :  { %v1013_v3 = vpack.c.bf16 %v317_v58, %v316_v52  ;;  %v318_v4 = vmax.f32 %v254_v59, 0.0  ;;  %v319_v8 = vmax.f32 %v255_v61, 0.0  ;;  %v188_v10 = vmul.f32 %v881_v63, %v1178_v1  ;;  %v1115_v52 = vld [vmem:[%s1502_s0 + $0xd0] sm:$0xff]   ;;  %v1116_v61 = vld [vmem:[%s1502_s0 + $0xd8] sm:$0xff]  }
  0x2d   :  { %v320_v9 = vmax.f32 %v256_v62, 0.0  ;;  %v258_v11 = vadd.f32 %v1192_v7, %v187_v0  ;;  %v321_v12 = vmax.f32 %v257_v5, 0.0  ;;  %v885_v13 = vunpack.c.h.bf16 %v1109_v56 }
  0x2e   :  { %1136 = vst [vmem:[%s1505_s3 + $0x80] sm:$0xff] %v1013_v3   ;;  %v189_v14 = vmul.f32 %v884_v6, %v1178_v1  ;;  %v888_v15 = vunpack.c.l.bf16 %v1110_v2  ;;  %v1018_v17 = vpack.c.bf16 %v319_v8, %v318_v4  ;;  %v259_v18 = vadd.f32 %v1192_v7, %v188_v10 }
  0x2f   :  { %v322_v19 = vmax.f32 %v258_v11, 0.0  ;;  %v889_v20 = vunpack.c.h.bf16 %v1110_v2  ;;  %v1023_v22 = vpack.c.bf16 %v321_v12, %v320_v9  ;;  %v190_v23 = vmul.f32 %v885_v13, %v1178_v1  ;;  %v1117_v12 = vld [vmem:[%s1502_s0 + $0xe0] sm:$0xff]  }
  0x30   :  { %v260_v24 = vadd.f32 %v1192_v7, %v189_v14  ;;  %v191_v25 = vmul.f32 %v888_v15, %v1178_v1  ;;  %1137 = vst [vmem:[%s1505_s3 + $0x88] sm:$0xff] %v1018_v17   ;;  %v323_v26 = vmax.f32 %v259_v18, 0.0  ;;  %v892_v28 = vunpack.c.l.bf16 %v1111_v16 }
  0x31   :  { %v192_v27 = vmul.f32 %v889_v20, %v1178_v1  ;;  %v893_v29 = vunpack.c.h.bf16 %v1111_v16  ;;  %1138 = vst [vmem:[%s1505_s3 + $0x90] sm:$0xff] %v1023_v22   ;;  %v261_v30 = vadd.f32 %v1192_v7, %v190_v23  ;;  %v896_v33 = vunpack.c.l.bf16 %v1112_v21 }
  0x32   :  { %v324_v31 = vmax.f32 %v260_v24, 0.0  ;;  %v262_v32 = vadd.f32 %v1192_v7, %v191_v25  ;;  %v1028_v35 = vpack.c.bf16 %v323_v26, %v322_v19  ;;  %v193_v37 = vmul.f32 %v892_v28, %v1178_v1 }
  0x33   :  { %v263_v36 = vadd.f32 %v1192_v7, %v192_v27  ;;  %v194_v38 = vmul.f32 %v893_v29, %v1178_v1  ;;  %v325_v39 = vmax.f32 %v261_v30, 0.0  ;;  %v897_v41 = vunpack.c.h.bf16 %v1112_v21  ;;  %v1118_v21 = vld [vmem:[%s1502_s0 + $0xe8] sm:$0xff]  }
  0x34   :  { %v326_v40 = vmax.f32 %v262_v32, 0.0  ;;  %v195_v42 = vmul.f32 %v896_v33, %v1178_v1  ;;  %1139 = vst [vmem:[%s1505_s3 + $0x98] sm:$0xff] %v1028_v35   ;;  %v264_v44 = vadd.f32 %v1192_v7, %v193_v37  ;;  %v900_v46 = vunpack.c.l.bf16 %v1113_v34 }
  0x35   :  { %v327_v43 = vmax.f32 %v263_v36, 0.0  ;;  %v265_v45 = vadd.f32 %v1192_v7, %v194_v38  ;;  %v1033_v48 = vpack.c.bf16 %v325_v39, %v324_v31  ;;  %v196_v49 = vmul.f32 %v897_v41, %v1178_v1  ;;  %v1120_v39 = vld [vmem:[%s1502_s0 + $0xf8] sm:$0xff]  }
  0x36   :  { %v266_v50 = vadd.f32 %v1192_v7, %v195_v42  ;;  %v901_v51 = vunpack.c.h.bf16 %v1113_v34  ;;  %v328_v54 = vmax.f32 %v264_v44, 0.0  ;;  %v197_v56 = vmul.f32 %v900_v46, %v1178_v1  ;;  %v1119_v34 = vld [vmem:[%s1502_s0 + $0xf0] sm:$0xff]  }
  0x37   :  { %v1038_v53 = vpack.c.bf16 %v327_v43, %v326_v40  ;;  %v329_v55 = vmax.f32 %v265_v45, 0.0  ;;  %1140 = vst [vmem:[%s1505_s3 + $0xa0] sm:$0xff] %v1033_v48   ;;  %v267_v57 = vadd.f32 %v1192_v7, %v196_v49  ;;  %v904_v60 = vunpack.c.l.bf16 %v1114_v47 }
  0x38   :  { %v330_v58 = vmax.f32 %v266_v50, 0.0  ;;  %v198_v59 = vmul.f32 %v901_v51, %v1178_v1  ;;  %v268_v63 = vadd.f32 %v1192_v7, %v197_v56  ;;  %v905_v0 = vunpack.c.h.bf16 %v1114_v47 }
  0x39   :  { %1141 = vst [vmem:[%s1505_s3 + $0xa8] sm:$0xff] %v1038_v53   ;;  %v1043_v62 = vpack.c.bf16 %v329_v55, %v328_v54  ;;  %v908_v2 = vunpack.c.l.bf16 %v1115_v52  ;;  %v331_v3 = vmax.f32 %v267_v57, 0.0  ;;  %v199_v5 = vmul.f32 %v904_v60, %v1178_v1 }
  0x3a   :  { %v269_v4 = vadd.f32 %v1192_v7, %v198_v59  ;;  %v909_v6 = vunpack.c.h.bf16 %v1115_v52  ;;  %v332_v8 = vmax.f32 %v268_v63, 0.0  ;;  %v200_v9 = vmul.f32 %v905_v0, %v1178_v1 }
  0x3b   :  { %1142 = vst [vmem:[%s1505_s3 + $0xb0] sm:$0xff] %v1043_v62   ;;  %v201_v10 = vmul.f32 %v908_v2, %v1178_v1  ;;  %v912_v11 = vunpack.c.l.bf16 %v1116_v61  ;;  %v1048_v13 = vpack.c.bf16 %v331_v3, %v330_v58  ;;  %v270_v15 = vadd.f32 %v1192_v7, %v199_v5 }
  0x3c   :  { %v333_v14 = vmax.f32 %v269_v4, 0.0  ;;  %v202_v16 = vmul.f32 %v909_v6, %v1178_v1  ;;  %v271_v17 = vadd.f32 %v1192_v7, %v200_v9  ;;  %v913_v19 = vunpack.c.h.bf16 %v1116_v61 }
  0x3d   :  { %v272_v18 = vadd.f32 %v1192_v7, %v201_v10  ;;  %v203_v20 = vmul.f32 %v912_v11, %v1178_v1  ;;  %1143 = vst [vmem:[%s1505_s3 + $0xb8] sm:$0xff] %v1048_v13   ;;  %v334_v23 = vmax.f32 %v270_v15, 0.0  ;;  %v916_v25 = vunpack.c.l.bf16 %v1117_v12 }
  0x3e   :  { %v1053_v22 = vpack.c.bf16 %v333_v14, %v332_v8  ;;  %v273_v24 = vadd.f32 %v1192_v7, %v202_v16  ;;  %v335_v26 = vmax.f32 %v271_v17, 0.0  ;;  %v204_v28 = vmul.f32 %v913_v19, %v1178_v1 }
  0x3f   :  { %v336_v27 = vmax.f32 %v272_v18, 0.0  ;;  %v274_v29 = vadd.f32 %v1192_v7, %v203_v20  ;;  %v917_v31 = vunpack.c.h.bf16 %v1117_v12  ;;  %v205_v32 = vmul.f32 %v916_v25, %v1178_v1 }
  0x40   :  { %1144 = vst [vmem:[%s1505_s3 + $0xc0] sm:$0xff] %v1053_v22   ;;  %v337_v30 = vmax.f32 %v273_v24, 0.0  ;;  %v920_v33 = vunpack.c.l.bf16 %v1118_v21  ;;  %v1058_v35 = vpack.c.bf16 %v335_v26, %v334_v23  ;;  %v275_v36 = vadd.f32 %v1192_v7, %v204_v28 }
  0x41   :  { %v338_v37 = vmax.f32 %v274_v29, 0.0  ;;  %v921_v38 = vunpack.c.h.bf16 %v1118_v21  ;;  %v206_v41 = vmul.f32 %v917_v31, %v1178_v1  ;;  %v276_v42 = vadd.f32 %v1192_v7, %v205_v32 }
  0x42   :  { %v1063_v40 = vpack.c.bf16 %v337_v30, %v336_v27  ;;  %v207_v43 = vmul.f32 %v920_v33, %v1178_v1  ;;  %1145 = vst [vmem:[%s1505_s3 + $0xc8] sm:$0xff] %v1058_v35   ;;  %v339_v44 = vmax.f32 %v275_v36, 0.0  ;;  %v924_v46 = vunpack.c.l.bf16 %v1119_v34 }
  0x43   :  { %v208_v45 = vmul.f32 %v921_v38, %v1178_v1  ;;  %v925_v47 = vunpack.c.h.bf16 %v1119_v34  ;;  %v277_v48 = vadd.f32 %v1192_v7, %v206_v41  ;;  %v340_v49 = vmax.f32 %v276_v42, 0.0 }
  0x44   :  { %1146 = vst [vmem:[%s1505_s3 + $0xd0] sm:$0xff] %v1063_v40   ;;  %v278_v50 = vadd.f32 %v1192_v7, %v207_v43  ;;  %v928_v51 = vunpack.c.l.bf16 %v1120_v39  ;;  %v1068_v52 = vpack.c.bf16 %v339_v44, %v338_v37  ;;  %v209_v54 = vmul.f32 %v924_v46, %v1178_v1 }
  0x45   :  { %v279_v53 = vadd.f32 %v1192_v7, %v208_v45  ;;  %v210_v55 = vmul.f32 %v925_v47, %v1178_v1  ;;  %v341_v56 = vmax.f32 %v277_v48, 0.0  ;;  %v929_v58 = vunpack.c.h.bf16 %v1120_v39 }
  0x46   :  { %v342_v57 = vmax.f32 %v278_v50, 0.0  ;;  %v211_v59 = vmul.f32 %v928_v51, %v1178_v1  ;;  %1147 = vst [vmem:[%s1505_s3 + $0xd8] sm:$0xff] %v1068_v52   ;;  %v280_v61 = vadd.f32 %v1192_v7, %v209_v54 }
  0x47   :  { %v343_v60 = vmax.f32 %v279_v53, 0.0  ;;  %v281_v62 = vadd.f32 %v1192_v7, %v210_v55  ;;  %v1073_v63 = vpack.c.bf16 %v341_v56, %v340_v49  ;;  %v212_v0 = vmul.f32 %v929_v58, %v1178_v1 }
  0x48   :  { %v282_v2 = vadd.f32 %v1192_v7, %v211_v59  ;;  %v344_v4 = vmax.f32 %v280_v61, 0.0 }
  0x49   :  { %v1078_v3 = vpack.c.bf16 %v343_v60, %v342_v57  ;;  %v345_v5 = vmax.f32 %v281_v62, 0.0  ;;  %1148 = vst [vmem:[%s1505_s3 + $0xe0] sm:$0xff] %v1073_v63   ;;  %v283_v6 = vadd.f32 %v1192_v7, %v212_v0 }
  0x4a   :  { %v346_v8 = vmax.f32 %v282_v2, 0.0 }
  0x4b   :  { %1149 = vst [vmem:[%s1505_s3 + $0xe8] sm:$0xff] %v1078_v3   ;;  %v1083_v9 = vpack.c.bf16 %v345_v5, %v344_v4  ;;  %v347_v10 = vmax.f32 %v283_v6, 0.0 }
  0x4d   :  { %1150 = vst [vmem:[%s1505_s3 + $0xf0] sm:$0xff] %v1083_v9   ;;  %v1088_v1 = vpack.c.bf16 %v347_v10, %v346_v8 }
  0x4f   :  { %1151 = vst [vmem:[%s1505_s3 + $0xf8] sm:$0xff] %v1088_v1  }

// kernel: residual_bottleneck_blk.9
= control target key start
LH: loop header
LB: loop body
LE: loop exit
PB: predicated region body
PF: predicated region fallthrough
CT: control target
= control target key end

     0   :  { %vm421_vm0 = vcmask 1040384   ;;  %s779_s3 = inlined_call_operand.vmem [shape: bf16[128,128], index: 3, kind: input, shape index: {}]   ;;  %s780_s0 = inlined_call_operand.vmem [shape: bf16[128,128], index: 0, kind: input, shape index: {}]   ;;  %s781_s1 = inlined_call_operand.vmem [shape: f32[1,128], index: 1, kind: input, shape index: {}]   ;;  %s782_s2 = inlined_call_operand.vmem [shape: f32[1,128], index: 2, kind: input, shape index: {}]   ;;  %s783_s4 = inlined_call_operand.vmem [shape: bf16[128,128], index: 4, kind: output, shape index: {0}]   ;;  %s784_s5 = inlined_call_operand.vmem [shape: f32[1,2,128], index: 5, kind: output, shape index: {1}]  }
   0x1   :  { %v624_v0 = vld [vmem:[%s779_s3] sm:$0xff]   ;;  %v625_v1 = vld [vmem:[%s779_s3 + $0x8] sm:$0xff]   ;;  %v626_v2 = vld [vmem:[%s779_s3 + $0x10] sm:$0xff]  }
   0x2   :  { %576 = vmatprep.subr.bf16.mxu0 %v624_v0  ;;  %608 = vmatprep.subr.bf16.mxu1 %v624_v0  ;;  %v627_v3 = vld [vmem:[%s779_s3 + $0x18] sm:$0xff]   ;;  %v475_v4 = vld [vmem:[%s780_s0] sm:$0xff]   ;;  %v546_v8 = vld [vmem:[%s780_s0 + $0x8] sm:$0xff]  }
   0x3   :  { %577 = vmatpush3.bf16.msra.mxu0 %v624_v0  ;;  %616 = vmatpush3.bf16.msra.mxu1 %v624_v0  ;;  %v680_v5 = vld [vmem:[%s781_s1] ss:$0 sm:$0xff]  ;;  %v476_v6 = vunpack.c.l.bf16 %v475_v4  ;;  %v477_v7 = vunpack.c.h.bf16 %v475_v4  ;;  %v547_v9 = vld [vmem:[%s780_s0 + $0x10] sm:$0xff]   ;;  %v480_v11 = vunpack.c.l.bf16 %v546_v8  ;;  %v481_v14 = vunpack.c.h.bf16 %v546_v8  ;;  %v548_v22 = vld [vmem:[%s780_s0 + $0x18] sm:$0xff]  }
   0x4   :  { %578 = vmatprep.subr.bf16.mxu0 %v625_v1  ;;  %609 = vmatprep.subr.bf16.mxu1 %v625_v1  ;;  %v691_v10 = vld [vmem:[%s782_s2] ss:$0 sm:$0xff]  ;;  %v484_v17 = vunpack.c.l.bf16 %v547_v9  ;;  %v485_v21 = vunpack.c.h.bf16 %v547_v9  ;;  %v550_v27 = vld [vmem:[%s780_s0 + $0x28] sm:$0xff]   ;;  %v551_v30 = vld [vmem:[%s780_s0 + $0x30] sm:$0xff]   ;;  %v488_v32 = vunpack.c.l.bf16 %v548_v22  ;;  %v489_v33 = vunpack.c.h.bf16 %v548_v22 }
   0x5   :  { %v59_v12 = vmul.f32 %v476_v6, %v680_v5  ;;  %v60_v13 = vmul.f32 %v477_v7, %v680_v5  ;;  %v549_v15 = vld [vmem:[%s780_s0 + $0x20] sm:$0xff]   ;;  %v61_v20 = vmul.f32 %v480_v11, %v680_v5  ;;  %v62_v26 = vmul.f32 %v481_v14, %v680_v5  ;;  %v629_v28 = vld [vmem:[%s779_s3 + $0x28] sm:$0xff]   ;;  %v552_v39 = vld [vmem:[%s780_s0 + $0x38] sm:$0xff]  }
   0x6   :  { %v628_v16 = vld [vmem:[%s779_s3 + $0x20] sm:$0xff]   ;;  %v492_v23 = vunpack.c.l.bf16 %v549_v15  ;;  %v63_v29 = vmul.f32 %v484_v17, %v680_v5  ;;  %v493_v34 = vunpack.c.h.bf16 %v549_v15  ;;  %v64_v36 = vmul.f32 %v485_v21, %v680_v5  ;;  %v630_v44 = vld [vmem:[%s779_s3 + $0x30] sm:$0xff]   ;;  %v631_v61 = vld [vmem:[%s779_s3 + $0x38] sm:$0xff]  }
   0x7   :  { %579 = vmatpush3.bf16.msra.mxu0 %v625_v1  ;;  %617 = vmatpush3.bf16.msra.mxu1 %v625_v1  ;;  %v82_v18 = vadd.f32 %v691_v10, %v59_v12  ;;  %v83_v19 = vadd.f32 %v691_v10, %v60_v13  ;;  %v84_v35 = vadd.f32 %v691_v10, %v61_v20  ;;  %v496_v38 = vunpack.c.l.bf16 %v550_v27 }
   0x8   :  { %580 = vmatprep.subr.bf16.mxu0 %v626_v2  ;;  %610 = vmatprep.subr.bf16.mxu1 %v626_v2  ;;  %v67_v37 = vmul.f32 %v492_v23, %v680_v5  ;;  %v85_v40 = vadd.f32 %v691_v10, %v62_v26  ;;  %v68_v41 = vmul.f32 %v493_v34, %v680_v5  ;;  %v497_v42 = vunpack.c.h.bf16 %v550_v27 }
   0x9   :  { %v98_v24 = vmax.f32 %v82_v18, 0.0  ;;  %v99_v25 = vmax.f32 %v83_v19, 0.0  ;;  %v500_v43 = vunpack.c.l.bf16 %v551_v30  ;;  %v86_v45 = vadd.f32 %v691_v10, %v63_v29 }
   0xa   :  { %v90_v46 = vadd.f32 %v691_v10, %v67_v37  ;;  %v69_v47 = vmul.f32 %v496_v38, %v680_v5  ;;  %v501_v48 = vunpack.c.h.bf16 %v551_v30  ;;  %v91_v49 = vadd.f32 %v691_v10, %v68_v41 }
   0xb   :  { %581 = vmatpush3.bf16.msra.mxu0 %v626_v2  ;;  %618 = vmatpush3.bf16.msra.mxu1 %v626_v2  ;;  %v114_v31 = vpack.c.bf16 %v99_v25, %v98_v24  ;;  %v70_v50 = vmul.f32 %v497_v42, %v680_v5  ;;  %v71_v51 = vmul.f32 %v500_v43, %v680_v5  ;;  %v504_v52 = vunpack.c.l.bf16 %v552_v39 }
   0xc   :  { %582 = vmatprep.subr.bf16.mxu0 %v627_v3  ;;  %611 = vmatprep.subr.bf16.mxu1 %v627_v3  ;;  %v106_v53 = vmax.f32 %v90_v46, 0.0  ;;  %v92_v54 = vadd.f32 %v691_v10, %v69_v47  ;;  %v72_v55 = vmul.f32 %v501_v48, %v680_v5  ;;  %v505_v56 = vunpack.c.h.bf16 %v552_v39 }
   0xd   :  { %592 = vmatprep.mubr.bf16.mxu0 %v114_v31  ;;  %v87_v57 = vadd.f32 %v691_v10, %v64_v36  ;;  %v107_v58 = vmax.f32 %v91_v49, 0.0  ;;  %v93_v59 = vadd.f32 %v691_v10, %v70_v50  ;;  %v94_v60 = vadd.f32 %v691_v10, %v71_v51 }
   0xe   :  { %v65_v62 = vmul.f32 %v488_v32, %v680_v5  ;;  %v95_v63 = vadd.f32 %v691_v10, %v72_v55  ;;  %v100_v0 = vmax.f32 %v84_v35, 0.0  ;;  %v101_v1 = vmax.f32 %v85_v40, 0.0 }
   0xf   :  { %583 = vmatpush3.bf16.msra.mxu0 %v627_v3  ;;  %619 = vmatpush3.bf16.msra.mxu1 %v627_v3  ;;  %v66_v2 = vmul.f32 %v489_v33, %v680_v5  ;;  %v118_v3 = vpack.c.bf16 %v107_v58, %v106_v53  ;;  %v108_v4 = vmax.f32 %v92_v54, 0.0  ;;  %v109_v6 = vmax.f32 %v93_v59, 0.0 }
  0x10   :  { %584 = vmatprep.subr.bf16.mxu0 %v628_v16  ;;  %612 = vmatprep.subr.bf16.mxu1 %v628_v16  ;;  %v73_v7 = vmul.f32 %v504_v52, %v680_v5  ;;  %v74_v8 = vmul.f32 %v505_v56, %v680_v5  ;;  %v102_v9 = vmax.f32 %v86_v45, 0.0  ;;  %v103_v11 = vmax.f32 %v87_v57, 0.0 }
  0x11   :  { %v110_v12 = vmax.f32 %v94_v60, 0.0  ;;  %v111_v13 = vmax.f32 %v95_v63, 0.0  ;;  %v88_v14 = vadd.f32 %v691_v10, %v65_v62  ;;  %v89_v15 = vadd.f32 %v691_v10, %v66_v2  ;;  %600 = vmatprep.mubr.bf16.mxu1 %v118_v3 }
  0x12   :  { %v119_v17 = vpack.c.bf16 %v109_v6, %v108_v4  ;;  %v96_v18 = vadd.f32 %v691_v10, %v73_v7  ;;  %v97_v19 = vadd.f32 %v691_v10, %v74_v8  ;;  %v116_v5 = vpack.c.bf16 %v103_v11, %v102_v9 }
  0x13   :  { %585 = vmatpush3.bf16.msra.mxu0 %v628_v16  ;;  %620 = vmatpush3.bf16.msra.mxu1 %v628_v16  ;;  %v115_v16 = vpack.c.bf16 %v101_v1, %v100_v0  ;;  %v120_v20 = vpack.c.bf16 %v111_v13, %v110_v12  ;;  %v104_v21 = vmax.f32 %v88_v14, 0.0  ;;  %v105_v22 = vmax.f32 %v89_v15, 0.0 }
  0x14   :  { %586 = vmatprep.subr.bf16.mxu0 %v629_v28  ;;  %613 = vmatprep.subr.bf16.mxu1 %v629_v28  ;;  %v112_v23 = vmax.f32 %v96_v18, 0.0  ;;  %v113_v24 = vmax.f32 %v97_v19, 0.0 }
  0x15   :  { %v117_v25 = vpack.c.bf16 %v105_v22, %v104_v21 }
  0x16   :  { %v121_v26 = vpack.c.bf16 %v113_v24, %v112_v23 }
  0x17   :  { %587 = vmatpush3.bf16.msra.mxu0 %v629_v28  ;;  %621 = vmatpush3.bf16.msra.mxu1 %v629_v28 }
  0x18   :  { %588 = vmatprep.subr.bf16.mxu0 %v630_v44  ;;  %614 = vmatprep.subr.bf16.mxu1 %v630_v44 }
  0x1b   :  { %589 = vmatpush3.bf16.msra.mxu0 %v630_v44  ;;  %622 = vmatpush3.bf16.msra.mxu1 %v630_v44 }
  0x1c   :  { %590 = vmatprep.subr.bf16.mxu0 %v631_v61  ;;  %615 = vmatprep.subr.bf16.mxu1 %v631_v61 }
  0x1f   :  { %591 = vmatpush3.bf16.msra.mxu0 %v631_v61  ;;  %623 = vmatpush3.bf16.msra.mxu1 %v631_v61 }
  0x22   :  { %593 = vmatmul.mubr.bf16.vlgmr.msra.gmra.mrb[0].mxu0 %v115_v16  ;;  %601 = vmatmul.mubr.bf16.vlgmr.msra.gmra.mrb[0].mxu1 %v119_v17 }
  0x23   :  { %596 = vmatprep.mubr.bf16.mxu0 %v116_v5  ;;  %604 = vmatprep.mubr.bf16.mxu1 %v120_v20 }
  0x2a   :  { %597 = vmatmul.mubr.bf16.gmra.mrb[4].mxu0 %v117_v25  ;;  %605 = vmatmul.mubr.bf16.gmra.mrb[4].mxu1 %v121_v26 }
  0xf5   :  { %v594_v27 = vpop.f32.mrb[0].mxu0  ;;  %v602_v28 = vpop.f32.mrb[0].mxu1 }
  0xf6   :  { %v220_v29 = vpop.f32.mrb[1].mxu0  ;;  %v252_v10 = vpop.f32.mrb[1].mxu1  ;;  %v386_v41 = vmul.f32 %v594_v27, %v594_v27  ;;  %v394_v15 = vmul.f32 %v602_v28, %v602_v28 }
  0xf7   :  { %v595_v30 = vpop.f32.mrb[2].mxu0  ;;  %v603_v31 = vpop.f32.mrb[2].mxu1  ;;  %v384_v32 = vmul.f32 %v220_v29, %v220_v29  ;;  %v392_v8 = vmul.f32 %v252_v10, %v252_v10 }
  0xf8   :  { %v514_v33 = vpack.c.bf16 %v595_v30, %v594_v27  ;;  %v223_v34 = vpop.f32.mrb[3].mxu0  ;;  %v534_v35 = vpack.c.bf16 %v603_v31, %v602_v28  ;;  %v255_v36 = vpop.f32.mrb[3].mxu1  ;;  %v387_v44 = vmul.f32 %v595_v30, %v595_v30  ;;  %v395_v18 = vmul.f32 %v603_v31, %v603_v31 }
  0xf9   :  { %v509_v37 = vpack.c.bf16 %v223_v34, %v220_v29  ;;  %v363_v38 = vadd.f32 %v223_v34, %v220_v29  ;;  %v385_v39 = vmul.f32 %v223_v34, %v223_v34  ;;  %v529_v40 = vpack.c.bf16 %v255_v36, %v252_v10 }
  0xfa   :  { %553 = vst [vmem:[%s783_s4 + $0x8] sm:$0xff] %v514_v33   ;;  %557 = vst [vmem:[%s783_s4 + $0x28] sm:$0xff] %v534_v35   ;;  %v393_v14 = vmul.f32 %v255_v36, %v255_v36 }
  0xfb   :  { %510 = vst [vmem:[%s783_s4] sm:$0xff] %v509_v37   ;;  %v364_v42 = vadd.f32 %v594_v27, %v363_v38  ;;  %v400_v43 = vadd.f32 %v385_v39, %v384_v32  ;;  %556 = vst [vmem:[%s783_s4 + $0x20] sm:$0xff] %v529_v40  }
  0xfd   :  { %v401_v45 = vadd.f32 %v400_v43, %v386_v41  ;;  %v598_v46 = vpop.f32.mrb[4].mxu0  ;;  %v365_v47 = vadd.f32 %v595_v30, %v364_v42  ;;  %v606_v48 = vpop.f32.mrb[4].mxu1 }
  0xfe   :  { %v236_v49 = vpop.f32.mrb[5].mxu0  ;;  %v268_v50 = vpop.f32.mrb[5].mxu1  ;;  %v390_v1 = vmul.f32 %v598_v46, %v598_v46  ;;  %v398_v26 = vmul.f32 %v606_v48, %v606_v48 }
  0xff   :  { %v366_v51 = vadd.f32 %v365_v47, %v236_v49  ;;  %v388_v52 = vmul.f32 %v236_v49, %v236_v49  ;;  %v402_v53 = vadd.f32 %v401_v45, %v387_v44  ;;  %v599_v54 = vpop.f32.mrb[6].mxu0  ;;  %v607_v55 = vpop.f32.mrb[6].mxu1  ;;  %v396_v20 = vmul.f32 %v268_v50, %v268_v50 }
 0x100   :  { %v524_v56 = vpack.c.bf16 %v599_v54, %v598_v46  ;;  %v239_v57 = vpop.f32.mrb[7].mxu0  ;;  %v544_v58 = vpack.c.bf16 %v607_v55, %v606_v48  ;;  %v271_v59 = vpop.f32.mrb[7].mxu1  ;;  %v391_v4 = vmul.f32 %v599_v54, %v599_v54 }
 0x101   :  { %v403_v60 = vadd.f32 %v402_v53, %v388_v52  ;;  %v519_v61 = vpack.c.bf16 %v239_v57, %v236_v49  ;;  %v367_v62 = vadd.f32 %v366_v51, %v239_v57  ;;  %v389_v63 = vmul.f32 %v239_v57, %v239_v57 }
 0x102   :  { %555 = vst [vmem:[%s783_s4 + $0x18] sm:$0xff] %v524_v56   ;;  %559 = vst [vmem:[%s783_s4 + $0x38] sm:$0xff] %v544_v58   ;;  %v539_v0 = vpack.c.bf16 %v271_v59, %v268_v50  ;;  %v397_v25 = vmul.f32 %v271_v59, %v271_v59 }
 0x103   :  { %554 = vst [vmem:[%s783_s4 + $0x10] sm:$0xff] %v519_v61   ;;  %v368_v2 = vadd.f32 %v598_v46, %v367_v62  ;;  %v404_v3 = vadd.f32 %v403_v60, %v389_v63 }
 0x104   :  { %558 = vst [vmem:[%s783_s4 + $0x30] sm:$0xff] %v539_v0  }
 0x105   :  { %v405_v6 = vadd.f32 %v404_v3, %v390_v1  ;;  %v369_v7 = vadd.f32 %v599_v54, %v368_v2 }
 0x107   :  { %v370_v9 = vadd.f32 %v369_v7, %v252_v10  ;;  %v406_v11 = vadd.f32 %v405_v6, %v391_v4  ;;  %v399_v10 = vmul.f32 %v607_v55, %v607_v55 }
 0x109   :  { %v407_v12 = vadd.f32 %v406_v11, %v392_v8  ;;  %v371_v13 = vadd.f32 %v370_v9, %v255_v36 }
 0x10b   :  { %v372_v16 = vadd.f32 %v602_v28, %v371_v13  ;;  %v408_v17 = vadd.f32 %v407_v12, %v393_v14 }
 0x10d   :  { %v409_v19 = vadd.f32 %v408_v17, %v394_v15  ;;  %v373_v5 = vadd.f32 %v603_v31, %v372_v16 }
 0x10f   :  { %v374_v21 = vadd.f32 %v373_v5, %v268_v50  ;;  %v410_v22 = vadd.f32 %v409_v19, %v395_v18 }
 0x111   :  { %v411_v23 = vadd.f32 %v410_v22, %v396_v20  ;;  %v375_v24 = vadd.f32 %v374_v21, %v271_v59 }
 0x113   :  { %v376_v27 = vadd.f32 %v606_v48, %v375_v24  ;;  %v412_v29 = vadd.f32 %v411_v23, %v397_v25 }
 0x115   :  { %v377_v30 = vadd.f32 %v607_v55, %v376_v27  ;;  %v413_v32 = vadd.f32 %v412_v29, %v398_v26 }
 0x117   :  { %v378_v33 = vrot.slane %v377_v30, 4  ;;  %v414_v34 = vadd.f32 %v413_v32, %v399_v10 }
 0x119   :  { %v379_v35 = vadd.f32 %v378_v33, %v377_v30  ;;  %v415_v28 = vrot.slane %v414_v34, 4 }
 0x11b   :  { %v380_v36 = vrot.slane %v379_v35, 2  ;;  %v416_v37 = vadd.f32 %v415_v28, %v414_v34 }
 0x11d   :  { %v381_v38 = vadd.f32 %v380_v36, %v379_v35  ;;  %v417_v31 = vrot.slane %v416_v37, 2 }
 0x11f   :  { %v382_v39 = vrot.slane %v381_v38, 1  ;;  %v418_v40 = vadd.f32 %v417_v31, %v416_v37 }
 0x121   :  { %v419_v41 = vrot.slane %v418_v40, 1  ;;  %v383_v42 = vadd.f32 %v382_v39, %v381_v38 }
 0x123   :  { %v420_v43 = vadd.f32 %v419_v41, %v418_v40 }
 0x125   :  { %v422_v44 = vsel %vm421_vm0, %v383_v42, %v420_v43 }
 0x126   :  { %423 = vst [vmem:[%s784_s5] sm:$0x3] %v422_v44 }

// kernel: residual_bottleneck_blk.8
= control target key start
LH: loop header
LB: loop body
LE: loop exit
PB: predicated region body
PF: predicated region fallthrough
CT: control target
= control target key end

     0   :  { %s2593_s12 = smov 0   ;;  %s2595_s13 = smov 0   ;;  %s3119_s0 = inlined_call_operand.vmem [shape: bf16[2,1,17,18,128], index: 0, kind: input, shape index: {}]   ;;  %s3120_s1 = inlined_call_operand.vmem [shape: bf16[3,384,128], index: 1, kind: input, shape index: {}]   ;;  %s3121_s2 = inlined_call_operand.vmem [shape: bf16[2,1,64,128], index: 2, kind: output, shape index: {0}]   ;;  %s3122_s3 = inlined_call_operand.vmem [shape: f32[2,1,2,128], index: 3, kind: output, shape index: {1}]  }
   0x1   :  { %s2597_s14 = smov 0  }
   0x2 LB: > { %s26_s15 = sadd.s32 1, %s2567_s13  ;;  %p2017_p0 = scmp.ge.s32.totalorder %s2571_s14, 1  ;;  %s2571_s14 = sphi %s2597_s14, %s14_s14   ;;  %s2567_s13 = sphi %s2595_s13, %s3126_s13   ;;  %s2563_s12 = sphi %s2593_s12, %s3125_s12  }
   0x3   : > { %p28_p1 = scmp.ge.s32.totalorder %s26_s15, 2  ;;  %p162_p2 = scmp.lt.s32.totalorder %s2571_s14, 3 }
   0x5   : > { %s3128_s15 = smov (%p28_p1, %s26_s15), 0  ;;  %p163_p3 = pnand %p2017_p0, %p162_p2 }
   0x6   : > { %v2465_v0 = vld [vmem:[%s3120_s1 + $0x100] sm:$0xff] (!%p163_p3)   ;;  %v2468_v3 = vld [vmem:[%s3120_s1 + $0x108] sm:$0xff] (!%p163_p3)   ;;  %v2471_v6 = vld [vmem:[%s3120_s1 + $0x110] sm:$0xff] (!%p163_p3)   ;;  %p201_p4 = scmp.lt.s32.totalorder (!%p163_p3), %s2563_s12, 1  ;;  %vm422_vm0 = vsmask.f32 (!%p163_p3), 3328 }
   0x7   : > { %166 = sbr.rel (%p163_p3) target bundleno = 373 (0x175), region = 28  ;;  %v2466_v1 = vld [vmem:[%s3120_s1 + $0x140] sm:$0xff] (!%p163_p3)   ;;  %2172 = vmatprep.subr.bf16.mxu0 (!%p163_p3), %v2465_v0  ;;  %v2469_v4 = vld [vmem:[%s3120_s1 + $0x148] sm:$0xff] (!%p163_p3)   ;;  %v2472_v7 = vld [vmem:[%s3120_s1 + $0x150] sm:$0xff] (!%p163_p3)   ;;  %vm423_vm1 = vsmask.f32 (!%p163_p3), 7440 }
   0x8   : > { %v2467_v2 = vld [vmem:[%s3120_s1 + $0xc0] sm:$0xff] (!%p163_p3)   ;;  %2328 = vmatprep.subr.bf16.mxu1 (!%p163_p3), %v2466_v1  ;;  %v2470_v5 = vld [vmem:[%s3120_s1 + $0xc8] sm:$0xff] (!%p163_p3)   ;;  %v2473_v8 = vld [vmem:[%s3120_s1 + $0xd0] sm:$0xff] (!%p163_p3)   ;;  %vm1877_vm3 = vcmask (!%p163_p3), 1040384  }
   0x9   : > { %2173 = vmatpush3.bf16.msra.mxu0 (!%p163_p3), %v2467_v2  ;;  %2329 = vmatpush3.bf16.msra.mxu1 (!%p163_p3), %v2466_v1  ;;  %v2474_v9 = vld [vmem:[%s3120_s1 + $0x118] sm:$0xff] (!%p163_p3)   ;;  %v2477_v12 = vld [vmem:[%s3120_s1 + $0x120] sm:$0xff] (!%p163_p3)   ;;  %v2480_v15 = vld [vmem:[%s3120_s1 + $0x128] sm:$0xff] (!%p163_p3)  }
   0xa   : > { %2174 = vmatprep.subr.bf16.mxu0 (!%p163_p3), %v2468_v3  ;;  %2330 = vmatprep.subr.bf16.mxu1 (!%p163_p3), %v2469_v4  ;;  %v2475_v10 = vld [vmem:[%s3120_s1 + $0x158] sm:$0xff] (!%p163_p3)   ;;  %v2478_v13 = vld [vmem:[%s3120_s1 + $0x160] sm:$0xff] (!%p163_p3)   ;;  %v2481_v16 = vld [vmem:[%s3120_s1 + $0x168] sm:$0xff] (!%p163_p3)  }
   0xb   : > { %v2476_v11 = vld [vmem:[%s3120_s1 + $0xd8] sm:$0xff] (!%p163_p3)   ;;  %v2479_v14 = vld [vmem:[%s3120_s1 + $0xe0] sm:$0xff] (!%p163_p3)   ;;  %v2482_v17 = vld [vmem:[%s3120_s1 + $0xe8] sm:$0xff] (!%p163_p3)  }
   0xc   : > { %v2483_v18 = vld [vmem:[%s3120_s1 + $0x130] sm:$0xff] (!%p163_p3)   ;;  %v2486_v21 = vld [vmem:[%s3120_s1 + $0x138] sm:$0xff] (!%p163_p3)   ;;  %v2490_v45 = vld [vmem:[%s3120_s1 + $0x40] sm:$0xff] (!%p163_p3)  }
   0xd   : > { %2175 = vmatpush3.bf16.msra.mxu0 (!%p163_p3), %v2470_v5  ;;  %2331 = vmatpush3.bf16.msra.mxu1 (!%p163_p3), %v2469_v4  ;;  %v2484_v19 = vld [vmem:[%s3120_s1 + $0x170] sm:$0xff] (!%p163_p3)   ;;  %v2487_v22 = vld [vmem:[%s3120_s1 + $0x178] sm:$0xff] (!%p163_p3)   ;;  %vm2706_vm2 = vmor (!%p163_p3), %vm422_vm0, %vm423_vm1 }
   0xe   : > { %2176 = vmatprep.subr.bf16.mxu0 %v2471_v6  ;;  %2332 = vmatprep.subr.bf16.mxu1 %v2472_v7  ;;  %s3130_s12 = smov (!%p201_p4, %s2563_s12), 1  ;;  %v2485_v20 = vld [vmem:[%s3120_s1 + $0xf0] sm:$0xff]   ;;  %v2488_v27 = vld [vmem:[%s3120_s1 + $0xf8] sm:$0xff]   ;;  %v2713_v51 = vld [vmem:[%s3120_s1 + $0x80] sm:$0xff]  }
   0xf   : > { %s2440_s27 = smul.u32 204, %s3130_s12  ;;  %s2021_s6 = sshll.u32 %s3130_s12, 1 }
  0x10   : > { %s225_s10 = scalar_lea.vmem %s3122_s3, %s2021_s6 }
  0x11   : > { %2177 = vmatpush3.bf16.msra.mxu0 %v2473_v8  ;;  %2333 = vmatpush3.bf16.msra.mxu1 %v2472_v7  ;;  %s2681_s9 = scalar_lea.vmem %s3119_s0, %s2440_s27 }
  0x12   : > { %2178 = vmatprep.subr.bf16.mxu0 %v2474_v9  ;;  %2334 = vmatprep.subr.bf16.mxu1 %v2475_v10  ;;  %v255_v23 = vld [vmem:[%s2681_s9 + $0x70] sm:$0xf]  ;;  %v256_v24 = vld [vmem:[%s2681_s9 + $0x74] sm:$0x1]  ;;  %v258_v25 = vld [vmem:[%s2681_s9 + $0x7c] sm:$0xf] }
  0x13   : > { %v259_v26 = vld [vmem:[%s2681_s9 + $0x80] sm:$0x1]  ;;  %v674_v28 = vshrl.u32 %v255_v23, 16  ;;  %v677_v29 = vshll.u32 %v255_v23, 16  ;;  %v683_v30 = vshll.u32 %v256_v24, 16  ;;  %v688_v31 = vshrl.u32 %v258_v25, 16 }
  0x14   : > { %v254_v32 = vld [vmem:[%s2681_s9 + $0x6c] sm:$0xf]  ;;  %v691_v33 = vshll.u32 %v258_v25, 16  ;;  %v697_v34 = vshll.u32 %v259_v26, 16  ;;  %v257_v35 = vld [vmem:[%s2681_s9 + $0x78] sm:$0xf] }
  0x15   : > { %2179 = vmatpush3.bf16.msra.mxu0 %v2476_v11  ;;  %2335 = vmatpush3.bf16.msra.mxu1 %v2475_v10  ;;  %v786_v36 = vshrl.u32 %v254_v32, 16  ;;  %v789_v37 = vshll.u32 %v254_v32, 16  ;;  %v676_v38 = vrot.slane %v674_v28, 4  ;;  %v679_v39 = vrot.slane %v677_v29, 5  ;;  %v2716_v53 = vld [vmem:[%s2681_s9 + $0x84] sm:$0xf] }
  0x16   : > { %2180 = vmatprep.subr.bf16.mxu0 %v2477_v12  ;;  %2336 = vmatprep.subr.bf16.mxu1 %v2478_v13  ;;  %v685_v40 = vrot.slane %v683_v30, 5  ;;  %v690_v41 = vrot.slane %v688_v31, 4  ;;  %v693_v42 = vrot.slane %v691_v33, 5  ;;  %v699_v43 = vrot.slane %v697_v34, 5  ;;  %v261_v54 = vld [vmem:[%s2681_s9 + $0x88] sm:$0xf] }
  0x17   : > { %v788_v44 = vrot.slane %v786_v36, 4  ;;  %v680_v47 = vor.u32 %v679_v39, %v676_v38  ;;  %v791_v48 = vrot.slane %v789_v37, 5  ;;  %v796_v49 = vshrl.u32 %v257_v35, 16  ;;  %v2720_v59 = vld [vmem:[%s2681_s9 + $0x90] sm:$0xf]  ;;  %v2492_v9 = vld [vmem:[%s3120_s1] sm:$0xff]  }
  0x18   : > { %v799_v50 = vshll.u32 %v257_v35, 16  ;;  %v694_v52 = vor.u32 %v693_v42, %v690_v41  ;;  %v2034_v61 = vcombine.low %v254_v32, %v257_v35  ;;  %v264_v62 = vld [vmem:[%s2681_s9 + $0x94] sm:$0xf]  ;;  %v705_v63 = vshll.u32 %v261_v54, 16  ;;  %v262_v24 = vld [vmem:[%s2681_s9 + $0x8c] sm:$0x1] }
  0x19   : > { %2181 = vmatpush3.bf16.msra.mxu0 %v2479_v14  ;;  %2337 = vmatpush3.bf16.msra.mxu1 %v2478_v13  ;;  %v681_v55 = vrot.slane %v680_v47, 4  ;;  %v792_v56 = vor.u32 %v791_v48, %v788_v44  ;;  %v798_v57 = vrot.slane %v796_v49, 4  ;;  %v806_v0 = vshrl.u32 %v2716_v53, 16  ;;  %v265_v25 = vld [vmem:[%s2681_s9 + $0x98] sm:$0x1]  ;;  %v2497_v33 = vld [vmem:[%s3120_s1 + $0x50] sm:$0xff]  }
  0x1a   : > { %2182 = vmatprep.subr.bf16.mxu0 %v2480_v15  ;;  %2338 = vmatprep.subr.bf16.mxu1 %v2481_v16  ;;  %v801_v58 = vrot.slane %v799_v50, 5  ;;  %v695_v60 = vrot.slane %v694_v52, 4  ;;  %v702_v4 = vshrl.u32 %v261_v54, 16  ;;  %v716_v6 = vshrl.u32 %v264_v62, 16  ;;  %v2500_v47 = vld [vmem:[%s3120_s1 + $0x58] sm:$0xff]  }
  0x1b   : > { %v686_v1 = vsel %vm2706_vm2, %v681_v55, %v685_v40  ;;  %v793_v2 = vrot.slane %v792_v56, 4  ;;  %v719_v7 = vshll.u32 %v264_v62, 16  ;;  %v808_v8 = vrot.slane %v806_v0, 4  ;;  %v2499_v40 = vld [vmem:[%s3120_s1 + $0x10] sm:$0xff]   ;;  %v2502_v54 = vld [vmem:[%s3120_s1 + $0x18] sm:$0xff]  }
  0x1c   : > { %v802_v3 = vor.u32 %v801_v58, %v798_v57  ;;  %v700_v5 = vsel %vm2706_vm2, %v695_v60, %v699_v43  ;;  %v809_v13 = vshll.u32 %v2716_v53, 16  ;;  %v707_v14 = vrot.slane %v705_v63, 5  ;;  %v267_v56 = vld [vmem:[%s2681_s9 + $0xa0] sm:$0xf]  ;;  %v268_v57 = vld [vmem:[%s2681_s9 + $0xa4] sm:$0x1] }
  0x1d   : > { %2183 = vmatpush3.bf16.msra.mxu0 %v2482_v17  ;;  %2339 = vmatpush3.bf16.msra.mxu1 %v2481_v16  ;;  %v2038_v10 = vcombine.low %v686_v1, %v700_v5  ;;  %v794_v11 = vsel %vm2706_vm2, %v793_v2, %v679_v39  ;;  %v816_v15 = vshrl.u32 %v2720_v59, 16  ;;  %v819_v16 = vshll.u32 %v2720_v59, 16  ;;  %v2493_v17 = vld [vmem:[%s3120_s1 + $0x48] sm:$0xff]   ;;  %v271_v60 = vld [vmem:[%s2681_s9 + $0xb0] sm:$0x1] }
  0x1e   : > { %2184 = vmatprep.subr.bf16.mxu0 %v2483_v18  ;;  %2340 = vmatprep.subr.bf16.mxu1 %v2484_v19  ;;  %v803_v12 = vrot.slane %v802_v3, 4  ;;  %v704_v28 = vrot.slane %v702_v4, 4  ;;  %v711_v29 = vshll.u32 %v262_v24, 16  ;;  %v718_v30 = vrot.slane %v716_v6, 4  ;;  %v270_v58 = vld [vmem:[%s2681_s9 + $0xac] sm:$0xf] }
  0x1f   : > { %1097 = vmatprep.mubr.bf16.mxu0 %v2038_v10  ;;  %v821_v23 = vrot.slane %v819_v16, 5  ;;  %v725_v32 = vshll.u32 %v265_v25, 16  ;;  %v2035_v52 = vcombine.low %v2716_v53, %v2720_v59  ;;  %v733_v62 = vshll.u32 %v267_v56, 16  ;;  %v266_v1 = vld [vmem:[%s2681_s9 + $0x9c] sm:$0xf]  ;;  %v2498_v3 = vld [vmem:[%s3120_s1 + $0x90] sm:$0xff]  }
  0x20   : > { %v804_v18 = vsel %vm2706_vm2, %v803_v12, %v693_v42  ;;  %v708_v35 = vor.u32 %v707_v14, %v704_v28  ;;  %v713_v36 = vrot.slane %v711_v29, 5  ;;  %v2494_v42 = vld [vmem:[%s3120_s1 + $0x88] sm:$0xff]   ;;  %v739_v63 = vshll.u32 %v268_v57, 16 }
  0x21   : > { %2185 = vmatpush3.bf16.msra.mxu0 %v2485_v20  ;;  %2341 = vmatpush3.bf16.msra.mxu1 %v2484_v19  ;;  %v721_v19 = vrot.slane %v719_v7, 5  ;;  %v811_v20 = vrot.slane %v809_v13, 5  ;;  %v727_v39 = vrot.slane %v725_v32, 5  ;;  %v744_v0 = vshrl.u32 %v270_v58, 16  ;;  %v269_v2 = vld [vmem:[%s2681_s9 + $0xa8] sm:$0xf] }
  0x22   : > { %2186 = vmatprep.subr.bf16.mxu0 %v2486_v21  ;;  %2342 = vmatprep.subr.bf16.mxu1 %v2487_v22  ;;  %v2042_v21 = vcombine.low %v794_v11, %v804_v18  ;;  %v709_v43 = vrot.slane %v708_v35, 4  ;;  %v747_v53 = vshll.u32 %v270_v58, 16  ;;  %v753_v59 = vshll.u32 %v271_v60, 16  ;;  %v2501_v18 = vld [vmem:[%s3120_s1 + $0x98] sm:$0xff]   ;;  %v276_v35 = vld [vmem:[%s2681_s9 + $0xc4] sm:$0xf] }
  0x23   : > { %v812_v26 = vor.u32 %v811_v20, %v808_v8  ;;  %v722_v37 = vor.u32 %v721_v19, %v718_v30  ;;  %v2782_v5 = vrot.slane %v733_v62, 5  ;;  %v746_v6 = vrot.slane %v744_v0, 4  ;;  %v2506_v20 = vld [vmem:[%s3120_s1 + $0x20] sm:$0xff]   ;;  %v2509_v30 = vld [vmem:[%s3120_s1 + $0x28] sm:$0xff]  }
  0x24   : > { %2344 = vmatprep.mubr.bf16.mxu1 %v2042_v21  ;;  %v714_v49 = vsel %vm2706_vm2, %v709_v43, %v713_v36  ;;  %v741_v7 = vrot.slane %v739_v63, 5  ;;  %v2784_v8 = vrot.slane %v747_v53, 5  ;;  %v755_v11 = vrot.slane %v753_v59, 5  ;;  %v277_v36 = vld [vmem:[%s2681_s9 + $0xc8] sm:$0x1]  ;;  %v2511_v63 = vld [vmem:[%s3120_s1 + $0x70] sm:$0xff]  }
  0x25   : > { %2187 = vmatpush3.bf16.msra.mxu0 %v2488_v27  ;;  %2343 = vmatpush3.bf16.msra.mxu1 %v2487_v22  ;;  %v818_v22 = vrot.slane %v816_v15, 4  ;;  %v2495_v27 = vld [vmem:[%s3120_s1 + $0x8] sm:$0xff]   ;;  %v813_v34 = vrot.slane %v812_v26, 4  ;;  %v723_v44 = vrot.slane %v722_v37, 4  ;;  %v836_v12 = vshrl.u32 %v269_v2, 16 }
  0x26   : > { %2224 = vmatprep.subr.bf16.mxu0 %v2490_v45  ;;  %2352 = vmatprep.subr.bf16.mxu1 %v2713_v51  ;;  %v839_v13 = vshll.u32 %v269_v2, 16  ;;  %v750_v15 = vor.u32 %v2784_v8, %v746_v6  ;;  %v2036_v29 = vcombine.low %v266_v1, %v269_v2  ;;  %v2815_v43 = vld [vmem:[%s2681_s9 + $0xb4] sm:$0xf]  ;;  %v2514_v6 = vld [vmem:[%s3120_s1 + $0x78] sm:$0xff]  }
  0x27   : > { %v822_v31 = vor.u32 %v821_v23, %v818_v22  ;;  %v814_v41 = vsel %vm2706_vm2, %v813_v34, %v707_v14  ;;  %v728_v50 = vsel %vm2706_vm2, %v723_v44, %v727_v39  ;;  %v2504_v14 = vld [vmem:[%s3120_s1 + $0x60] sm:$0xff]   ;;  %v2507_v22 = vld [vmem:[%s3120_s1 + $0x68] sm:$0xff]   ;;  %v838_v25 = vrot.slane %v836_v12, 4  ;;  %v274_v34 = vld [vmem:[%s2681_s9 + $0xbc] sm:$0x1] }
  0x28   : > { %1098 = vmatmul.mubr.bf16.vlgmr.msra.gmra.mrb[0].mxu0 %v2034_v61  ;;  %v2039_v55 = vcombine.low %v714_v49, %v728_v50  ;;  %v730_v61 = vshrl.u32 %v267_v56, 16  ;;  %v751_v21 = vrot.slane %v750_v15, 4  ;;  %v841_v26 = vrot.slane %v839_v13, 5  ;;  %v2818_v44 = vld [vmem:[%s2681_s9 + $0xc0] sm:$0xf]  ;;  %v2513_v2 = vld [vmem:[%s3120_s1 + $0x30] sm:$0xff]  }
  0x29   : > { %2225 = vmatpush3.bf16.msra.mxu0 %v2492_v9  ;;  %v823_v38 = vrot.slane %v822_v31, 4  ;;  %v829_v9 = vshll.u32 %v266_v1, 16  ;;  %v767_v39 = vshll.u32 %v274_v34, 16  ;;  %v846_v56 = vshrl.u32 %v2815_v43, 16 }
  0x2a   : > { %2226 = vmatprep.subr.bf16.mxu0 %v2493_v17  ;;  %1105 = vmatprep.mubr.bf16.mxu0 %v2039_v55  ;;  %v732_v4 = vrot.slane %v730_v61, 4  ;;  %v756_v28 = vsel %vm2706_vm2, %v751_v21, %v755_v11  ;;  %v849_v57 = vshll.u32 %v2815_v43, 16  ;;  %v856_v61 = vshrl.u32 %v2818_v44, 16  ;;  %v229_v21 = vld [vmem:[%s2681_s9 + $0x8] sm:$0x1] }
  0x2b   : > { %v824_v45 = vsel %vm2706_vm2, %v823_v38, %v721_v19  ;;  %v831_v17 = vrot.slane %v829_v9, 5  ;;  %v859_v62 = vshll.u32 %v2818_v44, 16  ;;  %v848_v53 = vrot.slane %v846_v56, 4  ;;  %v2512_v9 = vld [vmem:[%s3120_s1 + $0xb0] sm:$0xff]   ;;  %v2881_v56 = vld [vmem:[%s2681_s9 + $0x18] sm:$0xf] }
  0x2c   : > { %v2043_v48 = vcombine.low %v814_v41, %v824_v45  ;;  %v736_v10 = vor.u32 %v2782_v5, %v732_v4  ;;  %v775_v41 = vshll.u32 %v276_v35, 16  ;;  %v842_v45 = vor.u32 %v841_v26, %v838_v25  ;;  %v232_v25 = vld [vmem:[%s2681_s9 + $0x14] sm:$0x1] }
  0x2d   : > { %2227 = vmatpush3.bf16.msra.mxu0 %v2495_v27  ;;  %v2505_v27 = vld [vmem:[%s3120_s1 + $0xa0] sm:$0xff]   ;;  %v851_v59 = vrot.slane %v849_v57, 5  ;;  %v858_v4 = vrot.slane %v856_v61, 4  ;;  %v234_v61 = vld [vmem:[%s2681_s9 + $0x1c] sm:$0xf] }
  0x2e   : > { %2228 = vmatprep.subr.bf16.mxu0 %v2497_v33  ;;  %2345 = vmatmul.mubr.bf16.vlgmr.msra.gmra.mrb[0].mxu1 %v2043_v48  ;;  %v737_v19 = vrot.slane %v736_v10, 4  ;;  %v273_v33 = vld [vmem:[%s2681_s9 + $0xb8] sm:$0xf]  ;;  %v777_v55 = vrot.slane %v775_v41, 5 }
  0x2f   : > { %2353 = vmatpush3.bf16.msra.mxu1 %v2713_v51  ;;  %v826_v51 = vshrl.u32 %v266_v1, 16  ;;  %v758_v37 = vshrl.u32 %v273_v33, 16  ;;  %v761_v38 = vshll.u32 %v273_v33, 16  ;;  %v843_v1 = vrot.slane %v842_v45, 4  ;;  %v2875_v45 = vld [vmem:[%s3120_s1 + $0x200] sm:$0xff]  }
  0x30   : > { %2354 = vmatprep.subr.bf16.mxu1 %v2494_v42  ;;  %1106 = vmatmul.mubr.bf16.gmra.mrb[4].mxu0 %v2035_v52  ;;  %v742_v24 = vsel %vm2706_vm2, %v737_v19, %v741_v7  ;;  %v852_v10 = vor.u32 %v851_v59, %v848_v53  ;;  %v2889_v53 = vld [vmem:[%s2681_s9 + $0x24] sm:$0xf]  ;;  %v237_v59 = vld [vmem:[%s2681_s9 + $0x28] sm:$0xf] }
  0x31   : > { %2229 = vmatpush3.bf16.msra.mxu0 %v2499_v40  ;;  %v828_v16 = vrot.slane %v826_v51, 4  ;;  %v2040_v32 = vcombine.low %v742_v24, %v756_v28  ;;  %v772_v40 = vshrl.u32 %v276_v35, 16  ;;  %v760_v48 = vrot.slane %v758_v37, 4  ;;  %v231_v24 = vld [vmem:[%s2681_s9 + $0x10] sm:$0xf] }
  0x32   : > { %2230 = vmatprep.subr.bf16.mxu0 %v2500_v47  ;;  %v2508_v47 = vld [vmem:[%s3120_s1 + $0xa8] sm:$0xff]   ;;  %v763_v49 = vrot.slane %v761_v38, 5  ;;  %v844_v51 = vsel %vm2706_vm2, %v843_v1, %v2784_v8  ;;  %v2037_v8 = vcombine.low %v2815_v43, %v2818_v44  ;;  %v853_v15 = vrot.slane %v852_v10, 4 }
  0x33   : > { %2355 = vmatpush3.bf16.msra.mxu1 %v2494_v42  ;;  %v832_v23 = vor.u32 %v831_v17, %v828_v16  ;;  %1113 = vmatprep.mubr.bf16.mxu0 %v2040_v32  ;;  %v781_v42 = vshll.u32 %v277_v36, 16  ;;  %v774_v50 = vrot.slane %v772_v40, 4  ;;  %v2515_v16 = vld [vmem:[%s3120_s1 + $0xb8] sm:$0xff]   ;;  %v227_v32 = vld [vmem:[%s2681_s9] sm:$0xf]  ;;  %v449_v36 = vshll.u32 %v232_v25, 16 }
  0x34   : > { %2356 = vmatprep.subr.bf16.mxu1 %v2498_v3  ;;  %v764_v58 = vor.u32 %v763_v49, %v760_v48  ;;  %v2516_v17 = vld [vmem:[%s3120_s1 + $0x38] sm:$0xff]   ;;  %v2870_v37 = vld [vmem:[%s2681_s9 + $0xc] sm:$0xf]  ;;  %v538_v43 = vshrl.u32 %v227_v32, 16  ;;  %v541_v44 = vshll.u32 %v227_v32, 16  ;;  %v457_v1 = vshll.u32 %v234_v61, 16 }
  0x35   : > { %2231 = vmatpush3.bf16.msra.mxu0 %v2502_v54  ;;  %v833_v31 = vrot.slane %v832_v23, 4  ;;  %v769_v54 = vrot.slane %v767_v39, 5  ;;  %v783_v60 = vrot.slane %v781_v42, 5  ;;  %v778_v0 = vor.u32 %v777_v55, %v774_v50  ;;  %v238_v25 = vld [vmem:[%s2681_s9 + $0x2c] sm:$0x1] }
  0x36   : > { %2232 = vmatprep.subr.bf16.mxu0 %v2504_v14  ;;  %v854_v23 = vsel %vm2706_vm2, %v853_v15, %v763_v49  ;;  %v451_v42 = vrot.slane %v449_v36, 5  ;;  %v548_v48 = vshrl.u32 %v2870_v37, 16  ;;  %v551_v49 = vshll.u32 %v2870_v37, 16 }
  0x37   : > { %2357 = vmatpush3.bf16.msra.mxu1 %v2498_v3  ;;  %v834_v52 = vsel %vm2706_vm2, %v833_v31, %v2782_v5  ;;  %v765_v3 = vrot.slane %v764_v58, 4  ;;  %v861_v5 = vrot.slane %v859_v62, 5  ;;  %v779_v7 = vrot.slane %v778_v0, 4 }
  0x38   : > { %2358 = vmatprep.subr.bf16.mxu1 %v2501_v18  ;;  %1114 = vmatmul.mubr.bf16.gmra.mrb[8].mxu0 %v2036_v29  ;;  %v2044_v12 = vcombine.low %v834_v52, %v844_v51  ;;  %v435_v29 = vshll.u32 %v229_v21, 16  ;;  %v443_v31 = vshll.u32 %v231_v24, 16  ;;  %v2022_v52 = vcombine.low %v227_v32, %v2870_v37 }
  0x39   : > { %2233 = vmatpush3.bf16.msra.mxu0 %v2506_v20  ;;  %v770_v11 = vsel %vm2706_vm2, %v765_v3, %v769_v54  ;;  %v862_v13 = vor.u32 %v861_v5, %v858_v4  ;;  %v784_v14 = vsel %vm2706_vm2, %v779_v7, %v783_v60  ;;  %v228_v20 = vld [vmem:[%s2681_s9 + $0x4] sm:$0xf]  ;;  %v540_v54 = vrot.slane %v538_v43, 4  ;;  %v2528_v43 = vld [vmem:[%s3120_s1 + $0x1d8] sm:$0xff]  }
  0x3a   : > { %2234 = vmatprep.subr.bf16.mxu0 %v2507_v22  ;;  %2348 = vmatprep.mubr.bf16.mxu1 %v2044_v12  ;;  %v2518_v22 = vld [vmem:[%s3120_s1 + $0x1c0] sm:$0xff]   ;;  %v426_v26 = vshrl.u32 %v228_v20, 16  ;;  %v437_v38 = vrot.slane %v435_v29, 5  ;;  %v445_v40 = vrot.slane %v443_v31, 5  ;;  %v550_v58 = vrot.slane %v548_v48, 4  ;;  %v2521_v12 = vld [vmem:[%s3120_s1 + $0x1c8] sm:$0xff]  }
  0x3b   : > { %2359 = vmatpush3.bf16.msra.mxu1 %v2501_v18  ;;  %v2041_v18 = vcombine.low %v770_v11, %v784_v14  ;;  %v863_v19 = vrot.slane %v862_v13, 4  ;;  %v553_v60 = vrot.slane %v551_v49, 5  ;;  %v558_v62 = vshrl.u32 %v2881_v56, 16  ;;  %v2520_v3 = vld [vmem:[%s3120_s1 + $0x180] sm:$0xff]  }
  0x3c   : > { %2360 = vmatprep.subr.bf16.mxu1 %v2505_v27  ;;  %v428_v34 = vrot.slane %v426_v26, 4  ;;  %v459_v10 = vrot.slane %v457_v1, 5  ;;  %v571_v15 = vshll.u32 %v2889_v53, 16  ;;  %v454_v26 = vshrl.u32 %v234_v61, 16 }
  0x3d   : > { %2235 = vmatpush3.bf16.msra.mxu0 %v2509_v30  ;;  %1121 = vmatprep.mubr.bf16.mxu0 %v2041_v18  ;;  %v864_v28 = vsel %vm2706_vm2, %v863_v19, %v777_v55  ;;  %v440_v30 = vshrl.u32 %v231_v24, 16  ;;  %v543_v55 = vrot.slane %v541_v44, 5  ;;  %v554_v5 = vor.u32 %v553_v60, %v550_v58  ;;  %v2523_v18 = vld [vmem:[%s3120_s1 + $0x188] sm:$0xff]   ;;  %v243_v58 = vld [vmem:[%s2681_s9 + $0x40] sm:$0xf] }
  0x3e   : > { %2236 = vmatprep.subr.bf16.mxu0 %v2511_v63  ;;  %v2045_v33 = vcombine.low %v854_v23, %v864_v28  ;;  %v560_v7 = vrot.slane %v558_v62, 4  ;;  %v573_v21 = vrot.slane %v571_v15, 5  ;;  %v2525_v28 = vld [vmem:[%s3120_s1 + $0x1d0] sm:$0xff]   ;;  %v477_v31 = vshll.u32 %v238_v25, 16  ;;  %v244_v60 = vld [vmem:[%s2681_s9 + $0x44] sm:$0x1] }
  0x3f   : > { %2361 = vmatpush3.bf16.msra.mxu1 %v2505_v27  ;;  %v429_v27 = vshll.u32 %v228_v20, 16  ;;  %v442_v39 = vrot.slane %v440_v30, 4  ;;  %v544_v0 = vor.u32 %v543_v55, %v540_v54  ;;  %v555_v13 = vrot.slane %v554_v5, 4  ;;  %v241_v54 = vld [vmem:[%s2681_s9 + $0x38] sm:$0x1]  ;;  %v2537_v25 = vld [vmem:[%s3120_s1 + $0x1a8] sm:$0xff]  }
  0x40   : > { %2362 = vmatprep.subr.bf16.mxu1 %v2508_v47  ;;  %1122 = vmatmul.mubr.bf16.gmra.mrb[12].mxu0 %v2037_v8  ;;  %v568_v8 = vshrl.u32 %v2889_v53, 16  ;;  %v468_v30 = vshrl.u32 %v237_v59, 16  ;;  %v456_v32 = vrot.slane %v454_v26, 4  ;;  %v496_v1 = vshrl.u32 %v243_v58, 16 }
  0x41   : > { %2237 = vmatpush3.bf16.msra.mxu0 %v2513_v2  ;;  %v431_v35 = vrot.slane %v429_v27, 5  ;;  %2349 = vmatmul.mubr.bf16.gmra.mrb[4].mxu1 %v2045_v33  ;;  %v561_v2 = vshll.u32 %v2881_v56, 16  ;;  %v2913_v19 = vsel %vm2706_vm2, %v555_v13, %v445_v40  ;;  %v2529_v13 = vld [vmem:[%s3120_s1 + $0x218] sm:$0xff]  }
  0x42   : > { %2238 = vmatprep.subr.bf16.mxu0 %v2514_v6  ;;  %v471_v6 = vshll.u32 %v237_v59, 16  ;;  %v570_v20 = vrot.slane %v568_v8, 4  ;;  %v470_v36 = vrot.slane %v468_v30, 4  ;;  %v491_v59 = vshll.u32 %v241_v54, 16  ;;  %v246_v30 = vld [vmem:[%s2681_s9 + $0x4c] sm:$0xf] }
  0x43   : > { %2363 = vmatpush3.bf16.msra.mxu1 %v2508_v47  ;;  %v432_v41 = vor.u32 %v431_v35, %v428_v34  ;;  %v446_v47 = vor.u32 %v445_v40, %v442_v39  ;;  %v563_v11 = vrot.slane %v561_v2, 5  ;;  %v460_v39 = vor.u32 %v459_v10, %v456_v32 }
  0x44   : > { %2364 = vmatprep.subr.bf16.mxu1 %v2512_v9  ;;  %v473_v14 = vrot.slane %v471_v6, 5  ;;  %v574_v29 = vor.u32 %v573_v21, %v570_v20  ;;  %v499_v2 = vshll.u32 %v243_v58, 16  ;;  %v2535_v21 = vld [vmem:[%s3120_s1 + $0x1e8] sm:$0xff]  }
  0x45   : > { %2239 = vmatpush3.bf16.msra.mxu0 %v2516_v17  ;;  %v433_v50 = vrot.slane %v432_v41, 4  ;;  %v447_v57 = vrot.slane %v446_v47, 4  ;;  %v564_v17 = vor.u32 %v563_v11, %v560_v7  ;;  %v2522_v47 = vld [vmem:[%s3120_s1 + $0x208] sm:$0xff]   ;;  %v461_v48 = vrot.slane %v460_v39, 4 }
  0x46   : > { %2276 = vmatprep.subr.bf16.mxu0 %v2518_v22  ;;  %v235_v22 = vld [vmem:[%s2681_s9 + $0x20] sm:$0x1]  ;;  %v575_v34 = vrot.slane %v574_v29, 4  ;;  %v474_v41 = vor.u32 %v473_v14, %v470_v36  ;;  %v505_v7 = vshll.u32 %v244_v60, 16  ;;  %v498_v11 = vrot.slane %v496_v1, 4 }
  0x47   : > { %2365 = vmatpush3.bf16.msra.mxu1 %v2512_v9  ;;  %v438_v63 = vsel %vm2706_vm2, %v433_v50, %v437_v38  ;;  %v2898_v4 = vsel %vm2706_vm2, %v447_v57, %v451_v42  ;;  %v545_v9 = vrot.slane %v544_v0, 4  ;;  %v565_v24 = vrot.slane %v564_v17, 4  ;;  %v2527_v38 = vld [vmem:[%s3120_s1 + $0x190] sm:$0xff]   ;;  %v2530_v50 = vld [vmem:[%s3120_s1 + $0x198] sm:$0xff]   ;;  %v2534_v17 = vld [vmem:[%s3120_s1 + $0x1a0] sm:$0xff]  }
  0x48   : > { %2366 = vmatprep.subr.bf16.mxu1 %v2515_v16  ;;  %v2026_v51 = vcombine.low %v438_v63, %v2898_v4  ;;  %v463_v27 = vshll.u32 %v235_v22, 16  ;;  %v2930_v40 = vsel %vm2706_vm2, %v575_v34, %v473_v14  ;;  %v479_v42 = vrot.slane %v477_v31, 5  ;;  %v2526_v0 = vld [vmem:[%s3120_s1 + $0x210] sm:$0xff]   ;;  %v249_v34 = vld [vmem:[%s2681_s9 + $0x58] sm:$0xf] }
  0x49   : > { %v2923_v33 = vsel %vm2706_vm2, %v565_v24, %v459_v10  ;;  %v475_v49 = vrot.slane %v474_v41, 4  ;;  %v2023_v57 = vcombine.low %v2881_v56, %v2889_v53  ;;  %v493_v10 = vrot.slane %v491_v59, 5  ;;  %v247_v31 = vld [vmem:[%s2681_s9 + $0x50] sm:$0x1] }
  0x4a   : > { %1371 = vmatprep.mubr.bf16.mxu0 %v2026_v51  ;;  %v2031_v44 = vcombine.low %v2923_v33, %v2930_v40  ;;  %v2969_v51 = vld [vmem:[%s2681_s9 + $0x3c] sm:$0xf]  ;;  %v507_v8 = vrot.slane %v505_v7, 5  ;;  %v510_v36 = vshrl.u32 %v246_v30, 16  ;;  %v519_v39 = vshll.u32 %v247_v31, 16 }
  0x4b   : > { %2367 = vmatpush3.bf16.msra.mxu1 %v2515_v16  ;;  %v546_v16 = vsel %vm2706_vm2, %v545_v9, %v431_v35  ;;  %1372 = vmatmul.mubr.bf16.vlgmr.msra.gmra.mrb[16].mxu0 %v2022_v52  ;;  %v465_v35 = vrot.slane %v463_v27, 5  ;;  %v240_v52 = vld [vmem:[%s2681_s9 + $0x34] sm:$0xf]  ;;  %v2956_v63 = vsel %vm2706_vm2, %v475_v49, %v479_v42  ;;  %v2532_v9 = vld [vmem:[%s3120_s1 + $0x1e0] sm:$0xff]   ;;  %v588_v20 = vshrl.u32 %v2969_v51, 16  ;;  %v2544_v31 = vld [vmem:[%s3120_s1 + $0x1b8] sm:$0xff]  }
  0x4c   : > { %2376 = vmatprep.subr.bf16.mxu1 %v2875_v45  ;;  %v2030_v23 = vcombine.low %v546_v16, %v2913_v19  ;;  %2277 = vmatpush3.bf16.msra.mxu0 %v2520_v3  ;;  %v482_v61 = vshrl.u32 %v240_v52, 16  ;;  %v485_v62 = vshll.u32 %v240_v52, 16  ;;  %v2962_v3 = vld [vmem:[%s2681_s9 + $0x30] sm:$0xf]  ;;  %v2533_v27 = vld [vmem:[%s3120_s1 + $0x220] sm:$0xff]   ;;  %v524_v41 = vshrl.u32 %v249_v34, 16 }
  0x4d   : > { %2278 = vmatprep.subr.bf16.mxu0 %v2521_v12  ;;  %v2947_v55 = vsel %vm2706_vm2, %v461_v48, %v465_v35  ;;  %v2974_v12 = vrot.slane %v499_v2, 5  ;;  %v578_v15 = vshrl.u32 %v2962_v3, 16  ;;  %v581_v16 = vshll.u32 %v2962_v3, 16  ;;  %v250_v35 = vld [vmem:[%s2681_s9 + $0x5c] sm:$0x1]  ;;  %v2539_v2 = vld [vmem:[%s3120_s1 + $0x1f0] sm:$0xff]  }
  0x4e   : > { %2368 = vmatprep.mubr.bf16.mxu1 %v2030_v23  ;;  %v2027_v5 = vcombine.low %v2947_v55, %v2956_v63  ;;  %v484_v6 = vrot.slane %v482_v61, 4  ;;  %v591_v23 = vshll.u32 %v2969_v51, 16  ;;  %v2024_v29 = vcombine.low %v2962_v3, %v2969_v51  ;;  %v3017_v52 = vld [vmem:[%s2681_s9 + $0x54] sm:$0xf]  ;;  %v2536_v61 = vld [vmem:[%s3120_s1 + $0x228] sm:$0xff]  }
  0x4f   : > { %2369 = vmatmul.mubr.bf16.vlgmr.msra.gmra.mrb[0].mxu1 %v2031_v44  ;;  %v527_v42 = vshll.u32 %v249_v34, 16  ;;  %v3014_v44 = vld [vmem:[%s2681_s9 + $0x48] sm:$0xf]  ;;  %v580_v49 = vrot.slane %v578_v15, 4  ;;  %v521_v54 = vrot.slane %v519_v39, 5  ;;  %v590_v59 = vrot.slane %v588_v20, 4 }
  0x50   : > { %2279 = vmatpush3.bf16.msra.mxu0 %v2523_v18  ;;  %2377 = vmatpush3.bf16.msra.mxu1 %v2875_v45  ;;  %v2966_v45 = vrot.slane %v485_v62, 5  ;;  %v502_v18 = vor.u32 %v2974_v12, %v498_v11  ;;  %v593_v1 = vrot.slane %v591_v23, 5  ;;  %v601_v7 = vshll.u32 %v3014_v44, 16  ;;  %v2542_v15 = vld [vmem:[%s3120_s1 + $0x1f8] sm:$0xff]   ;;  %v2540_v20 = vld [vmem:[%s3120_s1 + $0x230] sm:$0xff]  }
  0x51   : > { %2280 = vmatprep.subr.bf16.mxu0 %v2525_v28  ;;  %2378 = vmatprep.subr.bf16.mxu1 %v2522_v47  ;;  %v529_v58 = vrot.slane %v527_v42, 5  ;;  %v2098_v34 = vcombine.low %v2898_v4, %v2947_v55  ;;  %v251_v39 = vld [vmem:[%s2681_s9 + $0x60] sm:$0xf] }
  0x52   : > { %1379 = vmatprep.mubr.bf16.mxu0 %v2027_v5  ;;  %v488_v14 = vor.u32 %v2966_v45, %v484_v6  ;;  %v503_v24 = vrot.slane %v502_v18, 4  ;;  %v598_v6 = vshrl.u32 %v3014_v44, 16  ;;  %v603_v18 = vrot.slane %v601_v7, 5 }
  0x53   : > { %1380 = vmatmul.mubr.bf16.gmra.mrb[20].mxu0 %v2023_v57  ;;  %v526_v57 = vrot.slane %v524_v41, 4  ;;  %v2543_v41 = vld [vmem:[%s3120_s1 + $0x238] sm:$0xff]   ;;  %v1484_v42 = vshrl.u32 %v251_v39, 16 }
  0x54   : > { %2281 = vmatpush3.bf16.msra.mxu0 %v2527_v38  ;;  %2379 = vmatpush3.bf16.msra.mxu1 %v2522_v47  ;;  %v489_v22 = vrot.slane %v488_v14, 4  ;;  %v3003_v28 = vsel %vm2706_vm2, %v503_v24, %v507_v8  ;;  %v513_v38 = vshll.u32 %v246_v30, 16  ;;  %v512_v47 = vrot.slane %v510_v36, 4 }
  0x55   : > { %2282 = vmatprep.subr.bf16.mxu0 %v2528_v43  ;;  %2380 = vmatprep.subr.bf16.mxu1 %v2526_v0  ;;  %v533_v43 = vshll.u32 %v250_v35, 16  ;;  %v530_v5 = vor.u32 %v529_v58, %v526_v57  ;;  %v594_v14 = vor.u32 %v593_v1, %v590_v59  ;;  %v611_v8 = vshll.u32 %v3017_v52, 16 }
  0x56   : > { %v2996_v26 = vsel %vm2706_vm2, %v489_v22, %v493_v10  ;;  %v515_v48 = vrot.slane %v513_v38, 5  ;;  %v2541_v10 = vld [vmem:[%s3120_s1 + $0x1b0] sm:$0xff]  }
  0x57   : > { %v2028_v32 = vcombine.low %v2996_v26, %v3003_v28  ;;  %v535_v60 = vrot.slane %v533_v43, 5  ;;  %v595_v23 = vrot.slane %v594_v14, 4  ;;  %v613_v30 = vrot.slane %v611_v8, 5 }
  0x58   : > { %2283 = vmatpush3.bf16.msra.mxu0 %v2530_v50  ;;  %2381 = vmatpush3.bf16.msra.mxu1 %v2526_v0  ;;  %v583_v50 = vrot.slane %v581_v16, 5  ;;  %v516_v62 = vor.u32 %v515_v48, %v512_v47  ;;  %v531_v16 = vrot.slane %v530_v5, 4  ;;  %v1487_v43 = vshll.u32 %v251_v39, 16  ;;  %v252_v47 = vld [vmem:[%s2681_s9 + $0x64] sm:$0xf] }
  0x59   : > { %2284 = vmatprep.subr.bf16.mxu0 %v2532_v9  ;;  %2382 = vmatprep.subr.bf16.mxu1 %v2529_v13  ;;  %v608_v9 = vshrl.u32 %v3017_v52, 16 }
  0x5a   : > { %1387 = vmatprep.mubr.bf16.mxu0 %v2028_v32  ;;  %v584_v0 = vor.u32 %v583_v50, %v580_v49  ;;  %v517_v11 = vrot.slane %v516_v62, 4  ;;  %v596_v32 = vsel %vm2706_vm2, %v595_v23, %v2974_v12  ;;  %v2102_v12 = vcombine.low %v2913_v19, %v2923_v33 }
  0x5b   : > { %1388 = vmatmul.mubr.bf16.gmra.mrb[24].mxu0 %v2024_v29  ;;  %v610_v24 = vrot.slane %v608_v9, 4  ;;  %v1470_v50 = vshrl.u32 %v252_v47, 16  ;;  %v1489_v57 = vrot.slane %v1487_v43, 5  ;;  %v2099_v62 = vcombine.low %v2956_v63, %v2996_v26 }
  0x5c   : > { %2285 = vmatpush3.bf16.msra.mxu0 %v2534_v17  ;;  %2383 = vmatpush3.bf16.msra.mxu1 %v2529_v13  ;;  %v585_v13 = vrot.slane %v584_v0, 4  ;;  %v600_v17 = vrot.slane %v598_v6, 4  ;;  %v253_v0 = vld [vmem:[%s2681_s9 + $0x68] sm:$0x1]  ;;  %s2140_s9 = sshll.u32 %s3130_s12, 5 }
  0x5d   : > { %2286 = vmatprep.subr.bf16.mxu0 %v2535_v21  ;;  %2384 = vmatprep.subr.bf16.mxu1 %v2533_v27  ;;  %v3040_v21 = vsel %vm2706_vm2, %v517_v11, %v521_v54  ;;  %v614_v38 = vor.u32 %v613_v30, %v610_v24  ;;  %v1486_v54 = vrot.slane %v1484_v42, 4  ;;  %v1472_v33 = vrot.slane %v1470_v50, 4  ;;  %s3098_s5 = scalar_lea.vmem %s3121_s2, %s2140_s9 }
  0x5e   : > { %v586_v22 = vsel %vm2706_vm2, %v585_v13, %v2966_v45  ;;  %v604_v29 = vor.u32 %v603_v18, %v600_v17  ;;  %v1479_v6 = vshll.u32 %v253_v0, 16 }
  0x5f   : > { %v2032_v35 = vcombine.low %v586_v22, %v596_v32  ;;  %v615_v55 = vrot.slane %v614_v38, 4  ;;  %v1490_v19 = vor.u32 %v1489_v57, %v1486_v54  ;;  %v2103_v59 = vcombine.low %v2930_v40, %v586_v22 }
  0x60   : > { %2287 = vmatpush3.bf16.msra.mxu0 %v2537_v25  ;;  %2385 = vmatpush3.bf16.msra.mxu1 %v2533_v27  ;;  %v3047_v25 = vsel %vm2706_vm2, %v531_v16, %v535_v60  ;;  %v2025_v27 = vcombine.low %v3014_v44, %v3017_v52  ;;  %v605_v36 = vrot.slane %v604_v29, 4  ;;  %v1481_v7 = vrot.slane %v1479_v6, 5 }
  0x61   : > { %2288 = vmatprep.subr.bf16.mxu0 %v2539_v2  ;;  %2386 = vmatprep.subr.bf16.mxu1 %v2536_v61  ;;  %v2029_v45 = vcombine.low %v3040_v21, %v3047_v25  ;;  %v616_v49 = vsel %vm2706_vm2, %v615_v55, %v529_v58  ;;  %v1491_v2 = vrot.slane %v1490_v19, 4 }
  0x62   : > { %2372 = vmatprep.mubr.bf16.mxu1 %v2032_v35  ;;  %v606_v4 = vsel %vm2706_vm2, %v605_v36, %v515_v48  ;;  %v1473_v48 = vshll.u32 %v252_v47, 16 }
  0x63   : > { %1395 = vmatprep.mubr.bf16.mxu0 %v2029_v45  ;;  %v2033_v60 = vcombine.low %v606_v4, %v616_v49  ;;  %v2104_v1 = vcombine.low %v596_v32, %v606_v4 }
  0x64   : > { %2289 = vmatpush3.bf16.msra.mxu0 %v2541_v10  ;;  %2387 = vmatpush3.bf16.msra.mxu1 %v2536_v61  ;;  %v2094_v61 = vcombine.low %v2870_v37, %v2881_v56  ;;  %v1475_v58 = vrot.slane %v1473_v48, 5  ;;  %v2095_v37 = vcombine.low %v2889_v53, %v2962_v3  ;;  %v2100_v56 = vcombine.low %v3003_v28, %v3040_v21 }
  0x65   : > { %2290 = vmatprep.subr.bf16.mxu0 %v2542_v15  ;;  %2388 = vmatprep.subr.bf16.mxu1 %v2540_v20  ;;  %v2096_v10 = vcombine.low %v2969_v51, %v3014_v44  ;;  %v2097_v3 = vcombine.low %v3017_v52, %v251_v39 }
  0x66   : > { %1396 = vmatmul.mubr.bf16.gmra.mrb[28].mxu0 %v2025_v27  ;;  %2373 = vmatmul.mubr.bf16.gmra.mrb[4].mxu1 %v2033_v60  ;;  %v1476_v5 = vor.u32 %v1475_v58, %v1472_v33  ;;  %v1492_v63 = vsel %vm2706_vm2, %v1491_v2, %v1475_v58 }
  0x67   : > { %1697 = vmatprep.mubr.bf16.mxu0 %v2098_v34  ;;  %2392 = vmatprep.mubr.bf16.mxu1 %v2102_v12  ;;  %v2105_v40 = vcombine.low %v616_v49, %v1492_v63 }
  0x68   : > { %2291 = vmatpush3.bf16.msra.mxu0 %v2544_v31  ;;  %2389 = vmatpush3.bf16.msra.mxu1 %v2540_v20  ;;  %v1477_v26 = vrot.slane %v1476_v5, 4 }
  0x69   : > { %2390 = vmatprep.subr.bf16.mxu1 %v2543_v41 }
  0x6a   : > { %v1482_v9 = vsel %vm2706_vm2, %v1477_v26, %v1481_v7 }
  0x6b   : > { %v2101_v53 = vcombine.low %v3047_v25, %v1482_v9 }
  0x6c   : > { %2391 = vmatpush3.bf16.msra.mxu1 %v2543_v41 }
  0x6e   : > { %1698 = vmatmul.mubr.bf16.vlgmr.msra.gmra.mrb[32].mxu0 %v2094_v61 }
  0x6f   : > { %1705 = vmatprep.mubr.bf16.mxu0 %v2099_v62  ;;  %2393 = vmatmul.mubr.bf16.vlgmr.msra.gmra.mrb[0].mxu1 %v2103_v59 }
  0x70   : > { %2396 = vmatprep.mubr.bf16.mxu1 %v2104_v1 }
  0x76   : > { %1706 = vmatmul.mubr.bf16.gmra.mrb[36].mxu0 %v2095_v37 }
  0x77   : > { %1713 = vmatprep.mubr.bf16.mxu0 %v2100_v56  ;;  %2397 = vmatmul.mubr.bf16.gmra.mrb[4].mxu1 %v2105_v40 }
  0x7e   : > { %1714 = vmatmul.mubr.bf16.gmra.mrb[40].mxu0 %v2096_v10 }
  0x7f   : > { %1721 = vmatprep.mubr.bf16.mxu0 %v2101_v53 }
  0x86   : > { %1722 = vmatmul.mubr.bf16.gmra.mrb[44].mxu0 %v2097_v3 }
  0xfb   : > { %v2188_v28 = vpop.f32.mrb[0].mxu0 }
  0xfc   : > { %v2189_v11 = vpop.f32.mrb[1].mxu0 }
  0xfd   : > { %v2190_v13 = vadd.f32 %v2189_v11, %v2188_v28  ;;  %v2191_v14 = vpop.f32.mrb[2].mxu0 }
  0xfe   : > { %v2192_v8 = vpop.f32.mrb[3].mxu0 }
  0xff   : > { %v2193_v15 = vadd.f32 %v2192_v8, %v2191_v14 }
 0x103   : > { %v2194_v16 = vpop.f32.mrb[4].mxu0 }
 0x104   : > { %v2195_v46 = vpop.f32.mrb[5].mxu0 }
 0x105   : > { %v2196_v17 = vadd.f32 %v2195_v46, %v2194_v16  ;;  %v2197_v18 = vpop.f32.mrb[6].mxu0 }
 0x106   : > { %v2198_v20 = vpop.f32.mrb[7].mxu0 }
 0x107   : > { %v2199_v51 = vadd.f32 %v2198_v20, %v2197_v18 }
 0x10b   : > { %v2200_v44 = vpop.f32.mrb[8].mxu0 }
 0x10c   : > { %v2201_v21 = vpop.f32.mrb[9].mxu0 }
 0x10d   : > { %v2202_v22 = vadd.f32 %v2201_v21, %v2200_v44  ;;  %v2203_v23 = vpop.f32.mrb[10].mxu0 }
 0x10e   : > { %v2204_v24 = vpop.f32.mrb[11].mxu0 }
 0x10f   : > { %v2205_v25 = vadd.f32 %v2204_v24, %v2203_v23 }
 0x113   : > { %v2206_v52 = vpop.f32.mrb[12].mxu0 }
 0x114   : > { %v2207_v27 = vpop.f32.mrb[13].mxu0 }
 0x115   : > { %v2208_v29 = vadd.f32 %v2207_v27, %v2206_v52  ;;  %v2209_v30 = vpop.f32.mrb[14].mxu0 }
 0x116   : > { %v2210_v31 = vpop.f32.mrb[15].mxu0 }
 0x117   : > { %v2211_v45 = vadd.f32 %v2210_v31, %v2209_v30 }
 0x11e   : > { %v2240_v32 = vpop.f32.mrb[16].mxu0 }
 0x11f   : > { %v2241_v34 = vpop.f32.mrb[17].mxu0 }
 0x120   : > { %v2242_v35 = vadd.f32 %v2241_v34, %v2240_v32  ;;  %v2243_v36 = vpop.f32.mrb[18].mxu0 }
 0x121   : > { %v2244_v38 = vpop.f32.mrb[19].mxu0 }
 0x122   : > { %v2403_v39 = vadd.f32 %v2242_v35, %v2190_v13  ;;  %v2245_v41 = vadd.f32 %v2244_v38, %v2243_v36 }
 0x124   : > { %v2409_v42 = vadd.f32 %v2245_v41, %v2193_v15 }
 0x126   : > { %v2246_v43 = vpop.f32.mrb[20].mxu0 }
 0x127   : > { %v2247_v4 = vpop.f32.mrb[21].mxu0 }
 0x128   : > { %v2248_v55 = vadd.f32 %v2247_v4, %v2246_v43  ;;  %v2249_v12 = vpop.f32.mrb[22].mxu0 }
 0x129   : > { %v2250_v47 = vpop.f32.mrb[23].mxu0 }
 0x12a   : > { %v2400_v49 = vadd.f32 %v2248_v55, %v2196_v17  ;;  %v2251_v50 = vadd.f32 %v2250_v47, %v2249_v12 }
 0x12c   : > { %v2406_v54 = vadd.f32 %v2251_v50, %v2199_v51 }
 0x12e   : > { %v2252_v57 = vpop.f32.mrb[24].mxu0 }
 0x12f   : > { %v2253_v60 = vpop.f32.mrb[25].mxu0 }
 0x130   : > { %v2254_v61 = vadd.f32 %v2253_v60, %v2252_v57  ;;  %v2255_v48 = vpop.f32.mrb[26].mxu0 }
 0x131   : > { %v2256_v62 = vpop.f32.mrb[27].mxu0 }
 0x132   : > { %v2415_v19 = vadd.f32 %v2254_v61, %v2202_v22  ;;  %v2257_v33 = vadd.f32 %v2256_v62, %v2255_v48 }
 0x134   : > { %v2421_v0 = vadd.f32 %v2257_v33, %v2205_v25 }
 0x139   : > { %v2258_v58 = vpop.f32.mrb[28].mxu0 }
 0x13a   : > { %v2259_v59 = vpop.f32.mrb[29].mxu0 }
 0x13b   : > { %v2260_v1 = vadd.f32 %v2259_v59, %v2258_v58  ;;  %v2261_v2 = vpop.f32.mrb[30].mxu0 }
 0x13c   : > { %v2262_v5 = vpop.f32.mrb[31].mxu0 }
 0x13d   : > { %v3090_v6 = vadd.f32 %v2260_v1, %v2208_v29  ;;  %v2263_v37 = vadd.f32 %v2262_v5, %v2261_v2 }
 0x13f   : > { %v3092_v56 = vadd.f32 %v2263_v37, %v2211_v45 }
 0x141   : > { %v2292_v63 = vpop.f32.mrb[32].mxu0 }
 0x142   : > { %v2293_v26 = vpop.f32.mrb[33].mxu0  ;;  %v2394_v3 = vpop.f32.mrb[0].mxu1 }
 0x143   : > { %v2294_v7 = vadd.f32 %v2293_v26, %v2292_v63  ;;  %v2295_v40 = vpop.f32.mrb[34].mxu0  ;;  %v1764_v28 = vpop.f32.mrb[1].mxu1 }
 0x144   : > { %v2296_v9 = vpop.f32.mrb[35].mxu0  ;;  %v2395_v14 = vpop.f32.mrb[2].mxu1 }
 0x145   : > { %v2404_v10 = vadd.f32 %v2403_v39, %v2294_v7  ;;  %v2297_v53 = vadd.f32 %v2296_v9, %v2295_v40  ;;  %v1767_v8 = vpop.f32.mrb[3].mxu1 }
 0x147   : > { %v2410_v11 = vadd.f32 %v2409_v42, %v2297_v53  ;;  %v2405_v13 = vadd.f32 %v2404_v10, %v1764_v28 }
 0x149   : > { %v2298_v15 = vpop.f32.mrb[36].mxu0  ;;  %v2411_v16 = vadd.f32 %v2410_v11, %v1767_v8  ;;  %v1856_v20 = vmul.f32 %v2405_v13, %v2405_v13 }
 0x14a   : > { %v2299_v46 = vpop.f32.mrb[37].mxu0  ;;  %v2398_v52 = vpop.f32.mrb[4].mxu1 }
 0x14b   : > { %v2300_v17 = vadd.f32 %v2299_v46, %v2298_v15  ;;  %v2301_v18 = vpop.f32.mrb[38].mxu0  ;;  %v2152_v51 = vpack.c.bf16 %v2411_v16, %v2405_v13  ;;  %v1843_v44 = vadd.f32 %v2411_v16, %v2405_v13  ;;  %v1857_v21 = vmul.f32 %v2411_v16, %v2411_v16  ;;  %v1780_v29 = vpop.f32.mrb[5].mxu1 }
 0x14c   : > { %v2302_v22 = vpop.f32.mrb[39].mxu0  ;;  %v2399_v31 = vpop.f32.mrb[6].mxu1 }
 0x14d   : > { %v2401_v23 = vadd.f32 %v2400_v49, %v2300_v17  ;;  %v2303_v24 = vadd.f32 %v2302_v22, %v2301_v18  ;;  %2153 = vst [vmem:[%s3098_s5] sm:$0xff] %v2152_v51   ;;  %v1864_v25 = vadd.f32 %v1857_v21, %v1856_v20  ;;  %v1783_v35 = vpop.f32.mrb[7].mxu1 }
 0x14f   : > { %v2402_v27 = vadd.f32 %v2401_v23, %v2394_v3  ;;  %v2407_v30 = vadd.f32 %v2406_v54, %v2303_v24 }
 0x151   : > { %v1844_v45 = vadd.f32 %v2402_v27, %v1843_v44  ;;  %v1858_v32 = vmul.f32 %v2402_v27, %v2402_v27  ;;  %v2408_v34 = vadd.f32 %v2407_v30, %v2395_v14  ;;  %v2304_v36 = vpop.f32.mrb[40].mxu0 }
 0x152   : > { %v2305_v38 = vpop.f32.mrb[41].mxu0 }
 0x153   : > { %v1865_v39 = vadd.f32 %v1864_v25, %v1858_v32  ;;  %v2157_v41 = vpack.c.bf16 %v2408_v34, %v2402_v27  ;;  %v1845_v42 = vadd.f32 %v2408_v34, %v1844_v45  ;;  %v1859_v43 = vmul.f32 %v2408_v34, %v2408_v34  ;;  %v2307_v4 = vpop.f32.mrb[42].mxu0 }
 0x154   : > { %v2306_v55 = vadd.f32 %v2305_v38, %v2304_v36  ;;  %v2308_v12 = vpop.f32.mrb[43].mxu0 }
 0x155   : > { %2169 = vst [vmem:[%s3098_s5 + $0x8] sm:$0xff] %v2157_v41   ;;  %v1866_v47 = vadd.f32 %v1865_v39, %v1859_v43  ;;  %v2309_v49 = vadd.f32 %v2308_v12, %v2307_v4 }
 0x156   : > { %v2416_v50 = vadd.f32 %v2415_v19, %v2306_v55 }
 0x157   : > { %v2422_v54 = vadd.f32 %v2421_v0, %v2309_v49 }
 0x158   : > { %v2417_v57 = vadd.f32 %v2416_v50, %v1780_v29 }
 0x159   : > { %v2423_v60 = vadd.f32 %v2422_v54, %v1783_v35  ;;  %v2310_v61 = vpop.f32.mrb[44].mxu0 }
 0x15a   : > { %v1846_v48 = vadd.f32 %v2417_v57, %v1845_v42  ;;  %v1860_v62 = vmul.f32 %v2417_v57, %v2417_v57  ;;  %v2311_v33 = vpop.f32.mrb[45].mxu0 }
 0x15b   : > { %v2162_v58 = vpack.c.bf16 %v2423_v60, %v2417_v57  ;;  %v1861_v59 = vmul.f32 %v2423_v60, %v2423_v60  ;;  %v2312_v1 = vadd.f32 %v2311_v33, %v2310_v61  ;;  %v2313_v2 = vpop.f32.mrb[46].mxu0 }
 0x15c   : > { %v1867_v5 = vadd.f32 %v1866_v47, %v1860_v62  ;;  %v1847_v37 = vadd.f32 %v2423_v60, %v1846_v48  ;;  %v2314_v63 = vpop.f32.mrb[47].mxu0 }
 0x15d   : > { %2170 = vst [vmem:[%s3098_s5 + $0x10] sm:$0xff] %v2162_v58   ;;  %v2413_v26 = vadd.f32 %v3090_v6, %v2312_v1  ;;  %v2315_v7 = vadd.f32 %v2314_v63, %v2313_v2 }
 0x15e   : > { %v1868_v19 = vadd.f32 %v1867_v5, %v1861_v59 }
 0x15f   : > { %v2414_v0 = vadd.f32 %v2413_v26, %v2398_v52  ;;  %v2419_v40 = vadd.f32 %v3092_v56, %v2315_v7 }
 0x161   : > { %v1848_v9 = vadd.f32 %v2414_v0, %v1847_v37  ;;  %v1862_v10 = vmul.f32 %v2414_v0, %v2414_v0  ;;  %v2420_v53 = vadd.f32 %v2419_v40, %v2399_v31 }
 0x163   : > { %v1869_v3 = vadd.f32 %v1868_v19, %v1862_v10  ;;  %v2167_v28 = vpack.c.bf16 %v2420_v53, %v2414_v0  ;;  %v1849_v11 = vadd.f32 %v2420_v53, %v1848_v9  ;;  %v1863_v13 = vmul.f32 %v2420_v53, %v2420_v53 }
 0x165   : > { %2171 = vst [vmem:[%s3098_s5 + $0x18] sm:$0xff] %v2167_v28   ;;  %v1850_v14 = vrot.slane %v1849_v11, 4  ;;  %v1870_v8 = vadd.f32 %v1869_v3, %v1863_v13 }
 0x167   : > { %v1851_v15 = vadd.f32 %v1850_v14, %v1849_v11  ;;  %v1871_v16 = vrot.slane %v1870_v8, 4 }
 0x169   : > { %v1852_v46 = vrot.slane %v1851_v15, 2  ;;  %v1872_v6 = vadd.f32 %v1871_v16, %v1870_v8 }
 0x16b   : > { %v1853_v17 = vadd.f32 %v1852_v46, %v1851_v15  ;;  %v1873_v18 = vrot.slane %v1872_v6, 2 }
 0x16d   : > { %v1854_v20 = vrot.slane %v1853_v17, 1  ;;  %v1874_v51 = vadd.f32 %v1873_v18, %v1872_v6 }
 0x16f   : > { %v1875_v56 = vrot.slane %v1874_v51, 1  ;;  %v1855_v44 = vadd.f32 %v1854_v20, %v1853_v17 }
 0x171   : > { %v1876_v21 = vadd.f32 %v1875_v56, %v1874_v51 }
 0x173   : > { %v1878_v22 = vsel %vm1877_vm3, %v1855_v44, %v1876_v21 }
 0x174   : > { %1879 = vst [vmem:[%s225_s10] sm:$0x3] %v1878_v22 }
 0x175 PF: > { %s14_s14 = sadd.s32 1, %s2571_s14   ;;  %s3125_s12 = smov %s2567_s13 }
 0x176   : > { %p11_p5 = scmp.ge.s32.totalorder %s14_s14, 4   ;;  %s3126_s13 = smov %s3128_s15 }
 0x178   :  { %13 = sbr.rel (!%p11_p5) target bundleno = 2 (0x2), region = 70 }

// kernel: residual_bottleneck_blk.10
= control target key start
LH: loop header
LB: loop body
LE: loop exit
PB: predicated region body
PF: predicated region fallthrough
CT: control target
= control target key end

     0   :  { %vm377_vm0 = vcmask 1040384   ;;  %s658_s1 = inlined_call_operand.vmem [shape: bf16[128,128], index: 1, kind: input, shape index: {}]   ;;  %s659_s0 = inlined_call_operand.vmem [shape: bf16[128,128], index: 0, kind: input, shape index: {}]   ;;  %s660_s2 = inlined_call_operand.vmem [shape: bf16[128,128], index: 2, kind: output, shape index: {0}]   ;;  %s661_s3 = inlined_call_operand.vmem [shape: f32[1,2,128], index: 3, kind: output, shape index: {1}]  }
   0x1   :  { %v547_v0 = vld [vmem:[%s658_s1] sm:$0xff]   ;;  %v548_v1 = vld [vmem:[%s658_s1 + $0x8] sm:$0xff]   ;;  %v549_v2 = vld [vmem:[%s658_s1 + $0x10] sm:$0xff]  }
   0x2   :  { %499 = vmatprep.subr.bf16.mxu0 %v547_v0  ;;  %531 = vmatprep.subr.bf16.mxu1 %v547_v0  ;;  %v550_v3 = vld [vmem:[%s658_s1 + $0x18] sm:$0xff]   ;;  %v555_v4 = vld [vmem:[%s659_s0] sm:$0xff]   ;;  %v552_v7 = vld [vmem:[%s658_s1 + $0x28] sm:$0xff]  }
   0x3   :  { %500 = vmatpush3.bf16.msra.mxu0 %v547_v0  ;;  %539 = vmatpush3.bf16.msra.mxu1 %v547_v0  ;;  %v551_v5 = vld [vmem:[%s658_s1 + $0x20] sm:$0xff]   ;;  %v553_v8 = vld [vmem:[%s658_s1 + $0x30] sm:$0xff]   ;;  %v554_v9 = vld [vmem:[%s658_s1 + $0x38] sm:$0xff]  }
   0x4   :  { %501 = vmatprep.subr.bf16.mxu0 %v548_v1  ;;  %532 = vmatprep.subr.bf16.mxu1 %v548_v1  ;;  %v559_v6 = vld [vmem:[%s659_s0 + $0x20] sm:$0xff]   ;;  %v556_v10 = vld [vmem:[%s659_s0 + $0x8] sm:$0xff]   ;;  %v557_v12 = vld [vmem:[%s659_s0 + $0x10] sm:$0xff]  }
   0x5   :  { %515 = vmatprep.mubr.bf16.mxu0 %v555_v4  ;;  %523 = vmatprep.mubr.bf16.mxu1 %v559_v6  ;;  %v560_v11 = vld [vmem:[%s659_s0 + $0x28] sm:$0xff]   ;;  %v561_v13 = vld [vmem:[%s659_s0 + $0x30] sm:$0xff]   ;;  %v558_v14 = vld [vmem:[%s659_s0 + $0x18] sm:$0xff]  }
   0x6   :  { %v562_v15 = vld [vmem:[%s659_s0 + $0x38] sm:$0xff]  }
   0x7   :  { %502 = vmatpush3.bf16.msra.mxu0 %v548_v1  ;;  %540 = vmatpush3.bf16.msra.mxu1 %v548_v1 }
   0x8   :  { %503 = vmatprep.subr.bf16.mxu0 %v549_v2  ;;  %533 = vmatprep.subr.bf16.mxu1 %v549_v2 }
   0xb   :  { %504 = vmatpush3.bf16.msra.mxu0 %v549_v2  ;;  %541 = vmatpush3.bf16.msra.mxu1 %v549_v2 }
   0xc   :  { %505 = vmatprep.subr.bf16.mxu0 %v550_v3  ;;  %534 = vmatprep.subr.bf16.mxu1 %v550_v3 }
   0xf   :  { %506 = vmatpush3.bf16.msra.mxu0 %v550_v3  ;;  %542 = vmatpush3.bf16.msra.mxu1 %v550_v3 }
  0x10   :  { %507 = vmatprep.subr.bf16.mxu0 %v551_v5  ;;  %535 = vmatprep.subr.bf16.mxu1 %v551_v5 }
  0x13   :  { %508 = vmatpush3.bf16.msra.mxu0 %v551_v5  ;;  %543 = vmatpush3.bf16.msra.mxu1 %v551_v5 }
  0x14   :  { %509 = vmatprep.subr.bf16.mxu0 %v552_v7  ;;  %536 = vmatprep.subr.bf16.mxu1 %v552_v7 }
  0x17   :  { %510 = vmatpush3.bf16.msra.mxu0 %v552_v7  ;;  %544 = vmatpush3.bf16.msra.mxu1 %v552_v7 }
  0x18   :  { %511 = vmatprep.subr.bf16.mxu0 %v553_v8  ;;  %537 = vmatprep.subr.bf16.mxu1 %v553_v8 }
  0x1b   :  { %512 = vmatpush3.bf16.msra.mxu0 %v553_v8  ;;  %545 = vmatpush3.bf16.msra.mxu1 %v553_v8 }
  0x1c   :  { %513 = vmatprep.subr.bf16.mxu0 %v554_v9  ;;  %538 = vmatprep.subr.bf16.mxu1 %v554_v9 }
  0x1f   :  { %514 = vmatpush3.bf16.msra.mxu0 %v554_v9  ;;  %546 = vmatpush3.bf16.msra.mxu1 %v554_v9 }
  0x22   :  { %516 = vmatmul.mubr.bf16.vlgmr.msra.gmra.mrb[0].mxu0 %v556_v10  ;;  %524 = vmatmul.mubr.bf16.vlgmr.msra.gmra.mrb[0].mxu1 %v560_v11 }
  0x23   :  { %519 = vmatprep.mubr.bf16.mxu0 %v557_v12  ;;  %527 = vmatprep.mubr.bf16.mxu1 %v561_v13 }
  0x2a   :  { %520 = vmatmul.mubr.bf16.gmra.mrb[4].mxu0 %v558_v14  ;;  %528 = vmatmul.mubr.bf16.gmra.mrb[4].mxu1 %v562_v15 }
  0xf5   :  { %v517_v16 = vpop.f32.mrb[0].mxu0  ;;  %v525_v17 = vpop.f32.mrb[0].mxu1 }
  0xf6   :  { %v176_v18 = vpop.f32.mrb[1].mxu0  ;;  %v208_v19 = vpop.f32.mrb[1].mxu1  ;;  %v342_v31 = vmul.f32 %v517_v16, %v517_v16  ;;  %v350_v3 = vmul.f32 %v525_v17, %v525_v17 }
  0xf7   :  { %v518_v20 = vpop.f32.mrb[2].mxu0  ;;  %v526_v21 = vpop.f32.mrb[2].mxu1  ;;  %v340_v22 = vmul.f32 %v176_v18, %v176_v18  ;;  %v348_v61 = vmul.f32 %v208_v19, %v208_v19 }
  0xf8   :  { %v444_v23 = vpack.c.bf16 %v518_v20, %v517_v16  ;;  %v179_v24 = vpop.f32.mrb[3].mxu0  ;;  %v464_v25 = vpack.c.bf16 %v526_v21, %v525_v17  ;;  %v211_v26 = vpop.f32.mrb[3].mxu1  ;;  %v343_v34 = vmul.f32 %v518_v20, %v518_v20  ;;  %v351_v6 = vmul.f32 %v526_v21, %v526_v21 }
  0xf9   :  { %v439_v27 = vpack.c.bf16 %v179_v24, %v176_v18  ;;  %v319_v28 = vadd.f32 %v179_v24, %v176_v18  ;;  %v341_v29 = vmul.f32 %v179_v24, %v179_v24  ;;  %v459_v30 = vpack.c.bf16 %v211_v26, %v208_v19 }
  0xfa   :  { %476 = vst [vmem:[%s660_s2 + $0x8] sm:$0xff] %v444_v23   ;;  %480 = vst [vmem:[%s660_s2 + $0x28] sm:$0xff] %v464_v25   ;;  %v349_v2 = vmul.f32 %v211_v26, %v211_v26 }
  0xfb   :  { %440 = vst [vmem:[%s660_s2] sm:$0xff] %v439_v27   ;;  %v320_v32 = vadd.f32 %v517_v16, %v319_v28  ;;  %v356_v33 = vadd.f32 %v341_v29, %v340_v22  ;;  %479 = vst [vmem:[%s660_s2 + $0x20] sm:$0xff] %v459_v30  }
  0xfd   :  { %v357_v35 = vadd.f32 %v356_v33, %v342_v31  ;;  %v521_v36 = vpop.f32.mrb[4].mxu0  ;;  %v321_v37 = vadd.f32 %v518_v20, %v320_v32  ;;  %v529_v38 = vpop.f32.mrb[4].mxu1 }
  0xfe   :  { %v192_v39 = vpop.f32.mrb[5].mxu0  ;;  %v224_v40 = vpop.f32.mrb[5].mxu1  ;;  %v346_v55 = vmul.f32 %v521_v36, %v521_v36  ;;  %v354_v15 = vmul.f32 %v529_v38, %v529_v38 }
  0xff   :  { %v322_v41 = vadd.f32 %v321_v37, %v192_v39  ;;  %v344_v42 = vmul.f32 %v192_v39, %v192_v39  ;;  %v358_v43 = vadd.f32 %v357_v35, %v343_v34  ;;  %v522_v44 = vpop.f32.mrb[6].mxu0  ;;  %v530_v45 = vpop.f32.mrb[6].mxu1  ;;  %v352_v9 = vmul.f32 %v224_v40, %v224_v40 }
 0x100   :  { %v454_v46 = vpack.c.bf16 %v522_v44, %v521_v36  ;;  %v195_v47 = vpop.f32.mrb[7].mxu0  ;;  %v474_v48 = vpack.c.bf16 %v530_v45, %v529_v38  ;;  %v227_v49 = vpop.f32.mrb[7].mxu1  ;;  %v347_v58 = vmul.f32 %v522_v44, %v522_v44 }
 0x101   :  { %v359_v50 = vadd.f32 %v358_v43, %v344_v42  ;;  %v449_v51 = vpack.c.bf16 %v195_v47, %v192_v39  ;;  %v323_v52 = vadd.f32 %v322_v41, %v195_v47  ;;  %v345_v53 = vmul.f32 %v195_v47, %v195_v47 }
 0x102   :  { %478 = vst [vmem:[%s660_s2 + $0x18] sm:$0xff] %v454_v46   ;;  %482 = vst [vmem:[%s660_s2 + $0x38] sm:$0xff] %v474_v48   ;;  %v469_v54 = vpack.c.bf16 %v227_v49, %v224_v40  ;;  %v353_v14 = vmul.f32 %v227_v49, %v227_v49 }
 0x103   :  { %477 = vst [vmem:[%s660_s2 + $0x10] sm:$0xff] %v449_v51   ;;  %v324_v56 = vadd.f32 %v521_v36, %v323_v52  ;;  %v360_v57 = vadd.f32 %v359_v50, %v345_v53 }
 0x104   :  { %481 = vst [vmem:[%s660_s2 + $0x30] sm:$0xff] %v469_v54  }
 0x105   :  { %v361_v59 = vadd.f32 %v360_v57, %v346_v55  ;;  %v325_v60 = vadd.f32 %v522_v44, %v324_v56 }
 0x107   :  { %v326_v62 = vadd.f32 %v325_v60, %v208_v19  ;;  %v362_v63 = vadd.f32 %v361_v59, %v347_v58  ;;  %v355_v19 = vmul.f32 %v530_v45, %v530_v45 }
 0x109   :  { %v363_v0 = vadd.f32 %v362_v63, %v348_v61  ;;  %v327_v1 = vadd.f32 %v326_v62, %v211_v26 }
 0x10b   :  { %v328_v4 = vadd.f32 %v525_v17, %v327_v1  ;;  %v364_v5 = vadd.f32 %v363_v0, %v349_v2 }
 0x10d   :  { %v365_v7 = vadd.f32 %v364_v5, %v350_v3  ;;  %v329_v8 = vadd.f32 %v526_v21, %v328_v4 }
 0x10f   :  { %v330_v10 = vadd.f32 %v329_v8, %v224_v40  ;;  %v366_v11 = vadd.f32 %v365_v7, %v351_v6 }
 0x111   :  { %v367_v12 = vadd.f32 %v366_v11, %v352_v9  ;;  %v331_v13 = vadd.f32 %v330_v10, %v227_v49 }
 0x113   :  { %v332_v16 = vadd.f32 %v529_v38, %v331_v13  ;;  %v368_v18 = vadd.f32 %v367_v12, %v353_v14 }
 0x115   :  { %v333_v20 = vadd.f32 %v530_v45, %v332_v16  ;;  %v369_v22 = vadd.f32 %v368_v18, %v354_v15 }
 0x117   :  { %v334_v23 = vrot.slane %v333_v20, 4  ;;  %v370_v24 = vadd.f32 %v369_v22, %v355_v19 }
 0x119   :  { %v335_v25 = vadd.f32 %v334_v23, %v333_v20  ;;  %v371_v17 = vrot.slane %v370_v24, 4 }
 0x11b   :  { %v336_v26 = vrot.slane %v335_v25, 2  ;;  %v372_v27 = vadd.f32 %v371_v17, %v370_v24 }
 0x11d   :  { %v337_v28 = vadd.f32 %v336_v26, %v335_v25  ;;  %v373_v21 = vrot.slane %v372_v27, 2 }
 0x11f   :  { %v338_v29 = vrot.slane %v337_v28, 1  ;;  %v374_v30 = vadd.f32 %v373_v21, %v372_v27 }
 0x121   :  { %v375_v31 = vrot.slane %v374_v30, 1  ;;  %v339_v32 = vadd.f32 %v338_v29, %v337_v28 }
 0x123   :  { %v376_v33 = vadd.f32 %v375_v31, %v374_v30 }
 0x125   :  { %v378_v34 = vsel %vm377_vm0, %v339_v32, %v376_v33 }
 0x126   :  { %379 = vst [vmem:[%s661_s3] sm:$0x3] %v378_v34 }

// kernel: residual_bottleneck_blk.11
= control target key start
LH: loop header
LB: loop body
LE: loop exit
PB: predicated region body
PF: predicated region fallthrough
CT: control target
= control target key end

     0   :  { %s535_s0 = inlined_call_operand.vmem [shape: bf16[128,128], index: 0, kind: input, shape index: {}]   ;;  %s536_s1 = inlined_call_operand.vmem [shape: bf16[128,128], index: 1, kind: input, shape index: {}]   ;;  %s537_s2 = inlined_call_operand.vmem [shape: f32[1,128], index: 2, kind: input, shape index: {}]   ;;  %s538_s3 = inlined_call_operand.vmem [shape: f32[1,128], index: 3, kind: input, shape index: {}]   ;;  %s539_s4 = inlined_call_operand.vmem [shape: f32[1,128], index: 4, kind: input, shape index: {}]   ;;  %s540_s5 = inlined_call_operand.vmem [shape: f32[1,128], index: 5, kind: input, shape index: {}]   ;;  %s541_s6 = inlined_call_operand.hbm [shape: f32[128,128], index: 6, kind: output, shape index: {}]  }
   0x1   :  { %v249_v0 = vld [vmem:[%s535_s0] sm:$0xff]   ;;  %v312_v9 = vld [vmem:[%s535_s0 + $0x8] sm:$0xff]   ;;  %v313_v15 = vld [vmem:[%s535_s0 + $0x10] sm:$0xff]  }
   0x2   :  { %v397_v1 = vld [vmem:[%s537_s2] ss:$0 sm:$0xff]  ;;  %v250_v2 = vunpack.c.l.bf16 %v249_v0  ;;  %v251_v5 = vunpack.c.h.bf16 %v249_v0  ;;  %v319_v10 = vld [vmem:[%s536_s1 + $0x8] sm:$0xff]   ;;  %v254_v13 = vunpack.c.l.bf16 %v312_v9  ;;  %v320_v16 = vld [vmem:[%s536_s1 + $0x10] sm:$0xff]   ;;  %v255_v19 = vunpack.c.h.bf16 %v312_v9 }
   0x3   :  { %v281_v3 = vld [vmem:[%s536_s1] sm:$0xff]   ;;  %v286_v14 = vunpack.c.l.bf16 %v319_v10  ;;  %v287_v20 = vunpack.c.h.bf16 %v319_v10  ;;  %v258_v28 = vunpack.c.l.bf16 %v313_v15  ;;  %v290_v29 = vunpack.c.l.bf16 %v320_v16 }
   0x4   :  { %v405_v4 = vld [vmem:[%s539_s4] ss:$0 sm:$0xff]  ;;  %v282_v7 = vunpack.c.l.bf16 %v281_v3  ;;  %v283_v8 = vunpack.c.h.bf16 %v281_v3  ;;  %v63_v11 = vmul.f32 %v250_v2, %v397_v1  ;;  %v64_v12 = vmul.f32 %v251_v5, %v397_v1 }
   0x5   :  { %v410_v6 = vld [vmem:[%s538_s3] ss:$0 sm:$0xff]  ;;  %v65_v23 = vmul.f32 %v254_v13, %v397_v1  ;;  %v143_v24 = vmul.f32 %v286_v14, %v405_v4  ;;  %v66_v26 = vmul.f32 %v255_v19, %v397_v1  ;;  %v144_v27 = vmul.f32 %v287_v20, %v405_v4 }
   0x6   :  { %v141_v17 = vmul.f32 %v282_v7, %v405_v4  ;;  %v142_v18 = vmul.f32 %v283_v8, %v405_v4  ;;  %v86_v21 = vadd.f32 %v410_v6, %v63_v11  ;;  %v87_v22 = vadd.f32 %v410_v6, %v64_v12  ;;  %v435_v25 = vld [vmem:[%s540_s5] ss:$0 sm:$0xff] }
   0x7   :  { %11 = vsyncpa [#allocation3], 0  ;;  %v88_v32 = vadd.f32 %v410_v6, %v65_v23  ;;  %v259_v33 = vunpack.c.h.bf16 %v313_v15  ;;  %v314_v34 = vld [vmem:[%s535_s0 + $0x18] sm:$0xff]   ;;  %v89_v35 = vadd.f32 %v410_v6, %v66_v26  ;;  %v67_v36 = vmul.f32 %v258_v28, %v397_v1  ;;  %v315_v56 = vld [vmem:[%s535_s0 + $0x20] sm:$0xff]  }
   0x8   :  { %v157_v30 = vadd.f32 %v141_v17, %v86_v21  ;;  %v158_v31 = vadd.f32 %v142_v18, %v87_v22  ;;  %v145_v37 = vmul.f32 %v290_v29, %v405_v4  ;;  %v291_v38 = vunpack.c.h.bf16 %v320_v16  ;;  %v321_v43 = vld [vmem:[%s536_s1 + $0x18] sm:$0xff]   ;;  %v322_v61 = vld [vmem:[%s536_s1 + $0x20] sm:$0xff]   ;;  %v316_v9 = vld [vmem:[%s535_s0 + $0x28] sm:$0xff]  }
   0x9   :  { %v159_v41 = vadd.f32 %v143_v24, %v88_v32  ;;  %v68_v42 = vmul.f32 %v259_v33, %v397_v1  ;;  %v160_v44 = vadd.f32 %v144_v27, %v89_v35  ;;  %v90_v45 = vadd.f32 %v410_v6, %v67_v36  ;;  %v323_v14 = vld [vmem:[%s536_s1 + $0x28] sm:$0xff]   ;;  %v317_v28 = vld [vmem:[%s535_s0 + $0x30] sm:$0xff]  }
   0xa   :  { %v180_v39 = vadd.f32 %v435_v25, %v157_v30  ;;  %v181_v40 = vadd.f32 %v435_v25, %v158_v31  ;;  %v146_v46 = vmul.f32 %v291_v38, %v405_v4  ;;  %v262_v47 = vunpack.c.l.bf16 %v314_v34  ;;  %v324_v33 = vld [vmem:[%s536_s1 + $0x30] sm:$0xff]  }
   0xb   :  { %v182_v50 = vadd.f32 %v435_v25, %v159_v41  ;;  %v91_v51 = vadd.f32 %v410_v6, %v68_v42  ;;  %v183_v52 = vadd.f32 %v435_v25, %v160_v44  ;;  %v161_v53 = vadd.f32 %v145_v37, %v90_v45 }
   0xc   :  { %v196_v48 = vmax.f32 %v180_v39, 0.0  ;;  %v197_v49 = vmax.f32 %v181_v40, 0.0  ;;  %v69_v54 = vmul.f32 %v262_v47, %v397_v1  ;;  %v294_v55 = vunpack.c.l.bf16 %v321_v43 }
   0xd   :  { %v198_v57 = vmax.f32 %v182_v50, 0.0  ;;  %v162_v58 = vadd.f32 %v146_v46, %v91_v51  ;;  %v263_v59 = vunpack.c.h.bf16 %v314_v34  ;;  %v295_v60 = vunpack.c.h.bf16 %v321_v43  ;;  %v318_v50 = vld [vmem:[%s535_s0 + $0x38] sm:$0xff]   ;;  %s353_s0 = smov [#allocation2]  }
   0xe   :  { %212 = vst [vmem:[#allocation2] sm:$0xff] %v196_v48  ;;  %213 = vst [vmem:[#allocation2 + $0x8] sm:$0xff] %v197_v49  ;;  %v199_v62 = vmax.f32 %v183_v52, 0.0  ;;  %v184_v63 = vadd.f32 %v435_v25, %v161_v53  ;;  %v92_v0 = vadd.f32 %v410_v6, %v69_v54  ;;  %v147_v2 = vmul.f32 %v294_v55, %v405_v4  ;;  %v325_v51 = vld [vmem:[%s536_s1 + $0x38] sm:$0xff]   ;;  %s233_s1 = sshll.u32 %s353_s0, 4  ;;  %s234_s1 = int_to_ptr.vmem [resolvable:$true] %s233_s1 }
   0xf   :  { %214 = vst [vmem:[#allocation2 + $0x10] sm:$0xff] %v198_v57  ;;  %v185_v3 = vadd.f32 %v435_v25, %v162_v58  ;;  %v70_v5 = vmul.f32 %v263_v59, %v397_v1  ;;  %v148_v7 = vmul.f32 %v295_v60, %v405_v4  ;;  %v266_v8 = vunpack.c.l.bf16 %v315_v56  ;;  %s329_s8 = scalar_lea.vmem %s234_s1, 2048  ;;  %p334_p1 = scmp.lt.s32.totalorder %s234_s1, %s234_s1 }
  0x10   :  { %215 = vst [vmem:[#allocation2 + $0x18] sm:$0xff] %v199_v62  ;;  %v200_v10 = vmax.f32 %v184_v63, 0.0  ;;  %v163_v11 = vadd.f32 %v147_v2, %v92_v0  ;;  %v298_v12 = vunpack.c.l.bf16 %v322_v61  ;;  %v267_v13 = vunpack.c.h.bf16 %v315_v56  ;;  %p330_p0 = scmp.ne.s32.totalorder %s234_s1, %s329_s8  ;;  %p335_p2 = scmp.lt.s32.totalorder %s329_s8, %s329_s8 }
  0x11   :  { %v201_v15 = vmax.f32 %v185_v3, 0.0  ;;  %v93_v16 = vadd.f32 %v410_v6, %v70_v5  ;;  %v71_v17 = vmul.f32 %v266_v8, %v397_v1  ;;  %v299_v18 = vunpack.c.h.bf16 %v322_v61 }
  0x12   :  { %216 = vst [vmem:[#allocation2 + $0x20] sm:$0xff] %v200_v10  ;;  %v186_v19 = vadd.f32 %v435_v25, %v163_v11  ;;  %v149_v20 = vmul.f32 %v298_v12, %v405_v4  ;;  %v72_v21 = vmul.f32 %v267_v13, %v397_v1  ;;  %v270_v22 = vunpack.c.l.bf16 %v316_v9  ;;  %p336_p3 = por %p335_p2, %p334_p1 }
  0x13   :  { %217 = vst [vmem:[#allocation2 + $0x28] sm:$0xff] %v201_v15  ;;  %v164_v23 = vadd.f32 %v148_v7, %v93_v16  ;;  %v94_v24 = vadd.f32 %v410_v6, %v71_v17  ;;  %v150_v26 = vmul.f32 %v299_v18, %v405_v4  ;;  %v302_v27 = vunpack.c.l.bf16 %v323_v14 }
  0x14   :  { %v202_v29 = vmax.f32 %v186_v19, 0.0  ;;  %v95_v30 = vadd.f32 %v410_v6, %v72_v21  ;;  %v73_v31 = vmul.f32 %v270_v22, %v397_v1  ;;  %v271_v32 = vunpack.c.h.bf16 %v316_v9  ;;  %p337_p4 = pnand %p336_p3, %p330_p0 }
  0x15   :  { %v187_v34 = vadd.f32 %v435_v25, %v164_v23  ;;  %v165_v35 = vadd.f32 %v149_v20, %v94_v24  ;;  %v151_v36 = vmul.f32 %v302_v27, %v405_v4  ;;  %v303_v37 = vunpack.c.h.bf16 %v323_v14 }
  0x16   :  { %218 = vst [vmem:[#allocation2 + $0x30] sm:$0xff] %v202_v29  ;;  %v166_v38 = vadd.f32 %v150_v26, %v95_v30  ;;  %v96_v39 = vadd.f32 %v410_v6, %v73_v31  ;;  %v74_v40 = vmul.f32 %v271_v32, %v397_v1  ;;  %v274_v41 = vunpack.c.l.bf16 %v317_v28 }
  0x17   :  { %v203_v42 = vmax.f32 %v187_v34, 0.0  ;;  %v188_v43 = vadd.f32 %v435_v25, %v165_v35  ;;  %v152_v44 = vmul.f32 %v303_v37, %v405_v4  ;;  %v306_v45 = vunpack.c.l.bf16 %v324_v33 }
  0x18   :  { %v189_v46 = vadd.f32 %v435_v25, %v166_v38  ;;  %v167_v47 = vadd.f32 %v151_v36, %v96_v39  ;;  %v97_v48 = vadd.f32 %v410_v6, %v74_v40  ;;  %v75_v49 = vmul.f32 %v274_v41, %v397_v1 }
  0x19   :  { %219 = vst [vmem:[#allocation2 + $0x38] sm:$0xff] %v203_v42  ;;  %v204_v52 = vmax.f32 %v188_v43, 0.0  ;;  %v153_v53 = vmul.f32 %v306_v45, %v405_v4  ;;  %v275_v54 = vunpack.c.h.bf16 %v317_v28  ;;  %v307_v55 = vunpack.c.h.bf16 %v324_v33 }
  0x1a   :  { %v205_v56 = vmax.f32 %v189_v46, 0.0  ;;  %v190_v57 = vadd.f32 %v435_v25, %v167_v47  ;;  %v168_v58 = vadd.f32 %v152_v44, %v97_v48  ;;  %v98_v59 = vadd.f32 %v410_v6, %v75_v49 }
  0x1b   :  { %220 = vst [vmem:[#allocation2 + $0x40] sm:$0xff] %v204_v52  ;;  %v76_v60 = vmul.f32 %v275_v54, %v397_v1  ;;  %v154_v61 = vmul.f32 %v307_v55, %v405_v4  ;;  %v278_v62 = vunpack.c.l.bf16 %v318_v50  ;;  %v310_v63 = vunpack.c.l.bf16 %v325_v51 }
  0x1c   :  { %221 = vst [vmem:[#allocation2 + $0x48] sm:$0xff] %v205_v56  ;;  %v206_v0 = vmax.f32 %v190_v57, 0.0  ;;  %v191_v2 = vadd.f32 %v435_v25, %v168_v58  ;;  %v169_v3 = vadd.f32 %v153_v53, %v98_v59  ;;  %v279_v5 = vunpack.c.h.bf16 %v318_v50 }
  0x1d   :  { %v99_v7 = vadd.f32 %v410_v6, %v76_v60  ;;  %v77_v8 = vmul.f32 %v278_v62, %v397_v1  ;;  %v155_v9 = vmul.f32 %v310_v63, %v405_v4  ;;  %v311_v10 = vunpack.c.h.bf16 %v325_v51 }
  0x1e   :  { %222 = vst [vmem:[#allocation2 + $0x50] sm:$0xff] %v206_v0  ;;  %v207_v11 = vmax.f32 %v191_v2, 0.0  ;;  %v192_v12 = vadd.f32 %v435_v25, %v169_v3  ;;  %v78_v13 = vmul.f32 %v279_v5, %v397_v1 }
  0x1f   :  { %v170_v14 = vadd.f32 %v154_v61, %v99_v7  ;;  %v100_v15 = vadd.f32 %v410_v6, %v77_v8  ;;  %v156_v16 = vmul.f32 %v311_v10, %v405_v4 }
  0x20   :  { %223 = vst [vmem:[#allocation2 + $0x58] sm:$0xff] %v207_v11  ;;  %v208_v17 = vmax.f32 %v192_v12, 0.0  ;;  %v101_v18 = vadd.f32 %v410_v6, %v78_v13 }
  0x21   :  { %v193_v19 = vadd.f32 %v435_v25, %v170_v14  ;;  %v171_v20 = vadd.f32 %v155_v9, %v100_v15 }
  0x22   :  { %224 = vst [vmem:[#allocation2 + $0x60] sm:$0xff] %v208_v17  ;;  %v172_v21 = vadd.f32 %v156_v16, %v101_v18 }
  0x23   :  { %v209_v22 = vmax.f32 %v193_v19, 0.0  ;;  %v194_v23 = vadd.f32 %v435_v25, %v171_v20 }
  0x24   :  { %v195_v1 = vadd.f32 %v435_v25, %v172_v21 }
  0x25   :  { %225 = vst [vmem:[#allocation2 + $0x68] sm:$0xff] %v209_v22  ;;  %v210_v24 = vmax.f32 %v194_v23, 0.0 }
  0x26   :  { %v211_v4 = vmax.f32 %v195_v1, 0.0 }
  0x27   :  { %226 = vst [vmem:[#allocation2 + $0x70] sm:$0xff] %v210_v24 }
  0x28   :  { %227 = vst [vmem:[#allocation2 + $0x78] sm:$0xff] %v211_v4 }
  0x29   :  { %340 = shalt.err (!%p337_p4)
}
  0x2a   :  { %s341_s10 = scalar_lea.hbm %s541_s6, 2048 }
  0x2b   :  { %p342_p5 = scmp.ne.s32.totalorder %s541_s6, %s341_s10  ;;  %p345_p6 = scmp.lt.u32.totalorder %s341_s10, %s541_s6 }
  0x2d   :  { %p347_p7 = pnand %p345_p6, %p342_p5 }
  0x2f   :  { %350 = shalt.err (!%p347_p7)
}
  0x30   :  { %s354_s14 = smov 128   ;;  %s355_s15 = smov 8  }
  0x31   :  { %239 = dma.vmem_to_hbm [thread:$0]  %s234_s1, 2048, %s541_s6, [#allocation3], %s354_s14, %s354_s14, %s355_s15  }
  0x32   :  { %351 = dma.done.wait [#allocation3], 2048  }
  0x33   :  { %352 = vsyncadd [#allocation3], 4294965248 }
  0x34   :  { %243 = vsyncpa [#allocation3], 1 }

</bundles_post_ra>
